<compile_context>
chip_gen: v7x
topology: tpu7x:2x2x1
jax: 0.10.0
libtpu: 0.0.40
codegen_flags: <defaults>
</compile_context>

<pallas_src>
import jax
import jax.numpy as jnp
from jax import lax
from jax.experimental import pallas as pl
from jax.experimental.pallas import tpu as pltpu


# ----------------------------------------------------------------------------
# Static model dimensions (SimpleConv on 1x32x32 inputs, as implied by
# fc1 = Linear(16*5*5, n_classes)).
# ----------------------------------------------------------------------------
H_IN = W_IN = 32
C1, K1 = 6, 5
C2, K2 = 16, 5
W1_OUT = W_IN - K1 + 1          # 28
W1_POOL = W1_OUT // 2           # 14
W2_OUT = W1_POOL - K2 + 1       # 10
W2_POOL = W2_OUT // 2           # 5
FEAT = C2 * W2_POOL * W2_POOL   # 400
LANES = 128                     # lane-dense output padding for the logits


def _round_up(a, b):
    return ((a + b - 1) // b) * b


def _choose_tile(n):
    """Images per grid step: as large as possible (<=32), >=2 steps if we can."""
    n8 = _round_up(max(n, 1), 8)
    if n8 <= 8:
        return 8
    # Prefer at least two grid steps so v7x's two TensorCores both get work,
    # while keeping each tile large.  Working set at B_TILE=32 is ~5 MiB,
    # well inside every generation's scoped-VMEM budget.
    return min(32, _round_up(n8 // 2, 8))


# ----------------------------------------------------------------------------
# Fused kernel factory: whole forward for one batch tile, everything in VMEM.
#
# In-kernel layout: a lane-dense "row slab" whose rows are (image, image-row)
# and whose columns are (channel, width).  A 5x5 VALID conv is ONE matmul of
# the kh-stacked shifted slab against a precomputed banded weight matrix.
# ----------------------------------------------------------------------------
def _make_kernel(b_tile, n_cls_pad):
    rows1 = b_tile * H_IN          # conv1/pool1 slab rows: (b, h),  h  in 0..31
    rows2 = b_tile * (H_IN // 2)   # post-compaction rows:  (b, ph), ph in 0..15
    f32 = jnp.float32

    def shift_up(v, k):
        # Row r of the result is row r+k of v (static slice + concat).  The k
        # wrapped rows at the bottom only ever feed junk rows that no selected
        # output consumes (valid conv rows never read past their own image).
        if k == 0:
            return v
        return jnp.concatenate([v[k:, :], v[:k, :]], axis=0)

    def kernel(x_ref, m1_ref, b1_ref, s1a_ref, s1b_ref,
               m2_ref, b2_ref, s2a_ref, s2b_ref, wfc_ref,
               o_ref, s1, s2):
        # ---------------- conv1 (5x5 VALID) + bias + ReLU -------------------
        x = x_ref[...]                                             # [rows1, 32]
        xk = jnp.concatenate([shift_up(x, kh) for kh in range(K1)], axis=1)
        a1 = jnp.maximum(
            jnp.dot(xk, m1_ref[...], preferred_element_type=f32) + b1_ref[...],
            0.0)                                                   # [rows1, 168]

        # ---------------- maxpool 2x2 #1 ------------------------------------
        # columns: two exact 0/1 selection matmuls; rows + row-compaction:
        # stride-2 sublane reads of a VMEM scratch (32 -> 16 rows/image).
        a1c = jnp.maximum(jnp.dot(a1, s1a_ref[...], preferred_element_type=f32),
                          jnp.dot(a1, s1b_ref[...], preferred_element_type=f32))
        s1[...] = a1c                                              # [rows1, 84]
        p1 = jnp.maximum(s1[pl.ds(0, rows2, stride=2), :],
                         s1[pl.ds(1, rows2, stride=2), :])         # [rows2, 84]

        # ---------------- conv2 (5x5 VALID) + bias + ReLU --------------------
        p1k = jnp.concatenate([shift_up(p1, kh) for kh in range(K2)], axis=1)
        a2 = jnp.maximum(
            jnp.dot(p1k, m2_ref[...], preferred_element_type=f32) + b2_ref[...],
            0.0)                                                   # [rows2, 160]

        # ---------------- maxpool 2x2 #2 + fc (bias=False) -------------------
        a2c = jnp.maximum(jnp.dot(a2, s2a_ref[...], preferred_element_type=f32),
                          jnp.dot(a2, s2b_ref[...], preferred_element_type=f32))
        s2[...] = a2c                                              # [rows2, 80]

        logits = jnp.zeros((b_tile, n_cls_pad), f32)
        for ph in range(W2_POOL):
            # pool2 row-max + per-image row gather in one strided read pair:
            # row b of `row` is max over conv2 output rows {2ph, 2ph+1} of
            # image b (stride = 16 rows per image).
            row = jnp.maximum(
                s2[pl.ds(2 * ph,     b_tile, stride=H_IN // 2), :],
                s2[pl.ds(2 * ph + 1, b_tile, stride=H_IN // 2), :])  # [b_tile, 80]
            logits = logits + jnp.dot(row, wfc_ref[ph],
                                      preferred_element_type=f32)
        o_ref[...] = logits                                        # [b_tile, 128]

    return kernel


# ----------------------------------------------------------------------------
# Wrapper-side constant folding of the weights (tiny, pure JAX, jit-foldable).
# ----------------------------------------------------------------------------
def _band_matrices(w, w_in):
    """Fold conv weights [OC, IC, KH, KW] into KH banded matmul matrices.

    Returns M of shape [KH, IC*w_in, OC*ow] (ow = w_in - KW + 1) such that
    summing (activations row-shifted by kh) @ M[kh] over kh gives the VALID
    cross-correlation with output columns laid out as (oc, ow)."""
    oc, ic, KH, KW = w.shape
    ow = w_in - KW + 1
    diff = jnp.arange(w_in)[:, None] - jnp.arange(ow)[None, :]   # = kw if in band
    mask = ((diff >= 0) & (diff < KW)).astype(w.dtype)
    kidx = jnp.clip(diff, 0, KW - 1)
    vals = w[:, :, :, kidx] * mask[None, None, None]             # [OC, IC, KH, w_in, ow]
    vals = jnp.transpose(vals, (2, 1, 3, 0, 4))                  # [KH, IC, w_in, OC, ow]
    return vals.reshape(KH, ic * w_in, oc * ow)


def _pool_selectors(c, w):
    """0/1 matrices selecting even/odd columns within each channel block."""
    pw = w // 2
    col = jnp.arange(c * w)
    out = jnp.arange(c * pw)
    cc, xc = col // w, col % w
    co, po = out // pw, out % pw
    same = cc[:, None] == co[None, :]
    sa = (same & (xc[:, None] == 2 * po[None, :])).astype(jnp.float32)
    sb = (same & (xc[:, None] == 2 * po[None, :] + 1)).astype(jnp.float32)
    return sa, sb


# ----------------------------------------------------------------------------
# SimpleConv forward
# ----------------------------------------------------------------------------
def simple_conv_forward(x, params):
    """x: [N, 1, 32, 32] (NCHW, float32) -> logits [N, n_classes]."""
    n = x.shape[0]
    assert x.shape[1:] == (1, H_IN, W_IN), x.shape
    n_classes = params["wfc"].shape[0]
    n_cls_pad = _round_up(n_classes, LANES)

    b_tile = _choose_tile(n)
    rows1 = b_tile * H_IN
    rows2 = b_tile * (H_IN // 2)
    n_pad = _round_up(n, b_tile)

    # Weight-derived constants (built once per call; folded under jit).
    m1s = _band_matrices(params["w1"], W_IN).reshape(K1 * 1 * W_IN, C1 * W1_OUT)       # [160, 168]
    m2s = _band_matrices(params["w2"], W1_POOL).reshape(K2 * C1 * W1_POOL, C2 * W2_OUT)  # [420, 160]
    b1r = jnp.repeat(params["b1"], W1_OUT)[None, :]               # [1, 168]
    b2r = jnp.repeat(params["b2"], W2_OUT)[None, :]               # [1, 160]
    s1a, s1b = _pool_selectors(C1, W1_OUT)                        # [168, 84]
    s2a, s2b = _pool_selectors(C2, W2_OUT)                        # [160, 80]
    wfc5 = jnp.transpose(
        params["wfc"].reshape(n_classes, C2, W2_POOL, W2_POOL),
        (2, 1, 3, 0)).reshape(W2_POOL, C2 * W2_POOL, n_classes)   # [5, 80, ncls]
    wfc5p = jnp.zeros((W2_POOL, C2 * W2_POOL, n_cls_pad),
                      jnp.float32).at[:, :, :n_classes].set(wfc5)  # lane-dense [5,80,128]

    # [N,1,32,32] -> [N*32, 32] row slab (free reshape, no transpose).
    x_rows = x.astype(jnp.float32).reshape(n, H_IN, W_IN)
    if n_pad != n:
        x_rows = jnp.concatenate(
            [x_rows, jnp.zeros((n_pad - n, H_IN, W_IN), jnp.float32)], axis=0)
    x_rows = x_rows.reshape(n_pad * H_IN, W_IN)

    full = lambda a: pl.BlockSpec(a.shape, lambda i: (0,) * a.ndim)
    kernel = _make_kernel(b_tile, n_cls_pad)

    out = pl.pallas_call(
        kernel,
        out_shape=jax.ShapeDtypeStruct((n_pad, n_cls_pad), jnp.float32),
        grid_spec=pltpu.PrefetchScalarGridSpec(
            num_scalar_prefetch=0,
            grid=(n_pad // b_tile,),
            in_specs=[
                pl.BlockSpec((rows1, W_IN), lambda i: (i, 0)),     # batch-tile row slab
                full(m1s), full(b1r), full(s1a), full(s1b),
                full(m2s), full(b2r), full(s2a), full(s2b),
                full(wfc5p),
            ],
            out_specs=pl.BlockSpec((b_tile, n_cls_pad), lambda i: (i, 0)),
            scratch_shapes=[
                pltpu.VMEM((rows1, C1 * W1_POOL), jnp.float32),    # pool1 col-max slab
                pltpu.VMEM((rows2, C2 * W2_POOL), jnp.float32),    # pool2 col-max slab
            ],
        ),
        compiler_params=pltpu.CompilerParams(
            dimension_semantics=("parallel",),       # batch tiles shard across TCs (v7x)
            vmem_limit_bytes=32 * 1024 * 1024,       # v5e default is 16 MiB; raise it
        ),
    )(x_rows, m1s, b1r, s1a, s1b, m2s, b2r, s2a, s2b, wfc5p)
    return out[:n, :n_classes]


# ----------------------------------------------------------------------------
# Params + pure-JAX reference (sanity check only)
# ----------------------------------------------------------------------------
def init_params(key, n_classes):
    k1, k2, k3, k4, k5 = jax.random.split(key, 5)
    return {
        "w1": jax.random.uniform(k1, (C1, 1, K1, K1), jnp.float32, -0.2, 0.2),
        "b1": jax.random.uniform(k2, (C1,), jnp.float32, -0.2, 0.2),
        "w2": jax.random.uniform(k3, (C2, C1, K2, K2), jnp.float32, -0.08, 0.08),
        "b2": jax.random.uniform(k4, (C2,), jnp.float32, -0.08, 0.08),
        "wfc": jax.random.uniform(k5, (n_classes, FEAT), jnp.float32, -0.05, 0.05),
    }


def _reference_forward(x, params):
    prec = lax.Precision.HIGHEST

    def conv(x, w, b):
        y = lax.conv_general_dilated(x, w, (1, 1), "VALID",
                                     dimension_numbers=("NCHW", "OIHW", "NCHW"),
                                     precision=prec)
        return jnp.maximum(y + b[None, :, None, None], 0.0)

    def pool(x):
        return lax.reduce_window(x, -jnp.inf, lax.max,
                                 (1, 1, 2, 2), (1, 1, 2, 2), "VALID")

    x = pool(conv(x, params["w1"], params["b1"]))
    x = pool(conv(x, params["w2"], params["b2"]))
    x = x.reshape(-1, FEAT)
    return jnp.dot(x, params["wfc"].T, precision=prec)


if __name__ == "__main__":
    key = jax.random.PRNGKey(0)
    kx, kp = jax.random.split(key)

    n_classes = 10
    batch = 2
    # Input shape implied by fc1 = Linear(16*5*5, ...): 1x32x32 images.
    x = jax.random.normal(kx, (batch, 1, 32, 32), jnp.float32)
    params = init_params(kp, n_classes)

    fwd = jax.jit(simple_conv_forward)
    out = jax.block_until_ready(fwd(x, params))

    ref = _reference_forward(x, params)
    assert out.shape == (batch, n_classes)
    assert bool(jnp.allclose(out, ref, atol=2e-3, rtol=2e-3)), "mismatch vs reference"

    print("KERNEL_OK")
</pallas_src>

<mosaic_0001>
module attributes {stable_mosaic.version = 11 : i64} {
  func.func @kernel(%arg0: i32, %arg1: memref<256x32xf32, #tpu.memory_space<vmem>>, %arg2: memref<160x168xf32, #tpu.memory_space<vmem>>, %arg3: memref<1x168xf32, #tpu.memory_space<vmem>>, %arg4: memref<168x84xf32, #tpu.memory_space<vmem>>, %arg5: memref<168x84xf32, #tpu.memory_space<vmem>>, %arg6: memref<420x160xf32, #tpu.memory_space<vmem>>, %arg7: memref<1x160xf32, #tpu.memory_space<vmem>>, %arg8: memref<160x80xf32, #tpu.memory_space<vmem>>, %arg9: memref<160x80xf32, #tpu.memory_space<vmem>>, %arg10: memref<5x80x128xf32, #tpu.memory_space<vmem>>, %arg11: memref<8x128xf32, #tpu.memory_space<vmem>>, %arg12: memref<256x84xf32, #tpu.memory_space<vmem>>, %arg13: memref<128x80xf32, #tpu.memory_space<vmem>>) attributes {dimension_semantics = [#tpu.dimension_semantics<parallel>], iteration_bounds = array<i64: 1>, scalar_prefetch = 0 : i64, scratch_operands = 2 : i64, tpu.core_type = #tpu.core_type<tc>, window_params = [{transform_indices = @transform_0, window_bounds = array<i64: 256, 32>}, {pipeline_mode = #tpu.pipeline_mode<synchronous>, transform_indices = @transform_1, window_bounds = array<i64: 160, 168>}, {pipeline_mode = #tpu.pipeline_mode<synchronous>, transform_indices = @transform_2, window_bounds = array<i64: 1, 168>}, {pipeline_mode = #tpu.pipeline_mode<synchronous>, transform_indices = @transform_3, window_bounds = array<i64: 168, 84>}, {pipeline_mode = #tpu.pipeline_mode<synchronous>, transform_indices = @transform_4, window_bounds = array<i64: 168, 84>}, {pipeline_mode = #tpu.pipeline_mode<synchronous>, transform_indices = @transform_5, window_bounds = array<i64: 420, 160>}, {pipeline_mode = #tpu.pipeline_mode<synchronous>, transform_indices = @transform_6, window_bounds = array<i64: 1, 160>}, {pipeline_mode = #tpu.pipeline_mode<synchronous>, transform_indices = @transform_7, window_bounds = array<i64: 160, 80>}, {pipeline_mode = #tpu.pipeline_mode<synchronous>, transform_indices = @transform_8, window_bounds = array<i64: 160, 80>}, {pipeline_mode = #tpu.pipeline_mode<synchronous>, transform_indices = @transform_9, window_bounds = array<i64: 5, 80, 128>}, {transform_indices = @transform_10, window_bounds = array<i64: 8, 128>}]} {
    %c0 = arith.constant 0 : index
    %c0_0 = arith.constant 0 : index
    %0 = vector.load %arg1[%c0, %c0_0] : memref<256x32xf32, #tpu.memory_space<vmem>>, vector<256x32xf32>
    %1 = vector.extract_strided_slice %0 {offsets = [1, 0], sizes = [255, 32], strides = [1, 1]} : vector<256x32xf32> to vector<255x32xf32>
    %2 = vector.extract_strided_slice %0 {offsets = [0, 0], sizes = [1, 32], strides = [1, 1]} : vector<256x32xf32> to vector<1x32xf32>
    %3 = tpu.concatenate %1, %2 in 0 : vector<255x32xf32>, vector<1x32xf32> -> vector<256x32xf32>
    %4 = vector.extract_strided_slice %0 {offsets = [2, 0], sizes = [254, 32], strides = [1, 1]} : vector<256x32xf32> to vector<254x32xf32>
    %5 = vector.extract_strided_slice %0 {offsets = [0, 0], sizes = [2, 32], strides = [1, 1]} : vector<256x32xf32> to vector<2x32xf32>
    %6 = tpu.concatenate %4, %5 in 0 : vector<254x32xf32>, vector<2x32xf32> -> vector<256x32xf32>
    %7 = vector.extract_strided_slice %0 {offsets = [3, 0], sizes = [253, 32], strides = [1, 1]} : vector<256x32xf32> to vector<253x32xf32>
    %8 = vector.extract_strided_slice %0 {offsets = [0, 0], sizes = [3, 32], strides = [1, 1]} : vector<256x32xf32> to vector<3x32xf32>
    %9 = tpu.concatenate %7, %8 in 0 : vector<253x32xf32>, vector<3x32xf32> -> vector<256x32xf32>
    %10 = vector.extract_strided_slice %0 {offsets = [4, 0], sizes = [252, 32], strides = [1, 1]} : vector<256x32xf32> to vector<252x32xf32>
    %11 = vector.extract_strided_slice %0 {offsets = [0, 0], sizes = [4, 32], strides = [1, 1]} : vector<256x32xf32> to vector<4x32xf32>
    %12 = tpu.concatenate %10, %11 in 0 : vector<252x32xf32>, vector<4x32xf32> -> vector<256x32xf32>
    %13 = tpu.concatenate %0, %3, %6, %9, %12 in 1 : vector<256x32xf32>, vector<256x32xf32>, vector<256x32xf32>, vector<256x32xf32>, vector<256x32xf32> -> vector<256x160xf32>
    %c0_1 = arith.constant 0 : index
    %c0_2 = arith.constant 0 : index
    %14 = vector.load %arg2[%c0_1, %c0_2] : memref<160x168xf32, #tpu.memory_space<vmem>>, vector<160x168xf32>
    %cst = arith.constant dense<0.000000e+00> : vector<256x168xf32>
    %15 = tpu.matmul %13, %14, %cst {dimension_numbers = #tpu.dot_dimension_numbers<[1], [0], [0], [1], [0, 0, 1, 1], [], []>} : vector<256x160xf32>, vector<160x168xf32>, vector<256x168xf32> -> vector<256x168xf32>
    %c0_3 = arith.constant 0 : index
    %c0_4 = arith.constant 0 : index
    %16 = vector.load %arg3[%c0_3, %c0_4] : memref<1x168xf32, #tpu.memory_space<vmem>>, vector<1x168xf32>
    %17 = vector.broadcast %16 : vector<1x168xf32> to vector<256x168xf32>
    %18 = arith.addf %15, %17 : vector<256x168xf32>
    %cst_5 = arith.constant 0.000000e+00 : f32
    %19 = vector.broadcast %cst_5 : f32 to vector<256x168xf32>
    %20 = arith.maximumf %18, %19 : vector<256x168xf32>
    %c0_6 = arith.constant 0 : index
    %c0_7 = arith.constant 0 : index
    %21 = vector.load %arg4[%c0_6, %c0_7] : memref<168x84xf32, #tpu.memory_space<vmem>>, vector<168x84xf32>
    %cst_8 = arith.constant dense<0.000000e+00> : vector<256x84xf32>
    %22 = tpu.matmul %20, %21, %cst_8 {dimension_numbers = #tpu.dot_dimension_numbers<[1], [0], [0], [1], [0, 0, 1, 1], [], []>} : vector<256x168xf32>, vector<168x84xf32>, vector<256x84xf32> -> vector<256x84xf32>
    %c0_9 = arith.constant 0 : index
    %c0_10 = arith.constant 0 : index
    %23 = vector.load %arg5[%c0_9, %c0_10] : memref<168x84xf32, #tpu.memory_space<vmem>>, vector<168x84xf32>
    %cst_11 = arith.constant dense<0.000000e+00> : vector<256x84xf32>
    %24 = tpu.matmul %20, %23, %cst_11 {dimension_numbers = #tpu.dot_dimension_numbers<[1], [0], [0], [1], [0, 0, 1, 1], [], []>} : vector<256x168xf32>, vector<168x84xf32>, vector<256x84xf32> -> vector<256x84xf32>
    %25 = arith.maximumf %22, %24 : vector<256x84xf32>
    %c0_12 = arith.constant 0 : index
    %c0_13 = arith.constant 0 : index
    %26 = vector.load %arg12[%c0_12, %c0_13] : memref<256x84xf32, #tpu.memory_space<vmem>>, vector<256x84xf32>
    tpu.vector_store %arg12[%c0_12, %c0_13], %25 {strides = array<i32>} : memref<256x84xf32, #tpu.memory_space<vmem>>, vector<256x84xf32>,
    %c0_14 = arith.constant 0 : index
    %c0_15 = arith.constant 0 : index
    %27 = tpu.strided_load %arg12[%c0_14, %c0_15] {strides = array<i32: 2, 1>} : memref<256x84xf32, #tpu.memory_space<vmem>>, vector<128x84xf32>
    %c1 = arith.constant 1 : index
    %c0_16 = arith.constant 0 : index
    %28 = tpu.strided_load %arg12[%c1, %c0_16] {strides = array<i32: 2, 1>} : memref<256x84xf32, #tpu.memory_space<vmem>>, vector<128x84xf32>
    %29 = arith.maximumf %27, %28 : vector<128x84xf32>
    %30 = vector.extract_strided_slice %29 {offsets = [1, 0], sizes = [127, 84], strides = [1, 1]} : vector<128x84xf32> to vector<127x84xf32>
    %31 = vector.extract_strided_slice %29 {offsets = [0, 0], sizes = [1, 84], strides = [1, 1]} : vector<128x84xf32> to vector<1x84xf32>
    %32 = tpu.concatenate %30, %31 in 0 : vector<127x84xf32>, vector<1x84xf32> -> vector<128x84xf32>
    %33 = vector.extract_strided_slice %29 {offsets = [2, 0], sizes = [126, 84], strides = [1, 1]} : vector<128x84xf32> to vector<126x84xf32>
    %34 = vector.extract_strided_slice %29 {offsets = [0, 0], sizes = [2, 84], strides = [1, 1]} : vector<128x84xf32> to vector<2x84xf32>
    %35 = tpu.concatenate %33, %34 in 0 : vector<126x84xf32>, vector<2x84xf32> -> vector<128x84xf32>
    %36 = vector.extract_strided_slice %29 {offsets = [3, 0], sizes = [125, 84], strides = [1, 1]} : vector<128x84xf32> to vector<125x84xf32>
    %37 = vector.extract_strided_slice %29 {offsets = [0, 0], sizes = [3, 84], strides = [1, 1]} : vector<128x84xf32> to vector<3x84xf32>
    %38 = tpu.concatenate %36, %37 in 0 : vector<125x84xf32>, vector<3x84xf32> -> vector<128x84xf32>
    %39 = vector.extract_strided_slice %29 {offsets = [4, 0], sizes = [124, 84], strides = [1, 1]} : vector<128x84xf32> to vector<124x84xf32>
    %40 = vector.extract_strided_slice %29 {offsets = [0, 0], sizes = [4, 84], strides = [1, 1]} : vector<128x84xf32> to vector<4x84xf32>
    %41 = tpu.concatenate %39, %40 in 0 : vector<124x84xf32>, vector<4x84xf32> -> vector<128x84xf32>
    %42 = tpu.concatenate %29, %32, %35, %38, %41 in 1 : vector<128x84xf32>, vector<128x84xf32>, vector<128x84xf32>, vector<128x84xf32>, vector<128x84xf32> -> vector<128x420xf32>
    %c0_17 = arith.constant 0 : index
    %c0_18 = arith.constant 0 : index
    %43 = vector.load %arg6[%c0_17, %c0_18] : memref<420x160xf32, #tpu.memory_space<vmem>>, vector<420x160xf32>
    %cst_19 = arith.constant dense<0.000000e+00> : vector<128x160xf32>
    %44 = tpu.matmul %42, %43, %cst_19 {dimension_numbers = #tpu.dot_dimension_numbers<[1], [0], [0], [1], [0, 0, 1, 1], [], []>} : vector<128x420xf32>, vector<420x160xf32>, vector<128x160xf32> -> vector<128x160xf32>
    %c0_20 = arith.constant 0 : index
    %c0_21 = arith.constant 0 : index
    %45 = vector.load %arg7[%c0_20, %c0_21] : memref<1x160xf32, #tpu.memory_space<vmem>>, vector<1x160xf32>
    %46 = vector.broadcast %45 : vector<1x160xf32> to vector<128x160xf32>
    %47 = arith.addf %44, %46 : vector<128x160xf32>
    %cst_22 = arith.constant 0.000000e+00 : f32
    %48 = vector.broadcast %cst_22 : f32 to vector<128x160xf32>
    %49 = arith.maximumf %47, %48 : vector<128x160xf32>
    %c0_23 = arith.constant 0 : index
    %c0_24 = arith.constant 0 : index
    %50 = vector.load %arg8[%c0_23, %c0_24] : memref<160x80xf32, #tpu.memory_space<vmem>>, vector<160x80xf32>
    %cst_25 = arith.constant dense<0.000000e+00> : vector<128x80xf32>
    %51 = tpu.matmul %49, %50, %cst_25 {dimension_numbers = #tpu.dot_dimension_numbers<[1], [0], [0], [1], [0, 0, 1, 1], [], []>} : vector<128x160xf32>, vector<160x80xf32>, vector<128x80xf32> -> vector<128x80xf32>
    %c0_26 = arith.constant 0 : index
    %c0_27 = arith.constant 0 : index
    %52 = vector.load %arg9[%c0_26, %c0_27] : memref<160x80xf32, #tpu.memory_space<vmem>>, vector<160x80xf32>
    %cst_28 = arith.constant dense<0.000000e+00> : vector<128x80xf32>
    %53 = tpu.matmul %49, %52, %cst_28 {dimension_numbers = #tpu.dot_dimension_numbers<[1], [0], [0], [1], [0, 0, 1, 1], [], []>} : vector<128x160xf32>, vector<160x80xf32>, vector<128x80xf32> -> vector<128x80xf32>
    %54 = arith.maximumf %51, %53 : vector<128x80xf32>
    %c0_29 = arith.constant 0 : index
    %c0_30 = arith.constant 0 : index
    %55 = vector.load %arg13[%c0_29, %c0_30] : memref<128x80xf32, #tpu.memory_space<vmem>>, vector<128x80xf32>
    tpu.vector_store %arg13[%c0_29, %c0_30], %54 {strides = array<i32>} : memref<128x80xf32, #tpu.memory_space<vmem>>, vector<128x80xf32>,
    %cst_31 = arith.constant 0.000000e+00 : f32
    %56 = vector.broadcast %cst_31 : f32 to vector<8x128xf32>
    %c0_32 = arith.constant 0 : index
    %c0_33 = arith.constant 0 : index
    %57 = tpu.strided_load %arg13[%c0_32, %c0_33] {strides = array<i32: 16, 1>} : memref<128x80xf32, #tpu.memory_space<vmem>>, vector<8x80xf32>
    %c1_34 = arith.constant 1 : index
    %c0_35 = arith.constant 0 : index
    %58 = tpu.strided_load %arg13[%c1_34, %c0_35] {strides = array<i32: 16, 1>} : memref<128x80xf32, #tpu.memory_space<vmem>>, vector<8x80xf32>
    %59 = arith.maximumf %57, %58 : vector<8x80xf32>
    %c0_36 = arith.constant 0 : index
    %c0_37 = arith.constant 0 : index
    %c0_38 = arith.constant 0 : index
    %60 = vector.load %arg10[%c0_36, %c0_37, %c0_38] : memref<5x80x128xf32, #tpu.memory_space<vmem>>, vector<1x80x128xf32>
    %61 = vector.shape_cast %60 : vector<1x80x128xf32> to vector<80x128xf32>
    %cst_39 = arith.constant dense<0.000000e+00> : vector<8x128xf32>
    %62 = tpu.matmul %59, %61, %cst_39 {dimension_numbers = #tpu.dot_dimension_numbers<[1], [0], [0], [1], [0, 0, 1, 1], [], []>} : vector<8x80xf32>, vector<80x128xf32>, vector<8x128xf32> -> vector<8x128xf32>
    %63 = arith.addf %56, %62 : vector<8x128xf32>
    %c2 = arith.constant 2 : index
    %c0_40 = arith.constant 0 : index
    %64 = tpu.strided_load %arg13[%c2, %c0_40] {strides = array<i32: 16, 1>} : memref<128x80xf32, #tpu.memory_space<vmem>>, vector<8x80xf32>
    %c3 = arith.constant 3 : index
    %c0_41 = arith.constant 0 : index
    %65 = tpu.strided_load %arg13[%c3, %c0_41] {strides = array<i32: 16, 1>} : memref<128x80xf32, #tpu.memory_space<vmem>>, vector<8x80xf32>
    %66 = arith.maximumf %64, %65 : vector<8x80xf32>
    %c1_42 = arith.constant 1 : index
    %c0_43 = arith.constant 0 : index
    %c0_44 = arith.constant 0 : index
    %67 = vector.load %arg10[%c1_42, %c0_43, %c0_44] : memref<5x80x128xf32, #tpu.memory_space<vmem>>, vector<1x80x128xf32>
    %68 = vector.shape_cast %67 : vector<1x80x128xf32> to vector<80x128xf32>
    %cst_45 = arith.constant dense<0.000000e+00> : vector<8x128xf32>
    %69 = tpu.matmul %66, %68, %cst_45 {dimension_numbers = #tpu.dot_dimension_numbers<[1], [0], [0], [1], [0, 0, 1, 1], [], []>} : vector<8x80xf32>, vector<80x128xf32>, vector<8x128xf32> -> vector<8x128xf32>
    %70 = arith.addf %63, %69 : vector<8x128xf32>
    %c4 = arith.constant 4 : index
    %c0_46 = arith.constant 0 : index
    %71 = tpu.strided_load %arg13[%c4, %c0_46] {strides = array<i32: 16, 1>} : memref<128x80xf32, #tpu.memory_space<vmem>>, vector<8x80xf32>
    %c5 = arith.constant 5 : index
    %c0_47 = arith.constant 0 : index
    %72 = tpu.strided_load %arg13[%c5, %c0_47] {strides = array<i32: 16, 1>} : memref<128x80xf32, #tpu.memory_space<vmem>>, vector<8x80xf32>
    %73 = arith.maximumf %71, %72 : vector<8x80xf32>
    %c2_48 = arith.constant 2 : index
    %c0_49 = arith.constant 0 : index
    %c0_50 = arith.constant 0 : index
    %74 = vector.load %arg10[%c2_48, %c0_49, %c0_50] : memref<5x80x128xf32, #tpu.memory_space<vmem>>, vector<1x80x128xf32>
    %75 = vector.shape_cast %74 : vector<1x80x128xf32> to vector<80x128xf32>
    %cst_51 = arith.constant dense<0.000000e+00> : vector<8x128xf32>
    %76 = tpu.matmul %73, %75, %cst_51 {dimension_numbers = #tpu.dot_dimension_numbers<[1], [0], [0], [1], [0, 0, 1, 1], [], []>} : vector<8x80xf32>, vector<80x128xf32>, vector<8x128xf32> -> vector<8x128xf32>
    %77 = arith.addf %70, %76 : vector<8x128xf32>
    %c6 = arith.constant 6 : index
    %c0_52 = arith.constant 0 : index
    %78 = tpu.strided_load %arg13[%c6, %c0_52] {strides = array<i32: 16, 1>} : memref<128x80xf32, #tpu.memory_space<vmem>>, vector<8x80xf32>
    %c7 = arith.constant 7 : index
    %c0_53 = arith.constant 0 : index
    %79 = tpu.strided_load %arg13[%c7, %c0_53] {strides = array<i32: 16, 1>} : memref<128x80xf32, #tpu.memory_space<vmem>>, vector<8x80xf32>
    %80 = arith.maximumf %78, %79 : vector<8x80xf32>
    %c3_54 = arith.constant 3 : index
    %c0_55 = arith.constant 0 : index
    %c0_56 = arith.constant 0 : index
    %81 = vector.load %arg10[%c3_54, %c0_55, %c0_56] : memref<5x80x128xf32, #tpu.memory_space<vmem>>, vector<1x80x128xf32>
    %82 = vector.shape_cast %81 : vector<1x80x128xf32> to vector<80x128xf32>
    %cst_57 = arith.constant dense<0.000000e+00> : vector<8x128xf32>
    %83 = tpu.matmul %80, %82, %cst_57 {dimension_numbers = #tpu.dot_dimension_numbers<[1], [0], [0], [1], [0, 0, 1, 1], [], []>} : vector<8x80xf32>, vector<80x128xf32>, vector<8x128xf32> -> vector<8x128xf32>
    %84 = arith.addf %77, %83 : vector<8x128xf32>
    %c8 = arith.constant 8 : index
    %c0_58 = arith.constant 0 : index
    %85 = tpu.strided_load %arg13[%c8, %c0_58] {strides = array<i32: 16, 1>} : memref<128x80xf32, #tpu.memory_space<vmem>>, vector<8x80xf32>
    %c9 = arith.constant 9 : index
    %c0_59 = arith.constant 0 : index
    %86 = tpu.strided_load %arg13[%c9, %c0_59] {strides = array<i32: 16, 1>} : memref<128x80xf32, #tpu.memory_space<vmem>>, vector<8x80xf32>
    %87 = arith.maximumf %85, %86 : vector<8x80xf32>
    %c4_60 = arith.constant 4 : index
    %c0_61 = arith.constant 0 : index
    %c0_62 = arith.constant 0 : index
    %88 = vector.load %arg10[%c4_60, %c0_61, %c0_62] : memref<5x80x128xf32, #tpu.memory_space<vmem>>, vector<1x80x128xf32>
    %89 = vector.shape_cast %88 : vector<1x80x128xf32> to vector<80x128xf32>
    %cst_63 = arith.constant dense<0.000000e+00> : vector<8x128xf32>
    %90 = tpu.matmul %87, %89, %cst_63 {dimension_numbers = #tpu.dot_dimension_numbers<[1], [0], [0], [1], [0, 0, 1, 1], [], []>} : vector<8x80xf32>, vector<80x128xf32>, vector<8x128xf32> -> vector<8x128xf32>
    %91 = arith.addf %84, %90 : vector<8x128xf32>
    %c0_64 = arith.constant 0 : index
    %c0_65 = arith.constant 0 : index
    %92 = vector.load %arg11[%c0_64, %c0_65] : memref<8x128xf32, #tpu.memory_space<vmem>>, vector<8x128xf32>
    tpu.vector_store %arg11[%c0_64, %c0_65], %91 {strides = array<i32>} : memref<8x128xf32, #tpu.memory_space<vmem>>, vector<8x128xf32>,
    return
  }
  func.func @transform_0(%arg0: i32) -> (i32, i32) {
    %c0_i32 = arith.constant 0 : i32
    %c0_i32_0 = arith.constant 0 : i32
    return %arg0, %c0_i32 : i32, i32
  }
  func.func @transform_1(%arg0: i32) -> (i32, i32) {
    %c0_i32 = arith.constant 0 : i32
    %c0_i32_0 = arith.constant 0 : i32
    %c0_i32_1 = arith.constant 0 : i32
    return %c0_i32, %c0_i32_0 : i32, i32
  }
  func.func @transform_2(%arg0: i32) -> (i32, i32) {
    %c0_i32 = arith.constant 0 : i32
    %c0_i32_0 = arith.constant 0 : i32
    %c0_i32_1 = arith.constant 0 : i32
    return %c0_i32, %c0_i32_0 : i32, i32
  }
  func.func @transform_3(%arg0: i32) -> (i32, i32) {
    %c0_i32 = arith.constant 0 : i32
    %c0_i32_0 = arith.constant 0 : i32
    %c0_i32_1 = arith.constant 0 : i32
    return %c0_i32, %c0_i32_0 : i32, i32
  }
  func.func @transform_4(%arg0: i32) -> (i32, i32) {
    %c0_i32 = arith.constant 0 : i32
    %c0_i32_0 = arith.constant 0 : i32
    %c0_i32_1 = arith.constant 0 : i32
    return %c0_i32, %c0_i32_0 : i32, i32
  }
  func.func @transform_5(%arg0: i32) -> (i32, i32) {
    %c0_i32 = arith.constant 0 : i32
    %c0_i32_0 = arith.constant 0 : i32
    %c0_i32_1 = arith.constant 0 : i32
    return %c0_i32, %c0_i32_0 : i32, i32
  }
  func.func @transform_6(%arg0: i32) -> (i32, i32) {
    %c0_i32 = arith.constant 0 : i32
    %c0_i32_0 = arith.constant 0 : i32
    %c0_i32_1 = arith.constant 0 : i32
    return %c0_i32, %c0_i32_0 : i32, i32
  }
  func.func @transform_7(%arg0: i32) -> (i32, i32) {
    %c0_i32 = arith.constant 0 : i32
    %c0_i32_0 = arith.constant 0 : i32
    %c0_i32_1 = arith.constant 0 : i32
    return %c0_i32, %c0_i32_0 : i32, i32
  }
  func.func @transform_8(%arg0: i32) -> (i32, i32) {
    %c0_i32 = arith.constant 0 : i32
    %c0_i32_0 = arith.constant 0 : i32
    %c0_i32_1 = arith.constant 0 : i32
    return %c0_i32, %c0_i32_0 : i32, i32
  }
  func.func @transform_9(%arg0: i32) -> (i32, i32, i32) {
    %c0_i32 = arith.constant 0 : i32
    %c0_i32_0 = arith.constant 0 : i32
    %c0_i32_1 = arith.constant 0 : i32
    %c0_i32_2 = arith.constant 0 : i32
    return %c0_i32, %c0_i32_0, %c0_i32_1 : i32, i32, i32
  }
  func.func @transform_10(%arg0: i32) -> (i32, i32) {
    %c0_i32 = arith.constant 0 : i32
    %c0_i32_0 = arith.constant 0 : i32
    return %arg0, %c0_i32 : i32, i32
  }
}

</mosaic_0001>

<bundles_post_ra>
// kernel: simple_conv_forward.1
= control target key start
LH: loop header
LB: loop body
LE: loop exit
PB: predicated region body
PF: predicated region fallthrough
CT: control target
= control target key end

     0   :  { %vm99_vm0 = vcmask 1046528   ;;  %vm233_vm1 = vcmask 1044480   ;;  %vm166_vm2 = vcmask 1045504   ;;  %s4926_s27 = smov 32   ;;  %s4927_s28 = smov 96   ;;  %vm300_vm3 = vcmask 1043456   ;;  %s7411_s0 = inlined_call_operand.vmem [shape: f32[256,32], index: 0, kind: input, shape index: {}]   ;;  %s7412_s1 = inlined_call_operand.vmem [shape: f32[160,168], index: 1, kind: input, shape index: {}]   ;;  %s7413_s4 = inlined_call_operand.vmem [shape: f32[168,84], index: 4, kind: input, shape index: {}]   ;;  %s7414_s3 = inlined_call_operand.vmem [shape: f32[168,84], index: 3, kind: input, shape index: {}]   ;;  %s7415_s2 = inlined_call_operand.vmem [shape: f32[1,168], index: 2, kind: input, shape index: {}]   ;;  %s7416_s5 = inlined_call_operand.vmem [shape: f32[420,160], index: 5, kind: input, shape index: {}]   ;;  %s7417_s7 = inlined_call_operand.vmem [shape: f32[160,80], index: 7, kind: input, shape index: {}]   ;;  %s7418_s8 = inlined_call_operand.vmem [shape: f32[160,80], index: 8, kind: input, shape index: {}]   ;;  %s7419_s6 = inlined_call_operand.vmem [shape: f32[1,160], index: 6, kind: input, shape index: {}]   ;;  %s7420_s9 = inlined_call_operand.vmem [shape: f32[5,80,128], index: 9, kind: input, shape index: {}]   ;;  %s7421_s10 = inlined_call_operand.vmem [shape: f32[8,128], index: 10, kind: output, shape index: {}]  }
   0x1   :  { %v4994_v0 = vld [vmem:[%s7411_s0] sm:$0xff]  ;;  %v4999_v1 = vld [vmem:[%s7411_s0 + $0x8] sm:$0xff]  ;;  %v5004_v2 = vld [vmem:[%s7411_s0 + $0x10] sm:$0xff]  ;;  %s4928_s13 = smov 64   ;;  %vm658_vm4 = vcmask 261120   ;;  %vm691_vm5 = vcmask 523264  }
   0x2   :  { %v100_v3 = vrot.slane %v4994_v0, 1  ;;  %v101_v4 = vrot.slane %v4999_v1, 1  ;;  %v103_v5 = vrot.slane %v5004_v2, 1  ;;  %v234_v6 = vrot.slane %v4994_v0, 3  ;;  %v5013_v7 = vld [vmem:[%s7411_s0 + $0x18] sm:$0xff]  ;;  %v5022_v12 = vld [vmem:[%s7411_s0 + $0x20] sm:$0xff] }
   0x3   :  { %v235_v8 = vrot.slane %v4999_v1, 3  ;;  %v237_v9 = vrot.slane %v5004_v2, 3  ;;  %v167_v10 = vrot.slane %v4994_v0, 2  ;;  %v168_v11 = vrot.slane %v4999_v1, 2  ;;  %v5040_v21 = vld [vmem:[%s7411_s0 + $0x28] sm:$0xff]  ;;  %v5045_v22 = vld [vmem:[%s7411_s0 + $0x30] sm:$0xff] }
   0x4   :  { %v102_v13 = vsel %vm99_vm0, %v100_v3, %v101_v4  ;;  %v104_v14 = vsel %vm99_vm0, %v101_v4, %v103_v5  ;;  %v170_v15 = vrot.slane %v5004_v2, 2  ;;  %v105_v16 = vrot.slane %v5013_v7, 1  ;;  %v5065_v39 = vld [vmem:[%s7411_s0 + $0x38] sm:$0xff]  ;;  %v5070_v40 = vld [vmem:[%s7411_s0 + $0x40] sm:$0xff]  ;;  %v5098_v4 = vld [vmem:[%s7411_s0 + $0x48] sm:$0xff]  ;;  %s4931_s24 = smov 40  }
   0x5   :  { %v4576_v17 = vpack.i.bf16 %v104_v14, %v102_v13  ;;  %v236_v18 = vsel %vm233_vm1, %v234_v6, %v235_v8  ;;  %v238_v19 = vsel %vm233_vm1, %v235_v8, %v237_v9  ;;  %v169_v20 = vsel %vm166_vm2, %v167_v10, %v168_v11  ;;  %s4932_s25 = smov 84   ;;  %s4933_s26 = smov 124  }
   0x6   :  { %v4586_v23 = vpack.i.bf16 %v238_v19, %v236_v18  ;;  %v171_v24 = vsel %vm166_vm2, %v168_v11, %v170_v15  ;;  %v106_v25 = vsel %vm99_vm0, %v103_v5, %v105_v16  ;;  %v107_v26 = vrot.slane %v5022_v12, 1  ;;  %v5103_v5 = vld [vmem:[%s7411_s0 + $0x50] sm:$0xff] }
   0x7   :  { %4577 = vrot.lane.b32.xlu0 %v4576_v17, %s4926_s27  ;;  %v4581_v27 = vpack.i.bf16 %v171_v24, %v169_v20  ;;  %v172_v28 = vrot.slane %v5013_v7, 2  ;;  %v174_v29 = vrot.slane %v5022_v12, 2  ;;  %v239_v30 = vrot.slane %v5013_v7, 3  ;;  %v5118_v20 = vld [vmem:[%s7411_s0 + $0x58] sm:$0xff] }
   0x8   :  { %4587 = vrot.lane.b32.xlu1 %v4586_v23, %s4927_s28  ;;  %v108_v31 = vsel %vm99_vm0, %v105_v16, %v107_v26  ;;  %v241_v32 = vrot.slane %v5022_v12, 3  ;;  %v109_v33 = vrot.slane %v5040_v21, 1  ;;  %v111_v34 = vrot.slane %v5045_v22, 1  ;;  %v47_v23 = vld [vmem:[%s7411_s0 + $0x60] sm:$0xff] }
   0x9   :  { %v4591_v35 = vpack.i.bf16 %v108_v31, %v106_v25  ;;  %v173_v36 = vsel %vm166_vm2, %v170_v15, %v172_v28  ;;  %v175_v37 = vsel %vm166_vm2, %v172_v28, %v174_v29  ;;  %v240_v38 = vsel %vm233_vm1, %v237_v9, %v239_v30 }
   0xa   :  { %v4596_v41 = vpack.i.bf16 %v175_v37, %v173_v36  ;;  %v242_v42 = vsel %vm233_vm1, %v239_v30, %v241_v32  ;;  %v110_v43 = vsel %vm99_vm0, %v107_v26, %v109_v33  ;;  %v112_v45 = vsel %vm99_vm0, %v109_v33, %v111_v34 }
   0xb   :  { %4582 = vrot.lane.b32.xlu0 %v4581_v27, %s4928_s13  ;;  %v4601_v44 = vpack.i.bf16 %v242_v42, %v240_v38  ;;  %v176_v46 = vrot.slane %v5040_v21, 2  ;;  %v178_v47 = vrot.slane %v5045_v22, 2  ;;  %v243_v48 = vrot.slane %v5040_v21, 3  ;;  %v48_v42 = vld [vmem:[%s7411_s0 + $0x68] sm:$0xff] }
   0xc   :  { %4592 = vrot.lane.b32.xlu1 %v4591_v35, %s4926_s27  ;;  %v245_v49 = vrot.slane %v5045_v22, 3  ;;  %v113_v50 = vrot.slane %v5065_v39, 1  ;;  %v115_v51 = vrot.slane %v5070_v40, 1  ;;  %v4606_v54 = vpack.i.bf16 %v112_v45, %v110_v43 }
   0xd   :  { %v177_v52 = vsel %vm166_vm2, %v174_v29, %v176_v46  ;;  %v179_v53 = vsel %vm166_vm2, %v176_v46, %v178_v47  ;;  %v180_v55 = vrot.slane %v5065_v39, 2  ;;  %v244_v57 = vsel %vm233_vm1, %v241_v32, %v243_v48 }
   0xe   :  { %v4611_v56 = vpack.i.bf16 %v179_v53, %v177_v52  ;;  %v246_v58 = vsel %vm233_vm1, %v243_v48, %v245_v49  ;;  %v182_v59 = vrot.slane %v5070_v40, 2  ;;  %v114_v60 = vsel %vm99_vm0, %v111_v34, %v113_v50 }
   0xf   :  { %4597 = vrot.lane.b32.xlu0 %v4596_v41, %s4928_s13  ;;  %v116_v61 = vsel %vm99_vm0, %v113_v50, %v115_v51  ;;  %v247_v62 = vrot.slane %v5065_v39, 3  ;;  %v249_v63 = vrot.slane %v5070_v40, 3  ;;  %v4616_v8 = vpack.i.bf16 %v246_v58, %v244_v57  ;;  %v50_v58 = vld [vmem:[%s7411_s0 + $0x78] sm:$0xff] }
  0x10   :  { %4602 = vrot.lane.b32.xlu1 %v4601_v44, %s4927_s28  ;;  %v181_v9 = vsel %vm166_vm2, %v178_v47, %v180_v55  ;;  %v4621_v11 = vpack.i.bf16 %v116_v61, %v114_v60  ;;  %v183_v13 = vsel %vm166_vm2, %v180_v55, %v182_v59  ;;  %v117_v14 = vrot.slane %v5098_v4, 1  ;;  %v49_v47 = vld [vmem:[%s7411_s0 + $0x70] sm:$0xff] }
  0x11   :  { %v119_v15 = vrot.slane %v5103_v5, 1  ;;  %v248_v16 = vsel %vm233_vm1, %v245_v49, %v247_v62  ;;  %v250_v17 = vsel %vm233_vm1, %v247_v62, %v249_v63  ;;  %v184_v18 = vrot.slane %v5098_v4, 2 }
  0x12   :  { %v186_v19 = vrot.slane %v5103_v5, 2  ;;  %v4626_v24 = vpack.i.bf16 %v183_v13, %v181_v9  ;;  %v251_v25 = vrot.slane %v5098_v4, 3  ;;  %v4631_v26 = vpack.i.bf16 %v250_v17, %v248_v16 }
  0x13   :  { %4607 = vrot.lane.b32.xlu0 %v4606_v54, %s4926_s27  ;;  %v118_v27 = vsel %vm99_vm0, %v115_v51, %v117_v14  ;;  %v120_v28 = vsel %vm99_vm0, %v117_v14, %v119_v15  ;;  %v253_v29 = vrot.slane %v5103_v5, 3  ;;  %v185_v30 = vsel %vm166_vm2, %v182_v59, %v184_v18  ;;  %v5158_v59 = vld [vmem:[%s7411_s0 + $0x80] sm:$0xff] }
  0x14   :  { %4612 = vrot.lane.b32.xlu1 %v4611_v56, %s4928_s13  ;;  %v187_v31 = vsel %vm166_vm2, %v184_v18, %v186_v19  ;;  %v121_v32 = vrot.slane %v5118_v20, 1  ;;  %v123_v33 = vrot.slane %v47_v23, 1  ;;  %v4636_v34 = vpack.i.bf16 %v120_v28, %v118_v27  ;;  %v758_v27 = vld [vmem:[%s7412_s1 + $0x8] sm:$0xff] }
  0x15   :  { %v252_v35 = vsel %vm233_vm1, %v249_v63, %v251_v25  ;;  %v4641_v36 = vpack.i.bf16 %v187_v31, %v185_v30  ;;  %v254_v37 = vsel %vm233_vm1, %v251_v25, %v253_v29  ;;  %v188_v38 = vrot.slane %v5118_v20, 2  ;;  %v52_v25 = vld [vmem:[%s7411_s0 + $0x88] sm:$0xff] }
  0x16   :  { %v190_v41 = vrot.slane %v47_v23, 2  ;;  %v122_v43 = vsel %vm99_vm0, %v119_v15, %v121_v32  ;;  %v124_v44 = vsel %vm99_vm0, %v121_v32, %v123_v33  ;;  %v255_v45 = vrot.slane %v5118_v20, 3  ;;  %v760_v32 = vld [vmem:[%s7412_s1 + $0x18] sm:$0xff] }
  0x17   :  { %4617 = vrot.lane.b32.xlu0 %v4616_v8, %s4927_s28  ;;  %v257_v46 = vrot.slane %v47_v23, 3  ;;  %v4646_v48 = vpack.i.bf16 %v254_v37, %v252_v35  ;;  %v125_v49 = vrot.slane %v48_v42, 1  ;;  %v4651_v50 = vpack.i.bf16 %v124_v44, %v122_v43 }
  0x18   :  { %4622 = vrot.lane.b32.xlu1 %v4621_v11, %s4926_s27  ;;  %v189_v51 = vsel %vm166_vm2, %v186_v19, %v188_v38  ;;  %v191_v52 = vsel %vm166_vm2, %v188_v38, %v190_v41  ;;  %v127_v53 = vrot.slane %v49_v47, 1  ;;  %v256_v54 = vsel %vm233_vm1, %v253_v29, %v255_v45 }
  0x19   :  { %v258_v55 = vsel %vm233_vm1, %v255_v45, %v257_v46  ;;  %v192_v56 = vrot.slane %v48_v42, 2  ;;  %v194_v57 = vrot.slane %v49_v47, 2  ;;  %v4656_v60 = vpack.i.bf16 %v191_v52, %v189_v51  ;;  %v762_v45 = vld [vmem:[%s7412_s1 + $0x28] sm:$0xff]  ;;  %v761_v51 = vld [vmem:[%s7412_s1 + $0x20] sm:$0xff]  ;;  %v763_v52 = vld [vmem:[%s7412_s1 + $0x30] sm:$0xff] }
  0x1a   :  { %v126_v61 = vsel %vm99_vm0, %v123_v33, %v125_v49  ;;  %v4661_v62 = vpack.i.bf16 %v258_v55, %v256_v54  ;;  %v128_v63 = vsel %vm99_vm0, %v125_v49, %v127_v53  ;;  %v259_v8 = vrot.slane %v48_v42, 3  ;;  %v757_v33 = vld [vmem:[%s7412_s1] sm:$0xff]  ;;  %v5218_v54 = vld [vmem:[%s7411_s0 + $0x98] sm:$0xff] }
  0x1b   :  { %4627 = vrot.lane.b32.xlu0 %v4626_v24, %s4928_s13  ;;  %v261_v9 = vrot.slane %v49_v47, 3  ;;  %v193_v11 = vsel %vm166_vm2, %v190_v41, %v192_v56  ;;  %v195_v13 = vsel %vm166_vm2, %v192_v56, %v194_v57  ;;  %v129_v14 = vrot.slane %v50_v58, 1  ;;  %v5223_v55 = vld [vmem:[%s7411_s0 + $0xa0] sm:$0xff] }
  0x1c   :  { %4632 = vrot.lane.b32.xlu1 %v4631_v26, %s4927_s28  ;;  %v131_v15 = vrot.slane %v5158_v59, 1  ;;  %v4666_v16 = vpack.i.bf16 %v128_v63, %v126_v61  ;;  %v196_v17 = vrot.slane %v50_v58, 2  ;;  %v4671_v18 = vpack.i.bf16 %v195_v13, %v193_v11  ;;  %v5177_v26 = vld [vmem:[%s7411_s0 + $0x90] sm:$0xff]  ;;  %v768_v61 = vld [vmem:[%s7412_s1 + $0x58] sm:$0xff] }
  0x1d   :  { %v260_v19 = vsel %vm233_vm1, %v257_v46, %v259_v8  ;;  %v262_v23 = vsel %vm233_vm1, %v259_v8, %v261_v9  ;;  %v198_v24 = vrot.slane %v5158_v59, 2  ;;  %v130_v28 = vsel %vm99_vm0, %v127_v53, %v129_v14  ;;  %v764_v46 = vld [vmem:[%s7412_s1 + $0x38] sm:$0xff]  ;;  %v767_v11 = vld [vmem:[%s7412_s1 + $0x50] sm:$0xff] }
  0x1e   :  { %v132_v29 = vsel %vm99_vm0, %v129_v14, %v131_v15  ;;  %v263_v30 = vrot.slane %v50_v58, 3  ;;  %v265_v31 = vrot.slane %v5158_v59, 3  ;;  %v4676_v35 = vpack.i.bf16 %v262_v23, %v260_v19 }
  0x1f   :  { %4637 = vrot.lane.b32.xlu0 %v4636_v34, %s4926_s27  ;;  %v759_v34 = vld [vmem:[%s7412_s1 + $0x10] sm:$0xff]  ;;  %v133_v37 = vrot.slane %v52_v25, 1  ;;  %v135_v38 = vrot.slane %v5177_v26, 1  ;;  %v4681_v41 = vpack.i.bf16 %v132_v29, %v130_v28  ;;  %v199_v42 = vsel %vm166_vm2, %v196_v17, %v198_v24 }
  0x20   :  { %4642 = vrot.lane.b32.xlu1 %v4641_v36, %s4928_s13  ;;  %v197_v36 = vsel %vm166_vm2, %v194_v57, %v196_v17  ;;  %v4135_v43 = vpack.c.bf16 %v760_v32, %v758_v27  ;;  %v4137_v44 = vpack.c.bf16 %v759_v34, %v757_v33  ;;  %v264_v47 = vsel %vm233_vm1, %v261_v9, %v263_v30  ;;  %v765_v9 = vld [vmem:[%s7412_s1 + $0x40] sm:$0xff]  ;;  %v770_v17 = vld [vmem:[%s7412_s1 + $0x68] sm:$0xff]  ;;  %v5266_v28 = vld [vmem:[%s7411_s0 + $0xb0] sm:$0xff] }
  0x21   :  { %v200_v49 = vrot.slane %v52_v25, 2  ;;  %v267_v53 = vrot.slane %v52_v25, 3  ;;  %v134_v56 = vsel %vm99_vm0, %v131_v15, %v133_v37  ;;  %v136_v57 = vsel %vm99_vm0, %v133_v37, %v135_v38  ;;  %v5261_v27 = vld [vmem:[%s7411_s0 + $0xa8] sm:$0xff]  ;;  %v769_v34 = vld [vmem:[%s7412_s1 + $0x60] sm:$0xff] }
  0x22   :  { %4136 = vmatprep.subr.bf16.mxu0 %v4135_v43  ;;  %4474 = vmatprep.subr.bf16.mxu1 %v4135_v43  ;;  %v269_v58 = vrot.slane %v5177_v26, 3  ;;  %v4139_v59 = vpack.c.bf16 %v764_v46, %v762_v45  ;;  %v4141_v8 = vpack.c.bf16 %v763_v52, %v761_v51  ;;  %v137_v15 = vrot.slane %v5218_v54, 1  ;;  %v774_v43 = vld [vmem:[%s7412_s1 + $0x88] sm:$0xff]  ;;  %v5296_v52 = vld [vmem:[%s7411_s0 + $0xb8] sm:$0xff] }
  0x23   :  { %4647 = vrot.lane.b32.xlu0 %v4646_v48, %s4927_s28  ;;  %v266_v48 = vsel %vm233_vm1, %v263_v30, %v265_v31  ;;  %4138 = vmatpush1.bf16.msra.mxu0 %v4137_v44  ;;  %v201_v13 = vsel %vm166_vm2, %v198_v24, %v200_v49  ;;  %v4696_v19 = vpack.i.bf16 %v136_v57, %v134_v56  ;;  %v206_v32 = vrot.slane %v5223_v55, 2  ;;  %v773_v56 = vld [vmem:[%s7412_s1 + $0x80] sm:$0xff]  ;;  %v775_v57 = vld [vmem:[%s7412_s1 + $0x90] sm:$0xff] }
  0x24   :  { %4652 = vrot.lane.b32.xlu1 %v4651_v50, %s4926_s27  ;;  %v202_v50 = vrot.slane %v5177_v26, 2  ;;  %4484 = vmatpush1.bf16.msra.mxu1 %v4137_v44  ;;  %v4691_v63 = vpack.i.bf16 %v266_v48, %v264_v47  ;;  %v268_v24 = vsel %vm233_vm1, %v265_v31, %v267_v53  ;;  %v270_v25 = vsel %vm233_vm1, %v267_v53, %v269_v58  ;;  %v776_v44 = vld [vmem:[%s7412_s1 + $0x98] sm:$0xff] }
  0x25   :  { %4140 = vmatprep.subr.bf16.mxu0 %v4139_v59  ;;  %4475 = vmatprep.subr.bf16.mxu1 %v4139_v59  ;;  %v4145_v29 = vpack.c.bf16 %v767_v11, %v765_v9  ;;  %v204_v31 = vrot.slane %v5218_v54, 2  ;;  %v141_v45 = vrot.slane %v5261_v27, 1  ;;  %v143_v46 = vrot.slane %v5266_v28, 1 }
  0x26   :  { %v203_v14 = vsel %vm166_vm2, %v200_v49, %v202_v50  ;;  %v210_v47 = vrot.slane %v5266_v28, 2  ;;  %v4706_v49 = vpack.i.bf16 %v270_v25, %v268_v24  ;;  %v4151_v53 = vpack.c.bf16 %v776_v44, %v774_v43  ;;  %v779_v24 = vld [vmem:[%s7412_s1 + $0xb0] sm:$0xff] }
  0x27   :  { %4657 = vrot.lane.b32.xlu0 %v4656_v60, %s4928_s13  ;;  %v766_v60 = vld [vmem:[%s7412_s1 + $0x48] sm:$0xff]  ;;  %4142 = vmatpush1.bf16.msra.mxu0 %v4141_v8  ;;  %v4701_v30 = vpack.i.bf16 %v203_v14, %v201_v13  ;;  %v205_v59 = vsel %vm166_vm2, %v202_v50, %v204_v31  ;;  %v780_v50 = vld [vmem:[%s7412_s1 + $0xb8] sm:$0xff]  ;;  %v144_v26 = vsel %vm99_vm0, %v141_v45, %v143_v46  ;;  %v277_v11 = vrot.slane %v5266_v28, 3  ;;  %v5367_v44 = vld [vmem:[%s7411_s0 + $0xd0] sm:$0xff] }
  0x28   :  { %4662 = vrot.lane.b32.xlu1 %v4661_v62, %s4927_s28  ;;  %v4686_v62 = vpack.i.bf16 %v199_v42, %v197_v36  ;;  %v4143_v23 = vpack.c.bf16 %v768_v61, %v766_v60  ;;  %4485 = vmatpush1.bf16.msra.mxu1 %v4141_v8  ;;  %v138_v36 = vsel %vm99_vm0, %v135_v38, %v137_v15  ;;  %v273_v42 = vrot.slane %v5223_v55, 3  ;;  %v778_v8 = vld [vmem:[%s7412_s1 + $0xa8] sm:$0xff] }
  0x29   :  { %v208_v38 = vrot.slane %v5261_v27, 2  ;;  %v207_v60 = vsel %vm166_vm2, %v204_v31, %v206_v32  ;;  %vm724_vm6 = vcmask 785408   ;;  %vm1216_vm7 = vcmask 326656  }
  0x2a   :  { %4144 = vmatprep.subr.bf16.mxu0 %v4143_v23  ;;  %4476 = vmatprep.subr.bf16.mxu1 %v4143_v23  ;;  %v777_v23 = vld [vmem:[%s7412_s1 + $0xa0] sm:$0xff]  ;;  %vm1816_vm8 = vcmask 687104   ;;  %vm2308_vm9 = vcmask 1014784   ;;  %vm2460_vm10 = vcmask 293888   ;;  %vm2325_vm11 = vcmask 654336  }
  0x2b   :  { %4667 = vrot.lane.b32.xlu0 %v4666_v16, %s4926_s27  ;;  %v139_v16 = vrot.slane %v5223_v55, 1  ;;  %4146 = vmatpush1.bf16.msra.mxu0 %v4145_v29  ;;  %v209_v13 = vsel %vm166_vm2, %v206_v32, %v208_v38  ;;  %v211_v14 = vsel %vm166_vm2, %v208_v38, %v210_v47  ;;  %v783_v38 = vld [vmem:[%s7412_s1 + $0xd0] sm:$0xff]  ;;  %vm4935_vm12 = vmmov 0  }
  0x2c   :  { %4672 = vrot.lane.b32.xlu1 %v4671_v18, %s4928_s13  ;;  %v772_v18 = vld [vmem:[%s7412_s1 + $0x78] sm:$0xff]  ;;  %4486 = vmatpush1.bf16.msra.mxu1 %v4145_v29  ;;  %v782_v29 = vld [vmem:[%s7412_s1 + $0xc8] sm:$0xff]  ;;  %v4731_v32 = vpack.i.bf16 %v211_v14, %v209_v13  ;;  %v785_v13 = vld [vmem:[%s7412_s1 + $0xe0] sm:$0xff] }
  0x2d   :  { %v4147_v33 = vpack.c.bf16 %v772_v18, %v770_v17  ;;  %v140_v37 = vsel %vm99_vm0, %v137_v15, %v139_v16  ;;  %v142_v9 = vsel %vm99_vm0, %v139_v16, %v141_v45  ;;  %v145_v15 = vrot.slane %v5296_v52, 1  ;;  %v787_v14 = vld [vmem:[%s7412_s1 + $0xf0] sm:$0xff] }
  0x2e   :  { %v4711_v51 = vpack.i.bf16 %v140_v37, %v138_v36  ;;  %v4153_v17 = vpack.c.bf16 %v775_v57, %v773_v56  ;;  %v4716_v16 = vpack.i.bf16 %v207_v60, %v205_v59  ;;  %v4726_v31 = vpack.i.bf16 %v144_v26, %v142_v9  ;;  %v5358_v36 = vld [vmem:[%s7411_s0 + $0xc8] sm:$0xff]  ;;  %v5401_v26 = vld [vmem:[%s7411_s0 + $0xd8] sm:$0xff] }
  0x2f   :  { %4677 = vrot.lane.b32.xlu0 %v4676_v35, %s4927_s28  ;;  %v771_v35 = vld [vmem:[%s7412_s1 + $0x70] sm:$0xff]  ;;  %4148 = vmatprep.subr.bf16.mxu0 %v4147_v33  ;;  %v4157_v37 = vpack.c.bf16 %v779_v24, %v777_v23  ;;  %v301_v56 = vrot.slane %v4994_v0, 4  ;;  %v302_v57 = vrot.slane %v4999_v1, 4  ;;  %v149_v59 = vrot.slane %v5358_v36, 1  ;;  %v792_v23 = vld [vmem:[%s7412_s1 + $0x118] sm:$0xff] }
  0x30   :  { %4682 = vrot.lane.b32.xlu1 %v4681_v41, %s4926_s27  ;;  %v271_v41 = vrot.slane %v5218_v54, 3  ;;  %v4149_v48 = vpack.c.bf16 %v771_v35, %v769_v34  ;;  %4477 = vmatprep.subr.bf16.mxu1 %v4147_v33  ;;  %v5353_v35 = vsel %vm99_vm0, %v143_v46, %v145_v15  ;;  %v781_v46 = vld [vmem:[%s7412_s1 + $0xc0] sm:$0xff] }
  0x32   :  { %v272_v61 = vsel %vm233_vm1, %v269_v58, %v271_v41  ;;  %v275_v58 = vrot.slane %v5261_v27, 3  ;;  %4150 = vmatpush1.bf16.msra.mxu0 %v4149_v48  ;;  %4487 = vmatpush1.bf16.msra.mxu1 %v4149_v48  ;;  %v279_v48 = vrot.slane %v5296_v52, 3 }
  0x33   :  { %4687 = vrot.lane.b32.xlu0 %v4686_v62, %s4928_s13  ;;  %v274_v62 = vsel %vm233_vm1, %v271_v41, %v273_v42  ;;  %4152 = vmatprep.subr.bf16.mxu0 %v4151_v53 }
  0x34   :  { %4692 = vrot.lane.b32.xlu1 %v4691_v63, %s4927_s28  ;;  %v5316_v63 = vld [vmem:[%s7411_s0 + $0xc0] sm:$0xff]  ;;  %v4721_v25 = vpack.i.bf16 %v274_v62, %v272_v61  ;;  %4478 = vmatprep.subr.bf16.mxu1 %v4151_v53  ;;  %v276_v33 = vsel %vm233_vm1, %v273_v42, %v275_v58  ;;  %v278_v34 = vsel %vm233_vm1, %v275_v58, %v277_v11  ;;  %v212_v42 = vrot.slane %v5296_v52, 2  ;;  %v788_v53 = vld [vmem:[%s7412_s1 + $0xf8] sm:$0xff] }
  0x35   :  { %v147_v18 = vrot.slane %v5316_v63, 1  ;;  %v214_v43 = vrot.slane %v5316_v63, 2  ;;  %v4736_v60 = vpack.i.bf16 %v278_v34, %v276_v33  ;;  %v151_v61 = vrot.slane %v5367_v44, 1 }
  0x36   :  { %4154 = vmatpush1.bf16.msra.mxu0 %v4153_v17  ;;  %4488 = vmatpush1.bf16.msra.mxu1 %v4153_v17  ;;  %v4161_v62 = vpack.c.bf16 %v783_v38, %v781_v46  ;;  %v213_v9 = vsel %vm166_vm2, %v210_v47, %v212_v42  ;;  %v4165_v33 = vpack.c.bf16 %v787_v14, %v785_v13  ;;  %v796_v46 = vld [vmem:[%s7412_s1 + $0x138] sm:$0xff] }
  0x37   :  { %4697 = vrot.lane.b32.xlu0 %v4696_v19, %s4926_s27  ;;  %v4155_v19 = vpack.c.bf16 %v780_v50, %v778_v8  ;;  %v148_v41 = vsel %vm99_vm0, %v145_v15, %v147_v18  ;;  %v303_v8 = vsel %vm300_vm3, %v301_v56, %v302_v57  ;;  %v215_v47 = vsel %vm166_vm2, %v212_v42, %v214_v43 }
  0x38   :  { %4702 = vrot.lane.b32.xlu1 %v4701_v30, %s4928_s13  ;;  %v784_v30 = vld [vmem:[%s7412_s1 + $0xd8] sm:$0xff]  ;;  %v4741_v50 = vpack.i.bf16 %v148_v41, %v5353_v35  ;;  %v280_v15 = vsel %vm233_vm1, %v277_v11, %v279_v48  ;;  %3774 = vmatprep.mubr.msk.f32.mxu0 %vm658_vm4, %v303_v8  ;;  %v150_v24 = vsel %vm99_vm0, %v147_v18, %v149_v59  ;;  %v216_v11 = vrot.slane %v5358_v36, 2  ;;  %v791_v41 = vld [vmem:[%s7412_s1 + $0x110] sm:$0xff] }
  0x39   :  { %4156 = vmatprep.subr.bf16.mxu0 %v4155_v19  ;;  %v4159_v45 = vpack.c.bf16 %v784_v30, %v782_v29  ;;  %4479 = vmatprep.subr.bf16.mxu1 %v4155_v19  ;;  %v790_v19 = vld [vmem:[%s7412_s1 + $0x108] sm:$0xff]  ;;  %v283_v29 = vrot.slane %v5358_v36, 3  ;;  %v152_v30 = vsel %vm99_vm0, %v149_v59, %v151_v61  ;;  %v4746_v34 = vpack.i.bf16 %v215_v47, %v213_v9 }
  0x3a   :  { %4158 = vmatpush1.bf16.msra.mxu0 %v4157_v37  ;;  %4489 = vmatpush1.bf16.msra.mxu1 %v4157_v37  ;;  %v4167_v35 = vpack.c.bf16 %v792_v23, %v790_v19  ;;  %v789_v37 = vld [vmem:[%s7412_s1 + $0x100] sm:$0xff]  ;;  %v4756_v38 = vpack.i.bf16 %v152_v30, %v150_v24  ;;  %v220_v9 = vrot.slane %v5401_v26, 2  ;;  %v5470_v47 = vld [vmem:[%s7411_s0 + $0xe8] sm:$0xff]  ;;  %v346_v30 = vrot.slane %v5296_v52, 4 }
  0x3b   :  { %4707 = vrot.lane.b32.xlu0 %v4706_v49, %s4927_s28  ;;  %v281_v49 = vrot.slane %v5316_v63, 3  ;;  %4160 = vmatprep.subr.bf16.mxu0 %v4159_v45  ;;  %v4169_v8 = vpack.c.bf16 %v791_v41, %v789_v37  ;;  %v224_v37 = vrot.slane %v5470_v47, 2 }
  0x3c   :  { %4712 = vrot.lane.b32.xlu1 %v4711_v51, %s4926_s27  ;;  %v786_v51 = vld [vmem:[%s7412_s1 + $0xe8] sm:$0xff]  ;;  %4480 = vmatprep.subr.bf16.mxu1 %v4159_v45 }
  0x3d   :  { %v4163_v58 = vpack.c.bf16 %v788_v53, %v786_v51  ;;  %v282_v17 = vsel %vm233_vm1, %v279_v48, %v281_v49  ;;  %v794_v45 = vld [vmem:[%s7412_s1 + $0x128] sm:$0xff]  ;;  %v217_v48 = vsel %vm166_vm2, %v214_v43, %v216_v11  ;;  %v284_v53 = vsel %vm233_vm1, %v281_v49, %v283_v29  ;;  %v793_v49 = vld [vmem:[%s7412_s1 + $0x120] sm:$0xff] }
  0x3e   :  { %4162 = vmatpush1.bf16.msra.mxu0 %v4161_v62  ;;  %v4751_v42 = vpack.i.bf16 %v282_v17, %v280_v15  ;;  %4490 = vmatpush1.bf16.msra.mxu1 %v4161_v62  ;;  %v4171_v13 = vpack.c.bf16 %v796_v46, %v794_v45  ;;  %v5475_v15 = vld [vmem:[%s7411_s0 + $0xf0] sm:$0xff] }
  0x3f   :  { %4717 = vrot.lane.b32.xlu0 %v4716_v16, %s4928_s13  ;;  %v5418_v16 = vld [vmem:[%s7411_s0 + $0xe0] sm:$0xff]  ;;  %4164 = vmatprep.subr.bf16.mxu0 %v4163_v58 }
  0x40   :  { %4722 = vrot.lane.b32.xlu1 %v4721_v25, %s4927_s28  ;;  %v218_v25 = vrot.slane %v5367_v44, 2  ;;  %v155_v18 = vrot.slane %v5418_v16, 1  ;;  %4481 = vmatprep.subr.bf16.mxu1 %v4163_v58  ;;  %v222_v43 = vrot.slane %v5418_v16, 2  ;;  %v287_v58 = vrot.slane %v5401_v26, 3 }
  0x41   :  { %v289_v14 = vrot.slane %v5418_v16, 3 }
  0x42   :  { %v219_v51 = vsel %vm166_vm2, %v216_v11, %v218_v25  ;;  %4166 = vmatpush1.bf16.msra.mxu0 %v4165_v33  ;;  %4491 = vmatpush1.bf16.msra.mxu1 %v4165_v33  ;;  %v221_v24 = vsel %vm166_vm2, %v218_v25, %v220_v9  ;;  %v223_v11 = vsel %vm166_vm2, %v220_v9, %v222_v43  ;;  %v226_v25 = vrot.slane %v5475_v15, 2 }
  0x43   :  { %4727 = vrot.lane.b32.xlu0 %v4726_v31, %s4926_s27  ;;  %v285_v31 = vrot.slane %v5367_v44, 3  ;;  %4168 = vmatprep.subr.bf16.mxu0 %v4167_v35  ;;  %v4761_v62 = vpack.i.bf16 %v219_v51, %v217_v48  ;;  %v290_v33 = vsel %vm233_vm1, %v287_v58, %v289_v14  ;;  %v293_v48 = vrot.slane %v5475_v15, 3 }
  0x44   :  { %4732 = vrot.lane.b32.xlu1 %v4731_v32, %s4928_s13  ;;  %v153_v32 = vrot.slane %v5401_v26, 1  ;;  %4482 = vmatprep.subr.bf16.mxu1 %v4167_v35  ;;  %v159_v35 = vrot.slane %v5475_v15, 1  ;;  %v225_v51 = vsel %vm166_vm2, %v222_v43, %v224_v37 }
  0x45   :  { %v286_v59 = vsel %vm233_vm1, %v283_v29, %v285_v31  ;;  %v344_v29 = vrot.slane %v5266_v28, 4 }
  0x46   :  { %v4766_v17 = vpack.i.bf16 %v286_v59, %v284_v53  ;;  %4170 = vmatpush1.bf16.msra.mxu0 %v4169_v8  ;;  %4492 = vmatpush1.bf16.msra.mxu1 %v4169_v8  ;;  %v227_v53 = vsel %vm166_vm2, %v224_v37, %v226_v25  ;;  %v5506_v59 = vld [vmem:[%s7411_s0 + $0xf8] sm:$0xff] }
  0x47   :  { %4737 = vrot.lane.b32.xlu0 %v4736_v60, %s4927_s28  ;;  %v154_v60 = vsel %vm99_vm0, %v151_v61, %v153_v32  ;;  %v795_v61 = vld [vmem:[%s7412_s1 + $0x130] sm:$0xff]  ;;  %4172 = vmatprep.subr.bf16.mxu0 %v4171_v13  ;;  %v347_v41 = vsel %vm300_vm3, %v344_v29, %v346_v30  ;;  %v161_v9 = vrot.slane %v5506_v59, 1 }
  0x48   :  { %4742 = vrot.lane.b32.xlu1 %v4741_v50, %s4926_s27  ;;  %v156_v50 = vsel %vm99_vm0, %v153_v32, %v155_v18  ;;  %v4173_v23 = vpack.c.bf16 %v795_v61, %v793_v49  ;;  %v288_v32 = vsel %vm233_vm1, %v285_v31, %v287_v58  ;;  %4483 = vmatprep.subr.bf16.mxu1 %v4171_v13  ;;  %v228_v13 = vrot.slane %v5506_v59, 2 }
  0x49   :  { %v4771_v19 = vpack.i.bf16 %v156_v50, %v154_v60  ;;  %v4776_v31 = vpack.i.bf16 %v223_v11, %v221_v24  ;;  %3796 = vmatprep.mubr.msk.f32.mxu1 %vm658_vm4, %v347_v41  ;;  %v162_v49 = vsel %vm99_vm0, %v159_v35, %v161_v9  ;;  %v295_v61 = vrot.slane %v5506_v59, 3 }
  0x4a   :  { %4174 = vmatpush1.bf16.msra.mxu0 %v4173_v23  ;;  %4493 = vmatpush1.bf16.msra.mxu1 %v4173_v23 }
  0x4b   :  { %4747 = vrot.lane.b32.xlu0 %v4746_v34, %s4928_s13  ;;  %v157_v34 = vrot.slane %v5470_v47, 1  ;;  %v296_v58 = vsel %vm233_vm1, %v293_v48, %v295_v61  ;;  %v299_v23 = vsel %vm233_vm1, %v295_v61, %v234_v6 }
  0x4c   :  { %4752 = vrot.lane.b32.xlu1 %v4751_v42, %s4927_s28  ;;  %v4781_v42 = vpack.i.bf16 %v290_v33, %v288_v32  ;;  %v1538_v32 = vld [vmem:[%s7413_s4] sm:$0xff]  ;;  %v1539_v33 = vld [vmem:[%s7413_s4 + $0x8] sm:$0xff] }
  0x4d   :  { %v158_v45 = vsel %vm99_vm0, %v155_v18, %v157_v34  ;;  %v160_v46 = vsel %vm99_vm0, %v157_v34, %v159_v35  ;;  %v4791_v18 = vpack.i.bf16 %v227_v53, %v225_v51  ;;  %v1540_v51 = vld [vmem:[%s7413_s4 + $0x10] sm:$0xff]  ;;  %v1541_v53 = vld [vmem:[%s7413_s4 + $0x18] sm:$0xff] }
  0x4e   :  { %v4786_v60 = vpack.i.bf16 %v160_v46, %v158_v45  ;;  %v4206_v45 = vpack.c.bf16 %v1539_v33, %v1538_v32  ;;  %v4209_v61 = vpack.c.bf16 %v1541_v53, %v1540_v51  ;;  %v312_v53 = vrot.slane %v5045_v22, 4 }
  0x4f   :  { %4757 = vrot.lane.b32.xlu0 %v4756_v38, %s4926_s27  ;;  %v291_v38 = vrot.slane %v5470_v47, 3 }
  0x50   :  { %4762 = vrot.lane.b32.xlu1 %v4761_v62, %s4928_s13  ;;  %v229_v62 = vsel %vm166_vm2, %v226_v25, %v228_v13 }
  0x51   :  { %v292_v8 = vsel %vm233_vm1, %v289_v14, %v291_v38  ;;  %v294_v50 = vsel %vm233_vm1, %v291_v38, %v293_v48  ;;  %v165_v14 = vsel %vm99_vm0, %v161_v9, %v100_v3  ;;  %v306_v48 = vrot.slane %v5013_v7, 4 }
  0x52   :  { %v4796_v43 = vpack.i.bf16 %v294_v50, %v292_v8 }
  0x53   :  { %4767 = vrot.lane.b32.xlu0 %v4766_v17, %s4927_s28  ;;  %v232_v17 = vsel %vm166_vm2, %v228_v13, %v167_v10  ;;  %v304_v10 = vrot.slane %v5004_v2, 4 }
  0x54   :  { %4772 = vrot.lane.b32.xlu1 %v4771_v19, %s4926_s27  ;;  %v4929_v19 = vmov 0.0|0.0  }
  0x55   :  { %4205 = vmatprep.subr.bf16.mxu0 %v4929_v19  ;;  %4175 = vmatprep.subr.bf16.mxu1 %v4929_v19  ;;  %v305_v38 = vsel %vm300_vm3, %v302_v57, %v304_v10 }
  0x57   :  { %4777 = vrot.lane.b32.xlu0 %v4776_v31, %s4928_s13 }
  0x58   :  { %4782 = vrot.lane.b32.xlu1 %v4781_v42, %s4927_s28 }
  0x5b   :  { %4787 = vrot.lane.b32.xlu0 %v4786_v60, %s4926_s27 }
  0x5c   :  { %4792 = vrot.lane.b32.xlu1 %v4791_v18, %s4928_s13 }
  0x5f   :  { %4797 = vrot.lane.b32.xlu0 %v4796_v43, %s4927_s28 }
  0x60   :  { %428 = vrot.lane.b32.xlu1 %v162_v49, %s4926_s27 }
  0x63   :  { %525 = vrot.lane.b32.xlu0 %v229_v62, %s4928_s13  ;;  %v307_v62 = vsel %vm300_vm3, %v304_v10, %v306_v48 }
  0x64   :  { %622 = vrot.lane.b32.xlu1 %v296_v58, %s4927_s28  ;;  %v308_v58 = vrot.slane %v5022_v12, 4 }
  0x67   :  { %430 = vrot.lane.b32.xlu0 %v165_v14, %s4926_s27  ;;  %v1543_v14 = vld [vmem:[%s7413_s4 + $0x28] sm:$0xff] }
  0x68   :  { %527 = vrot.lane.b32.xlu1 %v232_v17, %s4928_s13 }
  0x6b   :  { %624 = vrot.lane.b32.xlu0 %v299_v23, %s4927_s28 }
  0x79   :  { %v4578_v3 = vpop.permute.xlu0 %4577 }
  0x7a   :  { %v4588_v24 = vpop.permute.xlu1 %4587  ;;  %v4579_v11 = vunpack.i.l.bf16 %v4578_v3  ;;  %v4580_v34 = vunpack.i.h.bf16 %v4578_v3 }
  0x7b   :  { %v4589_v35 = vunpack.i.l.bf16 %v4588_v24  ;;  %v4590_v60 = vunpack.i.h.bf16 %v4588_v24 }
  0x7c   :  { %v659_v42 = vsel %vm658_vm4, %v4994_v0, %v4579_v11  ;;  %v660_v50 = vsel %vm658_vm4, %v4999_v1, %v4580_v34  ;;  %v1542_v1 = vld [vmem:[%s7413_s4 + $0x20] sm:$0xff]  ;;  %v309_v34 = vsel %vm300_vm3, %v306_v48, %v308_v58 }
  0x7d   :  { %v4583_v6 = vpop.permute.xlu0 %4582  ;;  %v4212_v33 = vpack.c.bf16 %v1543_v14, %v1542_v1  ;;  %v1549_v1 = vld [vmem:[%s7413_s4 + $0x58] sm:$0xff] }
  0x7e   :  { %v4585_v37 = vunpack.i.h.bf16 %v4583_v6  ;;  %v4584_v25 = vunpack.i.l.bf16 %v4583_v6  ;;  %v4593_v41 = vpop.permute.xlu1 %4592  ;;  %v1544_v6 = vld [vmem:[%s7413_s4 + $0x30] sm:$0xff] }
  0x7f   :  { %v4594_v31 = vunpack.i.l.bf16 %v4593_v41  ;;  %v4595_v13 = vunpack.i.h.bf16 %v4593_v41 }
  0x80   :  { %v692_v46 = vsel %vm691_vm5, %v659_v42, %v4584_v25  ;;  %v693_v43 = vsel %vm691_vm5, %v660_v50, %v4585_v37  ;;  %v1545_v37 = vld [vmem:[%s7413_s4 + $0x38] sm:$0xff] }
  0x81   :  { %v725_v18 = vsel %vm724_vm6, %v692_v46, %v4589_v35  ;;  %v4598_v8 = vpop.permute.xlu0 %4597  ;;  %v661_v49 = vsel %vm658_vm4, %v5004_v2, %v4594_v31  ;;  %v726_v23 = vsel %vm724_vm6, %v693_v43, %v4590_v60  ;;  %v662_v32 = vsel %vm658_vm4, %v5013_v7, %v4595_v13  ;;  %v1546_v60 = vld [vmem:[%s7413_s4 + $0x40] sm:$0xff] }
  0x82   :  { %939 = vmatmul.mubr.f32.vlgmr.msra.gmra.mrb[0].mxu0 %v725_v18  ;;  %v4599_v9 = vunpack.i.l.bf16 %v4598_v8  ;;  %v4603_v57 = vpop.permute.xlu1 %4602  ;;  %v4600_v3 = vunpack.i.h.bf16 %v4598_v8  ;;  %v310_v35 = vrot.slane %v5040_v21, 4  ;;  %v4215_v48 = vpack.c.bf16 %v1545_v37, %v1544_v6  ;;  %v1547_v18 = vld [vmem:[%s7413_s4 + $0x48] sm:$0xff] }
  0x83   :  { %3775 = vmatprep.mubr.msk.f32.mxu0 %vm658_vm4, %v305_v38  ;;  %4207 = vmatpush1.bf16.msra.mxu0 %v4206_v45  ;;  %v4604_v17 = vunpack.i.l.bf16 %v4603_v57  ;;  %v4605_v25 = vunpack.i.h.bf16 %v4603_v57  ;;  %v1551_v6 = vld [vmem:[%s7413_s4 + $0x68] sm:$0xff] }
  0x84   :  { %4208 = vmatprep.subr.bf16.mxu0 %v4929_v19  ;;  %v694_v24 = vsel %vm691_vm5, %v661_v49, %v4599_v9  ;;  %v695_v42 = vsel %vm691_vm5, %v662_v32, %v4600_v3  ;;  %v311_v51 = vsel %vm300_vm3, %v308_v58, %v310_v35  ;;  %v4218_v49 = vpack.c.bf16 %v1547_v18, %v1546_v60  ;;  %v1548_v58 = vld [vmem:[%s7413_s4 + $0x50] sm:$0xff] }
  0x85   :  { %v4608_v2 = vpop.permute.xlu0 %4607  ;;  %v727_v41 = vsel %vm724_vm6, %v694_v24, %v4604_v17  ;;  %v728_v50 = vsel %vm724_vm6, %v695_v42, %v4605_v25  ;;  %v4221_v32 = vpack.c.bf16 %v1549_v1, %v1548_v58 }
  0x86   :  { %945 = vmatmul.mubr.f32.gmra.mrb[2].mxu0 %v726_v23  ;;  %v4613_v11 = vpop.permute.xlu1 %4612  ;;  %v4609_v10 = vunpack.i.l.bf16 %v4608_v2  ;;  %v4610_v46 = vunpack.i.h.bf16 %v4608_v2 }
  0x87   :  { %3776 = vmatprep.mubr.msk.f32.mxu0 %vm658_vm4, %v307_v62  ;;  %4210 = vmatpush1.bf16.msra.mxu0 %v4209_v61  ;;  %v4614_v31 = vunpack.i.l.bf16 %v4613_v11  ;;  %v4615_v9 = vunpack.i.h.bf16 %v4613_v11  ;;  %v313_v61 = vsel %vm300_vm3, %v310_v35, %v312_v53  ;;  %v314_v62 = vrot.slane %v5065_v39, 4  ;;  %v4911_v11 = vld [vmem:[%s7411_s0 + $0x30] sm:$0xff]  ;;  %v1550_v35 = vld [vmem:[%s7413_s4 + $0x60] sm:$0xff] }
  0x88   :  { %4211 = vmatprep.subr.bf16.mxu0 %v4929_v19  ;;  %v663_v38 = vsel %vm658_vm4, %v5022_v12, %v4609_v10  ;;  %v664_v13 = vsel %vm658_vm4, %v5040_v21, %v4610_v46  ;;  %v4224_v46 = vpack.c.bf16 %v1551_v6, %v1550_v35 }
  0x89   :  { %v4618_v7 = vpop.permute.xlu0 %4617  ;;  %v696_v57 = vsel %vm691_vm5, %v663_v38, %v4614_v31  ;;  %v697_v2 = vsel %vm691_vm5, %v664_v13, %v4615_v9  ;;  %v4912_v9 = vld [vmem:[%s7411_s0 + $0x40] sm:$0xff]  ;;  %v320_v13 = vrot.slane %v5103_v5, 4 }
  0x8a   :  { %951 = vmatmul.mubr.f32.gmra.mrb[4].mxu0 %v727_v41  ;;  %v4623_v45 = vpop.permute.xlu1 %4622  ;;  %v4619_v8 = vunpack.i.l.bf16 %v4618_v7  ;;  %v4620_v14 = vunpack.i.h.bf16 %v4618_v7 }
  0x8b   :  { %3777 = vmatprep.mubr.msk.f32.mxu0 %vm658_vm4, %v309_v34  ;;  %4213 = vmatpush1.bf16.msra.mxu0 %v4212_v33  ;;  %v4624_v22 = vunpack.i.l.bf16 %v4623_v45  ;;  %v4625_v24 = vunpack.i.h.bf16 %v4623_v45  ;;  %v315_v33 = vsel %vm300_vm3, %v312_v53, %v314_v62  ;;  %v316_v34 = vrot.slane %v5070_v40, 4  ;;  %v1553_v53 = vld [vmem:[%s7413_s4 + $0x78] sm:$0xff] }
  0x8c   :  { %4214 = vmatprep.subr.bf16.mxu0 %v4929_v19  ;;  %v729_v17 = vsel %vm724_vm6, %v696_v57, %v4619_v8  ;;  %v730_v25 = vsel %vm724_vm6, %v697_v2, %v4620_v14 }
  0x8d   :  { %v4628_v12 = vpop.permute.xlu0 %4627  ;;  %v665_v10 = vsel %vm658_vm4, %v4911_v11, %v4624_v22  ;;  %v666_v45 = vsel %vm658_vm4, %v5065_v39, %v4625_v24  ;;  %v317_v38 = vsel %vm300_vm3, %v314_v62, %v316_v34 }
  0x8e   :  { %957 = vmatmul.mubr.f32.gmra.mrb[6].mxu0 %v728_v50  ;;  %v5604_v43 = vpop.permute.xlu1 %4632  ;;  %v4629_v23 = vunpack.i.l.bf16 %v4628_v12  ;;  %v4630_v7 = vunpack.i.h.bf16 %v4628_v12 }
  0x8f   :  { %3778 = vmatprep.mubr.msk.f32.mxu0 %vm658_vm4, %v311_v51  ;;  %4216 = vmatpush1.bf16.msra.mxu0 %v4215_v48  ;;  %v4634_v37 = vunpack.i.l.bf16 %v5604_v43  ;;  %v318_v48 = vrot.slane %v5098_v4, 4  ;;  %v1552_v51 = vld [vmem:[%s7413_s4 + $0x70] sm:$0xff]  ;;  %v4635_v60 = vunpack.i.h.bf16 %v5604_v43 }
  0x90   :  { %4217 = vmatprep.subr.bf16.mxu0 %v4929_v19  ;;  %v698_v40 = vsel %vm691_vm5, %v665_v10, %v4629_v23  ;;  %v699_v4 = vsel %vm691_vm5, %v666_v45, %v4630_v7  ;;  %v4227_v43 = vpack.c.bf16 %v1553_v53, %v1552_v51  ;;  %v4913_v23 = vld [vmem:[%s7411_s0 + $0x48] sm:$0xff]  ;;  %v1556_v10 = vld [vmem:[%s7413_s4 + $0x90] sm:$0xff]  ;;  %v4915_v45 = vld [vmem:[%s7411_s0 + $0x60] sm:$0xff] }
  0x91   :  { %v5619_v21 = vpop.permute.xlu0 %4637  ;;  %v731_v39 = vsel %vm724_vm6, %v698_v40, %v4634_v37  ;;  %v319_v22 = vsel %vm300_vm3, %v316_v34, %v318_v48  ;;  %v732_v58 = vsel %vm724_vm6, %v699_v4, %v4635_v60  ;;  %v321_v11 = vsel %vm300_vm3, %v318_v48, %v320_v13  ;;  %v4914_v7 = vld [vmem:[%s7411_s0 + $0x50] sm:$0xff] }
  0x92   :  { %963 = vmatmul.mubr.f32.gmra.mrb[8].mxu0 %v729_v17  ;;  %v5622_v3 = vpop.permute.xlu1 %4642  ;;  %v4639_v42 = vunpack.i.l.bf16 %v5619_v21  ;;  %v4640_v12 = vunpack.i.h.bf16 %v5619_v21 }
  0x93   :  { %3779 = vmatprep.mubr.msk.f32.mxu0 %vm658_vm4, %v313_v61  ;;  %4219 = vmatpush1.bf16.msra.mxu0 %v4218_v49  ;;  %v4644_v8 = vunpack.i.l.bf16 %v5622_v3  ;;  %v1554_v49 = vld [vmem:[%s7413_s4 + $0x80] sm:$0xff]  ;;  %v1555_v61 = vld [vmem:[%s7413_s4 + $0x88] sm:$0xff]  ;;  %v4645_v14 = vunpack.i.h.bf16 %v5622_v3  ;;  %v322_v3 = vrot.slane %v5118_v20, 4 }
  0x94   :  { %4220 = vmatprep.subr.bf16.mxu0 %v4929_v19  ;;  %v667_v57 = vsel %vm658_vm4, %v4912_v9, %v4639_v42  ;;  %v668_v2 = vsel %vm658_vm4, %v4913_v23, %v4640_v12  ;;  %v4230_v24 = vpack.c.bf16 %v1555_v61, %v1554_v49 }
  0x95   :  { %v5640_v41 = vpop.permute.xlu0 %4647  ;;  %v700_v5 = vsel %vm691_vm5, %v667_v57, %v4644_v8  ;;  %v701_v20 = vsel %vm691_vm5, %v668_v2, %v4645_v14  ;;  %v323_v42 = vsel %vm300_vm3, %v320_v13, %v322_v3  ;;  %v4916_v8 = vld [vmem:[%s7411_s0 + $0x58] sm:$0xff]  ;;  %v4930_v57 = vmov 0.0  }
  0x96   :  { %969 = vmatmul.mubr.f32.gmra.mrb[10].mxu0 %v730_v25  ;;  %v5643_v31 = vpop.permute.xlu1 %4652  ;;  %v4649_v62 = vunpack.i.l.bf16 %v5640_v41 }
  0x97   :  { %3780 = vmatprep.mubr.msk.f32.mxu0 %vm658_vm4, %v315_v33  ;;  %4222 = vmatpush1.bf16.msra.mxu0 %v4221_v32  ;;  %v4654_v21 = vunpack.i.l.bf16 %v5643_v31  ;;  %v1557_v32 = vld [vmem:[%s7413_s4 + $0x98] sm:$0xff]  ;;  %v4650_v33 = vunpack.i.h.bf16 %v5640_v41  ;;  %v4655_v25 = vunpack.i.h.bf16 %v5643_v31 }
  0x98   :  { %4223 = vmatprep.subr.bf16.mxu0 %v4929_v19  ;;  %v733_v34 = vsel %vm724_vm6, %v700_v5, %v4649_v62  ;;  %v4233_v40 = vpack.c.bf16 %v1557_v32, %v1556_v10 }
  0x99   :  { %v5660_v18 = vpop.permute.xlu0 %4657  ;;  %v669_v41 = vsel %vm658_vm4, %v4914_v7, %v4654_v21  ;;  %v670_v4 = vsel %vm658_vm4, %v4916_v8, %v4655_v25  ;;  %v4918_v21 = vld [vmem:[%s7411_s0 + $0x70] sm:$0xff] }
  0x9a   :  { %975 = vmatmul.mubr.f32.gmra.mrb[12].mxu0 %v731_v39  ;;  %v5664_v50 = vpop.permute.xlu1 %4662  ;;  %v4659_v6 = vunpack.i.l.bf16 %v5660_v18  ;;  %v4660_v51 = vunpack.i.h.bf16 %v5660_v18  ;;  %v4917_v18 = vld [vmem:[%s7411_s0 + $0x68] sm:$0xff]  ;;  %v328_v23 = vrot.slane %v4918_v21, 4 }
  0x9b   :  { %3781 = vmatprep.mubr.msk.f32.mxu0 %vm658_vm4, %v317_v38  ;;  %4225 = vmatpush1.bf16.msra.mxu0 %v4224_v46  ;;  %v324_v46 = vrot.slane %v4915_v45, 4  ;;  %v4664_v31 = vunpack.i.l.bf16 %v5664_v50  ;;  %v734_v38 = vsel %vm724_vm6, %v701_v20, %v4650_v33  ;;  %v326_v9 = vrot.slane %v4917_v18, 4 }
  0x9c   :  { %4226 = vmatprep.subr.bf16.mxu0 %v4929_v19  ;;  %v702_v53 = vsel %vm691_vm5, %v669_v41, %v4659_v6  ;;  %v703_v62 = vsel %vm691_vm5, %v670_v4, %v4660_v51  ;;  %v4919_v6 = vld [vmem:[%s7411_s0 + $0x78] sm:$0xff]  ;;  %v4921_v4 = vld [vmem:[%s7411_s0 + $0x88] sm:$0xff] }
  0x9d   :  { %v5683_v1 = vpop.permute.xlu0 %4667  ;;  %v325_v12 = vsel %vm300_vm3, %v322_v3, %v324_v46  ;;  %v735_v13 = vsel %vm724_vm6, %v702_v53, %v4664_v31  ;;  %v330_v20 = vrot.slane %v4919_v6, 4 }
  0x9e   :  { %981 = vmatmul.mubr.f32.gmra.mrb[14].mxu0 %v732_v58  ;;  %v5687_v17 = vpop.permute.xlu1 %4672  ;;  %v4669_v39 = vunpack.i.l.bf16 %v5683_v1  ;;  %v4670_v14 = vunpack.i.h.bf16 %v5683_v1 }
  0x9f   :  { %3782 = vmatprep.mubr.msk.f32.mxu0 %vm658_vm4, %v319_v22  ;;  %4228 = vmatpush1.bf16.msra.mxu0 %v4227_v43  ;;  %v1558_v43 = vld [vmem:[%s7413_s4 + $0xa0] sm:$0xff]  ;;  %v4665_v22 = vunpack.i.h.bf16 %v5664_v50  ;;  %v4674_v61 = vunpack.i.l.bf16 %v5687_v17  ;;  %v327_v50 = vsel %vm300_vm3, %v324_v46, %v326_v9  ;;  %v4675_v1 = vunpack.i.h.bf16 %v5687_v17  ;;  %s4934_s4 = smov 80  }
  0xa0   :  { %4229 = vmatprep.subr.bf16.mxu0 %v4929_v19  ;;  %v671_v5 = vsel %vm658_vm4, %v4915_v45, %v4669_v39  ;;  %v672_v33 = vsel %vm658_vm4, %v4917_v18, %v4670_v14  ;;  %v5803_v18 = vld [vmem:[%s7411_s0 + $0x90] sm:$0xff]  ;;  %v342_v14 = vrot.slane %v5261_v27, 4  ;;  %v358_v27 = vrot.slane %v5470_v47, 4 }
  0xa1   :  { %v5706_v35 = vpop.permute.xlu0 %4677  ;;  %v704_v3 = vsel %vm691_vm5, %v671_v5, %v4674_v61  ;;  %v338_v61 = vrot.slane %v5218_v54, 4  ;;  %v348_v5 = vrot.slane %v5316_v63, 4 }
  0xa2   :  { %987 = vmatmul.mubr.f32.gmra.mrb[16].mxu0 %v733_v34  ;;  %v5710_v37 = vpop.permute.xlu1 %4682  ;;  %v4679_v2 = vunpack.i.l.bf16 %v5706_v35  ;;  %v329_v34 = vsel %vm300_vm3, %v326_v9, %v328_v23  ;;  %v4680_v17 = vunpack.i.h.bf16 %v5706_v35  ;;  %v4920_v35 = vld [vmem:[%s7411_s0 + $0x80] sm:$0xff]  ;;  %v336_v9 = vrot.slane %v5803_v18, 4 }
  0xa3   :  { %3783 = vmatprep.mubr.msk.f32.mxu0 %vm658_vm4, %v321_v11  ;;  %4231 = vmatpush1.bf16.msra.mxu0 %v4230_v24  ;;  %v736_v24 = vsel %vm724_vm6, %v703_v62, %v4665_v22  ;;  %v4684_v32 = vunpack.i.l.bf16 %v5710_v37  ;;  %v4685_v45 = vunpack.i.h.bf16 %v5710_v37  ;;  %v332_v31 = vrot.slane %v4920_v35, 4 }
  0xa4   :  { %4232 = vmatprep.subr.bf16.mxu0 %v4929_v19  ;;  %v737_v25 = vsel %vm724_vm6, %v704_v3, %v4679_v2  ;;  %v340_v62 = vrot.slane %v5223_v55, 4 }
  0xa5   :  { %v5725_v48 = vpop.permute.xlu0 %4687  ;;  %v673_v46 = vsel %vm658_vm4, %v4918_v21, %v4684_v32 }
  0xa6   :  { %993 = vmatmul.mubr.f32.gmra.mrb[18].mxu0 %v734_v38  ;;  %v5729_v60 = vpop.permute.xlu1 %4692  ;;  %v4689_v41 = vunpack.i.l.bf16 %v5725_v48  ;;  %v331_v38 = vsel %vm300_vm3, %v328_v23, %v330_v20  ;;  %v4690_v8 = vunpack.i.h.bf16 %v5725_v48  ;;  %v333_v48 = vsel %vm300_vm3, %v330_v20, %v332_v31 }
  0xa7   :  { %3784 = vmatprep.mubr.msk.f32.mxu0 %vm658_vm4, %v323_v42  ;;  %4234 = vmatpush1.bf16.msra.mxu0 %v4233_v40  ;;  %v705_v40 = vsel %vm691_vm5, %v672_v33, %v4675_v1  ;;  %v4694_v51 = vunpack.i.l.bf16 %v5729_v60  ;;  %v5836_v20 = vsel %vm300_vm3, %v340_v62, %v342_v14 }
  0xa8   :  { %1599 = vmatprep.subr.mxu0 %v4930_v57  ;;  %v738_v53 = vsel %vm724_vm6, %v705_v40, %v4680_v17  ;;  %v706_v37 = vsel %vm691_vm5, %v673_v46, %v4689_v41  ;;  %v1195_v46 = vld [vmem:[%s7414_s3] sm:$0xff] }
  0xa9   :  { %v5747_v49 = vpop.permute.xlu0 %4697  ;;  %v739_v21 = vsel %vm724_vm6, %v706_v37, %v4694_v51 }
  0xaa   :  { %999 = vmatmul.mubr.f32.gmra.mrb[20].mxu0 %v735_v13  ;;  %v5751_v58 = vpop.permute.xlu1 %4702  ;;  %v4699_v22 = vunpack.i.l.bf16 %v5747_v49  ;;  %v674_v13 = vsel %vm658_vm4, %v4919_v6, %v4685_v45  ;;  %v4700_v3 = vunpack.i.h.bf16 %v5747_v49  ;;  %v5831_v6 = vsel %vm300_vm3, %v338_v61, %v340_v62 }
  0xab   :  { %3785 = vmatprep.mubr.msk.f32.mxu0 %vm658_vm4, %v325_v12  ;;  %1600 = vmatpush1.msra.mxu0 %v1558_v43  ;;  %v334_v12 = vrot.slane %v4921_v4, 4  ;;  %v4704_v2 = vunpack.i.l.bf16 %v5751_v58  ;;  %v349_v49 = vsel %vm300_vm3, %v346_v30, %v348_v5  ;;  %v4705_v30 = vunpack.i.h.bf16 %v5751_v58 }
  0xac   :  { %4339 = vmatprep.subr.bf16.mxu0 %v4929_v19  ;;  %v350_v58 = vrot.slane %v5358_v36, 4 }
  0xad   :  { %v5763_v11 = vpop.permute.xlu0 %4707  ;;  %v335_v1 = vsel %vm300_vm3, %v332_v31, %v334_v12  ;;  %v337_v54 = vsel %vm300_vm3, %v334_v12, %v336_v9 }
  0xae   :  { %1005 = vmatmul.mubr.f32.gmra.mrb[22].mxu0 %v736_v24  ;;  %v5767_v10 = vpop.permute.xlu1 %4712  ;;  %v707_v24 = vsel %vm691_vm5, %v674_v13, %v4690_v8  ;;  %v4709_v17 = vunpack.i.l.bf16 %v5763_v11  ;;  %v4710_v13 = vunpack.i.h.bf16 %v5763_v11 }
  0xaf   :  { %3786 = vmatprep.mubr.msk.f32.mxu0 %vm658_vm4, %v327_v50  ;;  %v4695_v50 = vunpack.i.h.bf16 %v5729_v60  ;;  %v675_v60 = vsel %vm658_vm4, %v4920_v35, %v4699_v22  ;;  %v1196_v35 = vld [vmem:[%s7414_s3 + $0x8] sm:$0xff]  ;;  %v4714_v8 = vunpack.i.l.bf16 %v5767_v10 }
  0xb0   :  { %v708_v31 = vsel %vm691_vm5, %v675_v60, %v4704_v2  ;;  %v1198_v2 = vld [vmem:[%s7414_s3 + $0x18] sm:$0xff]  ;;  %v4715_v60 = vunpack.i.h.bf16 %v5767_v10 }
  0xb1   :  { %v5778_v7 = vpop.permute.xlu0 %4717 }
  0xb2   :  { %1011 = vmatmul.mubr.f32.gmra.mrb[24].mxu0 %v737_v25  ;;  %v5782_v42 = vpop.permute.xlu1 %4722  ;;  %v740_v25 = vsel %vm724_vm6, %v707_v24, %v4695_v50  ;;  %v4719_v24 = vunpack.i.l.bf16 %v5778_v7 }
  0xb3   :  { %3787 = vmatprep.mubr.msk.f32.mxu0 %vm658_vm4, %v329_v34  ;;  %v5828_v34 = vsel %vm300_vm3, %v336_v9, %v338_v61  ;;  %v741_v61 = vsel %vm724_vm6, %v708_v31, %v4709_v17 }
  0xb5   :  { %v5793_v39 = vpop.permute.xlu0 %4727 }
  0xb6   :  { %1017 = vmatmul.mubr.f32.gmra.mrb[26].mxu0 %v738_v53  ;;  %v5806_v43 = vpop.permute.xlu1 %4732 }
  0xb7   :  { %3788 = vmatprep.mubr.msk.f32.mxu0 %vm658_vm4, %v331_v38 }
  0xb9   :  { %v5818_v23 = vpop.permute.xlu0 %4737 }
  0xba   :  { %1023 = vmatmul.mubr.f32.gmra.mrb[28].mxu0 %v739_v21  ;;  %v4743_v55 = vpop.permute.xlu1 %4742  ;;  %v352_v21 = vrot.slane %v5367_v44, 4 }
  0xbb   :  { %3789 = vmatprep.mubr.msk.f32.mxu0 %vm658_vm4, %v333_v48  ;;  %v4745_v32 = vunpack.i.h.bf16 %v4743_v55  ;;  %v4744_v33 = vunpack.i.l.bf16 %v4743_v55  ;;  %v4176_v48 = vpack.c.bf16 %v1196_v35, %v1195_v46  ;;  %v4720_v35 = vunpack.i.h.bf16 %v5778_v7 }
  0xbd   :  { %v4748_v41 = vpop.permute.xlu0 %4747  ;;  %v681_v40 = vsel %vm658_vm4, %v5266_v28, %v4744_v33  ;;  %v682_v45 = vsel %vm658_vm4, %v5296_v52, %v4745_v32  ;;  %v676_v52 = vsel %vm658_vm4, %v4921_v4, %v4700_v3  ;;  %v1197_v4 = vld [vmem:[%s7414_s3 + $0x10] sm:$0xff]  ;;  %v677_v32 = vsel %vm658_vm4, %v5803_v18, %v4714_v8 }
  0xbe   :  { %1029 = vmatmul.mubr.f32.gmra.mrb[30].mxu0 %v740_v25  ;;  %v4750_v38 = vunpack.i.h.bf16 %v4748_v41  ;;  %v4749_v51 = vunpack.i.l.bf16 %v4748_v41  ;;  %v4753_v53 = vpop.permute.xlu1 %4752  ;;  %v709_v11 = vsel %vm691_vm5, %v676_v52, %v4705_v30  ;;  %v351_v41 = vsel %vm300_vm3, %v348_v5, %v350_v58  ;;  %v1199_v5 = vld [vmem:[%s7414_s3 + $0x20] sm:$0xff] }
  0xbf   :  { %3790 = vmatprep.mubr.msk.f32.mxu0 %vm658_vm4, %v335_v1  ;;  %v4755_v37 = vunpack.i.h.bf16 %v4753_v53  ;;  %v4754_v12 = vunpack.i.l.bf16 %v4753_v53  ;;  %v4179_v10 = vpack.c.bf16 %v1198_v2, %v1197_v4  ;;  %v710_v30 = vsel %vm691_vm5, %v677_v32, %v4719_v24  ;;  %v4923_v53 = vld [vmem:[%s7411_s0 + $0x98] sm:$0xff] }
  0xc0   :  { %v714_v9 = vsel %vm691_vm5, %v681_v40, %v4749_v51  ;;  %v715_v22 = vsel %vm691_vm5, %v682_v45, %v4750_v38  ;;  %v742_v45 = vsel %vm724_vm6, %v709_v11, %v4710_v13  ;;  %v4729_v51 = vunpack.i.l.bf16 %v5793_v39 }
  0xc1   :  { %v4758_v62 = vpop.permute.xlu0 %4757  ;;  %v747_v50 = vsel %vm724_vm6, %v714_v9, %v4754_v12  ;;  %v748_v17 = vsel %vm724_vm6, %v715_v22, %v4755_v37  ;;  %v678_v8 = vsel %vm658_vm4, %v4923_v53, %v4715_v60  ;;  %v353_v12 = vsel %vm300_vm3, %v350_v58, %v352_v21  ;;  %v1202_v58 = vld [vmem:[%s7414_s3 + $0x38] sm:$0xff] }
  0xc2   :  { %1035 = vmatmul.mubr.f32.gmra.mrb[32].mxu0 %v741_v61  ;;  %v4760_v1 = vunpack.i.h.bf16 %v4758_v62  ;;  %v4759_v55 = vunpack.i.l.bf16 %v4758_v62  ;;  %1071 = vmatmul.mubr.f32.vlgmr.msra.gmra.mrb[0].mxu1 %v747_v50  ;;  %v4763_v3 = vpop.permute.xlu1 %4762  ;;  %v4725_v22 = vunpack.i.h.bf16 %v5782_v42  ;;  %v1201_v50 = vld [vmem:[%s7414_s3 + $0x30] sm:$0xff]  ;;  %v4734_v4 = vunpack.i.l.bf16 %v5806_v43 }
  0xc3   :  { %3791 = vmatprep.mubr.msk.f32.mxu0 %vm658_vm4, %v337_v54  ;;  %v4764_v33 = vunpack.i.l.bf16 %v4763_v3  ;;  %3797 = vmatprep.mubr.msk.f32.mxu1 %vm658_vm4, %v349_v49  ;;  %v4765_v25 = vunpack.i.h.bf16 %v4763_v3  ;;  %v4724_v54 = vunpack.i.l.bf16 %v5782_v42  ;;  %v711_v42 = vsel %vm691_vm5, %v678_v8, %v4720_v35 }
  0xc4   :  { %v683_v40 = vsel %vm658_vm4, %v5316_v63, %v4759_v55  ;;  %4177 = vmatpush1.bf16.msra.mxu1 %v4176_v48  ;;  %v684_v49 = vsel %vm658_vm4, %v5358_v36, %v4760_v1  ;;  %v1200_v63 = vld [vmem:[%s7414_s3 + $0x28] sm:$0xff]  ;;  %v354_v36 = vrot.slane %v5401_v26, 4  ;;  %v356_v11 = vrot.slane %v5418_v16, 4  ;;  %v4924_v55 = vld [vmem:[%s7411_s0 + $0xa0] sm:$0xff] }
  0xc5   :  { %v4768_v18 = vpop.permute.xlu0 %4767  ;;  %v716_v46 = vsel %vm691_vm5, %v683_v40, %v4764_v33  ;;  %4178 = vmatprep.subr.bf16.mxu1 %v4929_v19  ;;  %v717_v9 = vsel %vm691_vm5, %v684_v49, %v4765_v25  ;;  %v743_v48 = vsel %vm724_vm6, %v710_v30, %v4724_v54  ;;  %v4730_v1 = vunpack.i.h.bf16 %v5793_v39 }
  0xc6   :  { %1041 = vmatmul.mubr.f32.gmra.mrb[34].mxu0 %v742_v45  ;;  %v4769_v31 = vunpack.i.l.bf16 %v4768_v18  ;;  %1077 = vmatmul.mubr.f32.gmra.mrb[2].mxu1 %v748_v17  ;;  %v4773_v38 = vpop.permute.xlu1 %4772  ;;  %v4770_v7 = vunpack.i.h.bf16 %v4768_v18  ;;  %v679_v3 = vsel %vm658_vm4, %v4924_v55, %v4729_v51  ;;  %v355_v39 = vsel %vm300_vm3, %v352_v21, %v354_v36  ;;  %v1204_v21 = vld [vmem:[%s7414_s3 + $0x48] sm:$0xff]  ;;  %v1210_v55 = vld [vmem:[%s7414_s3 + $0x78] sm:$0xff] }
  0xc7   :  { %3792 = vmatprep.mubr.msk.f32.mxu0 %vm658_vm4, %v5828_v34  ;;  %3798 = vmatprep.mubr.msk.f32.mxu1 %vm658_vm4, %v351_v41  ;;  %v4774_v52 = vunpack.i.l.bf16 %v4773_v38  ;;  %v4182_v34 = vpack.c.bf16 %v1200_v63, %v1199_v5  ;;  %v4775_v13 = vunpack.i.h.bf16 %v4773_v38  ;;  %v4185_v17 = vpack.c.bf16 %v1202_v58, %v1201_v50  ;;  %v4925_v5 = vld [vmem:[%s7411_s0 + $0xa8] sm:$0xff] }
  0xc8   :  { %v749_v37 = vsel %vm724_vm6, %v716_v46, %v4769_v31  ;;  %4180 = vmatpush1.bf16.msra.mxu1 %v4179_v10  ;;  %v750_v32 = vsel %vm724_vm6, %v717_v9, %v4770_v7  ;;  %v4739_v25 = vunpack.i.l.bf16 %v5818_v23  ;;  %v744_v41 = vsel %vm724_vm6, %v711_v42, %v4725_v22 }
  0xc9   :  { %v4778_v61 = vpop.permute.xlu0 %4777  ;;  %v685_v62 = vsel %vm658_vm4, %v5367_v44, %v4774_v52  ;;  %4181 = vmatprep.subr.bf16.mxu1 %v4929_v19  ;;  %v686_v10 = vsel %vm658_vm4, %v5401_v26, %v4775_v13  ;;  %v1203_v44 = vld [vmem:[%s7414_s3 + $0x40] sm:$0xff]  ;;  %v4735_v54 = vunpack.i.h.bf16 %v5806_v43  ;;  %v712_v45 = vsel %vm691_vm5, %v679_v3, %v4734_v4  ;;  %v1205_v26 = vld [vmem:[%s7414_s3 + $0x50] sm:$0xff] }
  0xca   :  { %1047 = vmatmul.mubr.f32.gmra.mrb[36].mxu0 %v743_v48  ;;  %1083 = vmatmul.mubr.f32.gmra.mrb[4].mxu1 %v749_v37  ;;  %v4779_v2 = vunpack.i.l.bf16 %v4778_v61  ;;  %v4783_v24 = vpop.permute.xlu1 %4782  ;;  %v4780_v33 = vunpack.i.h.bf16 %v4778_v61  ;;  %v345_v18 = vsel %vm300_vm3, %v342_v14, %v344_v29  ;;  %v680_v43 = vsel %vm658_vm4, %v4925_v5, %v4730_v1  ;;  %v1207_v61 = vld [vmem:[%s7414_s3 + $0x60] sm:$0xff]  ;;  %v1209_v1 = vld [vmem:[%s7414_s3 + $0x70] sm:$0xff] }
  0xcb   :  { %3793 = vmatprep.mubr.msk.f32.mxu0 %vm658_vm4, %v5831_v6  ;;  %3799 = vmatprep.mubr.msk.f32.mxu1 %vm658_vm4, %v353_v12  ;;  %v4784_v60 = vunpack.i.l.bf16 %v4783_v24  ;;  %v4785_v63 = vunpack.i.h.bf16 %v4783_v24  ;;  %v357_v14 = vsel %vm300_vm3, %v354_v36, %v356_v11  ;;  %v4188_v35 = vpack.c.bf16 %v1204_v21, %v1203_v44  ;;  %v1206_v36 = vld [vmem:[%s7414_s3 + $0x58] sm:$0xff]  ;;  %v1213_v21 = vld [vmem:[%s7414_s3 + $0x90] sm:$0xff]  ;;  %v797_v5 = vld [vmem:[%s7415_s2] sm:$0x3] }
  0xcc   :  { %v718_v6 = vsel %vm691_vm5, %v685_v62, %v4779_v2  ;;  %4183 = vmatpush1.bf16.msra.mxu1 %v4182_v34  ;;  %v4740_v30 = vunpack.i.h.bf16 %v5818_v23  ;;  %v745_v31 = vsel %vm724_vm6, %v712_v45, %v4739_v25  ;;  %v713_v23 = vsel %vm691_vm5, %v680_v43, %v4735_v54  ;;  %v1208_v62 = vld [vmem:[%s7414_s3 + $0x68] sm:$0xff]  ;;  %v1214_v54 = vld [vmem:[%s7414_s3 + $0x98] sm:$0xff] }
  0xcd   :  { %v4788_v40 = vpop.permute.xlu0 %4787  ;;  %4184 = vmatprep.subr.bf16.mxu1 %v4929_v19  ;;  %v751_v28 = vsel %vm724_vm6, %v718_v6, %v4784_v60  ;;  %v359_v52 = vsel %vm300_vm3, %v356_v11, %v358_v27  ;;  %v360_v9 = vrot.slane %v5475_v15, 4  ;;  %v4191_v34 = vpack.c.bf16 %v1206_v36, %v1205_v26  ;;  %v1212_v25 = vld [vmem:[%s7414_s3 + $0x88] sm:$0xff] }
  0xce   :  { %1053 = vmatmul.mubr.f32.gmra.mrb[38].mxu0 %v744_v41  ;;  %1089 = vmatmul.mubr.f32.gmra.mrb[6].mxu1 %v750_v32  ;;  %v4789_v46 = vunpack.i.l.bf16 %v4788_v40  ;;  %v4793_v49 = vpop.permute.xlu1 %4792  ;;  %v4790_v38 = vunpack.i.h.bf16 %v4788_v40  ;;  %v746_v22 = vsel %vm724_vm6, %v713_v23, %v4740_v30  ;;  %v362_v2 = vrot.slane %v5506_v59, 4 }
  0xcf   :  { %3794 = vmatprep.mubr.msk.f32.mxu0 %vm658_vm4, %v5836_v20  ;;  %3800 = vmatprep.mubr.msk.f32.mxu1 %vm658_vm4, %v355_v39  ;;  %v4794_v29 = vunpack.i.l.bf16 %v4793_v49  ;;  %v719_v20 = vsel %vm691_vm5, %v686_v10, %v4780_v33  ;;  %v4795_v37 = vunpack.i.h.bf16 %v4793_v49  ;;  %v4194_v24 = vpack.c.bf16 %v1208_v62, %v1207_v61 }
  0xd0   :  { %4186 = vmatpush1.bf16.msra.mxu1 %v4185_v17  ;;  %v687_v53 = vsel %vm658_vm4, %v5418_v16, %v4789_v46  ;;  %v752_v7 = vsel %vm724_vm6, %v719_v20, %v4785_v63  ;;  %v688_v48 = vsel %vm658_vm4, %v5470_v47, %v4790_v38  ;;  %v361_v47 = vsel %vm300_vm3, %v358_v27, %v360_v9  ;;  %v1211_v17 = vld [vmem:[%s7414_s3 + $0x80] sm:$0xff] }
  0xd1   :  { %v4798_v51 = vpop.permute.xlu0 %4797  ;;  %4187 = vmatprep.subr.bf16.mxu1 %v4929_v19  ;;  %v720_v12 = vsel %vm691_vm5, %v687_v53, %v4794_v29  ;;  %v721_v42 = vsel %vm691_vm5, %v688_v48, %v4795_v37  ;;  %v4197_v33 = vpack.c.bf16 %v1210_v55, %v1209_v1  ;;  %v4200_v44 = vpack.c.bf16 %v1212_v25, %v1211_v17 }
  0xd2   :  { %1059 = vmatmul.mubr.f32.gmra.mrb[40].mxu0 %v745_v31  ;;  %1095 = vmatmul.mubr.f32.gmra.mrb[8].mxu1 %v751_v28  ;;  %v429_v8 = vpop.permute.xlu1 %428  ;;  %v4799_v16 = vunpack.i.l.bf16 %v4798_v51  ;;  %v4800_v50 = vunpack.i.h.bf16 %v4798_v51  ;;  %v4203_v0 = vpack.c.bf16 %v1214_v54, %v1213_v21 }
  0xd3   :  { %3795 = vmatprep.mubr.msk.f32.mxu0 %vm658_vm4, %v345_v18  ;;  %3801 = vmatprep.mubr.msk.f32.mxu1 %vm658_vm4, %v357_v14  ;;  %v689_v11 = vsel %vm658_vm4, %v5475_v15, %v429_v8  ;;  %v363_v15 = vsel %vm300_vm3, %v360_v9, %v362_v2  ;;  %v799_v18 = vlaneseq }
  0xd4   :  { %4189 = vmatpush1.bf16.msra.mxu1 %v4188_v35  ;;  %v753_v58 = vsel %vm724_vm6, %v720_v12, %v4799_v16  ;;  %v754_v60 = vsel %vm724_vm6, %v721_v42, %v4800_v50 }
  0xd5   :  { %v526_v13 = vpop.permute.xlu0 %525  ;;  %4190 = vmatprep.subr.bf16.mxu1 %v4929_v19  ;;  %v6049_v46 = vshrl.u32 %v799_v18, 7 }
  0xd6   :  { %1065 = vmatmul.mubr.f32.gmra.mrb[42].mxu0 %v746_v22  ;;  %1101 = vmatmul.mubr.f32.gmra.mrb[10].mxu1 %v752_v7  ;;  %v623_v4 = vpop.permute.xlu1 %622  ;;  %v722_v32 = vsel %vm691_vm5, %v689_v11, %v526_v13 }
  0xd7   :  { %3802 = vmatprep.mubr.msk.f32.mxu1 %vm658_vm4, %v359_v52  ;;  %v755_v41 = vsel %vm724_vm6, %v722_v32, %v623_v4  ;;  %v801_v49 = vsub.s32 0, %v6049_v46  ;;  %v805_v43 = vsub.s32 1, %v6049_v46 }
  0xd8   :  { %4192 = vmatpush1.bf16.msra.mxu1 %v4191_v34 }
  0xd9   :  { %4193 = vmatprep.subr.bf16.mxu1 %v4929_v19  ;;  %v431_v3 = vpop.permute.xlu0 %430  ;;  %v6058_v63 = vrot.slane %v797_v5, %v801_v49  ;;  %v6062_v28 = vrot.slane %v797_v5, %v805_v43 }
  0xda   :  { %1107 = vmatmul.mubr.f32.gmra.mrb[12].mxu1 %v753_v58  ;;  %v690_v39 = vsel %vm658_vm4, %v5506_v59, %v431_v3  ;;  %v528_v6 = vpop.permute.xlu1 %527  ;;  %v366_v59 = vsel %vm300_vm3, %v362_v2, %v301_v56  ;;  %v1215_v56 = vld [vmem:[%s7414_s3 + $0xa0] sm:$0xff] }
  0xdb   :  { %3803 = vmatprep.mubr.msk.f32.mxu1 %vm658_vm4, %v361_v47  ;;  %v723_v40 = vsel %vm691_vm5, %v690_v39, %v528_v6 }
  0xdc   :  { %4195 = vmatpush1.bf16.msra.mxu1 %v4194_v24 }
  0xdd   :  { %4196 = vmatprep.subr.bf16.mxu1 %v4929_v19  ;;  %v625_v10 = vpop.permute.xlu0 %624 }
  0xde   :  { %1113 = vmatmul.mubr.f32.gmra.mrb[14].mxu1 %v754_v60  ;;  %v756_v45 = vsel %vm724_vm6, %v723_v40, %v625_v10 }
  0xdf   :  { %3804 = vmatprep.mubr.msk.f32.mxu1 %vm658_vm4, %v363_v15 }
  0xe0   :  { %4198 = vmatpush1.bf16.msra.mxu1 %v4197_v33 }
  0xe1   :  { %4199 = vmatprep.subr.bf16.mxu1 %v4929_v19 }
  0xe2   :  { %1119 = vmatmul.mubr.f32.gmra.mrb[16].mxu1 %v755_v41 }
  0xe3   :  { %3805 = vmatprep.mubr.msk.f32.mxu1 %vm658_vm4, %v366_v59 }
  0xe4   :  { %4201 = vmatpush1.bf16.msra.mxu1 %v4200_v44 }
  0xe5   :  { %4202 = vmatprep.subr.bf16.mxu1 %v4929_v19 }
  0xe6   :  { %1125 = vmatmul.mubr.f32.gmra.mrb[18].mxu1 %v756_v45 }
  0xe8   :  { %4204 = vmatpush1.bf16.msra.mxu1 %v4203_v0 }
  0xe9   :  { %1353 = vmatprep.subr.mxu1 %v4930_v57 }
  0xec   :  { %1354 = vmatpush1.msra.mxu1 %v1215_v56 }
 0x155   :  { %v940_v27 = vpop.f32.mrb[0].mxu0 }
 0x156   :  { %v941_v29 = vadd.f32 %v940_v27, %v6058_v63  ;;  %v942_v14 = vpop.f32.mrb[1].mxu0 }
 0x157   :  { %v943_v20 = vadd.f32 %v942_v14, %v6062_v28 }
 0x158   :  { %v1131_v31 = vmax.f32 %v941_v29, 0.0 }
 0x159   :  { %v1132_v35 = vmax.f32 %v943_v20, 0.0  ;;  %v946_v30 = vpop.f32.mrb[2].mxu0 }
 0x15a   :  { %v947_v38 = vadd.f32 %v946_v30, %v6058_v63  ;;  %v948_v51 = vpop.f32.mrb[3].mxu0 }
 0x15b   :  { %v949_v53 = vadd.f32 %v948_v51, %v6062_v28  ;;  %3806 = vmatprep.mubr.msk.f32.mxu1 %vm1216_vm7, %v1132_v35  ;;  %3838 = vmatprep.mubr.msk.f32.mxu0 %vm1216_vm7, %v1132_v35 }
 0x15c   :  { %1378 = vmatmul.mubr.f32.vlgmr.msra.gmra.mrb[20].mxu1 %v1131_v31  ;;  %1624 = vmatmul.mubr.f32.vlgmr.msra.gmra.mrb[44].mxu0 %v1131_v31  ;;  %v1133_v23 = vmax.f32 %v947_v38, 0.0 }
 0x15d   :  { %v1134_v26 = vmax.f32 %v949_v53, 0.0  ;;  %v952_v36 = vpop.f32.mrb[4].mxu0 }
 0x15e   :  { %v953_v8 = vadd.f32 %v952_v36, %v6058_v63  ;;  %v954_v16 = vpop.f32.mrb[5].mxu0 }
 0x15f   :  { %v955_v7 = vadd.f32 %v954_v16, %v6062_v28  ;;  %3807 = vmatprep.mubr.msk.f32.mxu1 %vm1216_vm7, %v1134_v26  ;;  %3839 = vmatprep.mubr.msk.f32.mxu0 %vm1216_vm7, %v1134_v26 }
 0x160   :  { %1383 = vmatmul.mubr.f32.gmra.mrb[22].mxu1 %v1133_v23  ;;  %1629 = vmatmul.mubr.f32.gmra.mrb[46].mxu0 %v1133_v23  ;;  %v1135_v12 = vmax.f32 %v953_v8, 0.0 }
 0x161   :  { %v1136_v52 = vmax.f32 %v955_v7, 0.0  ;;  %v958_v37 = vpop.f32.mrb[6].mxu0 }
 0x162   :  { %v959_v9 = vadd.f32 %v958_v37, %v6058_v63  ;;  %v960_v34 = vpop.f32.mrb[7].mxu0 }
 0x163   :  { %v961_v22 = vadd.f32 %v960_v34, %v6062_v28  ;;  %3808 = vmatprep.mubr.msk.f32.mxu1 %vm1216_vm7, %v1136_v52  ;;  %3840 = vmatprep.mubr.msk.f32.mxu0 %vm1216_vm7, %v1136_v52 }
 0x164   :  { %1388 = vmatmul.mubr.f32.gmra.mrb[24].mxu1 %v1135_v12  ;;  %1634 = vmatmul.mubr.f32.gmra.mrb[48].mxu0 %v1135_v12  ;;  %v1137_v61 = vmax.f32 %v959_v9, 0.0 }
 0x165   :  { %v1138_v48 = vmax.f32 %v961_v22, 0.0  ;;  %v964_v13 = vpop.f32.mrb[8].mxu0 }
 0x166   :  { %v965_v62 = vadd.f32 %v964_v13, %v6058_v63  ;;  %v966_v50 = vpop.f32.mrb[9].mxu0 }
 0x167   :  { %v967_v58 = vadd.f32 %v966_v50, %v6062_v28  ;;  %3809 = vmatprep.mubr.msk.f32.mxu1 %vm1216_vm7, %v1138_v48  ;;  %3841 = vmatprep.mubr.msk.f32.mxu0 %vm1216_vm7, %v1138_v48 }
 0x168   :  { %1393 = vmatmul.mubr.f32.gmra.mrb[26].mxu1 %v1137_v61  ;;  %1639 = vmatmul.mubr.f32.gmra.mrb[50].mxu0 %v1137_v61  ;;  %v1139_v42 = vmax.f32 %v965_v62, 0.0 }
 0x169   :  { %v1140_v4 = vmax.f32 %v967_v58, 0.0  ;;  %v970_v47 = vpop.f32.mrb[10].mxu0 }
 0x16a   :  { %v971_v2 = vadd.f32 %v970_v47, %v6058_v63  ;;  %v972_v24 = vpop.f32.mrb[11].mxu0 }
 0x16b   :  { %v973_v11 = vadd.f32 %v972_v24, %v6062_v28  ;;  %3810 = vmatprep.mubr.msk.f32.mxu1 %vm1216_vm7, %v1140_v4  ;;  %3842 = vmatprep.mubr.msk.f32.mxu0 %vm1216_vm7, %v1140_v4 }
 0x16c   :  { %1398 = vmatmul.mubr.f32.gmra.mrb[28].mxu1 %v1139_v42  ;;  %1644 = vmatmul.mubr.f32.gmra.mrb[52].mxu0 %v1139_v42  ;;  %v1141_v3 = vmax.f32 %v971_v2, 0.0 }
 0x16d   :  { %v1142_v1 = vmax.f32 %v973_v11, 0.0  ;;  %v976_v55 = vpop.f32.mrb[12].mxu0 }
 0x16e   :  { %v977_v60 = vadd.f32 %v976_v55, %v6058_v63  ;;  %v978_v32 = vpop.f32.mrb[13].mxu0 }
 0x16f   :  { %v979_v15 = vadd.f32 %v978_v32, %v6062_v28  ;;  %3811 = vmatprep.mubr.msk.f32.mxu1 %vm1216_vm7, %v1142_v1  ;;  %3843 = vmatprep.mubr.msk.f32.mxu0 %vm1216_vm7, %v1142_v1 }
 0x170   :  { %1403 = vmatmul.mubr.f32.gmra.mrb[30].mxu1 %v1141_v3  ;;  %1649 = vmatmul.mubr.f32.gmra.mrb[54].mxu0 %v1141_v3  ;;  %v1143_v6 = vmax.f32 %v977_v60, 0.0 }
 0x171   :  { %v1144_v33 = vmax.f32 %v979_v15, 0.0  ;;  %v982_v39 = vpop.f32.mrb[14].mxu0 }
 0x172   :  { %v983_v17 = vadd.f32 %v982_v39, %v6058_v63  ;;  %v984_v25 = vpop.f32.mrb[15].mxu0 }
 0x173   :  { %v985_v41 = vadd.f32 %v984_v25, %v6062_v28  ;;  %3812 = vmatprep.mubr.msk.f32.mxu1 %vm1216_vm7, %v1144_v33  ;;  %3844 = vmatprep.mubr.msk.f32.mxu0 %vm1216_vm7, %v1144_v33 }
 0x174   :  { %1408 = vmatmul.mubr.f32.gmra.mrb[32].mxu1 %v1143_v6  ;;  %1654 = vmatmul.mubr.f32.gmra.mrb[56].mxu0 %v1143_v6  ;;  %v1145_v59 = vmax.f32 %v983_v17, 0.0 }
 0x175   :  { %v1146_v40 = vmax.f32 %v985_v41, 0.0  ;;  %v988_v10 = vpop.f32.mrb[16].mxu0 }
 0x176   :  { %v989_v44 = vadd.f32 %v988_v10, %v6058_v63  ;;  %v990_v21 = vpop.f32.mrb[17].mxu0 }
 0x177   :  { %v991_v54 = vadd.f32 %v990_v21, %v6062_v28  ;;  %3813 = vmatprep.mubr.msk.f32.mxu1 %vm1216_vm7, %v1146_v40  ;;  %3845 = vmatprep.mubr.msk.f32.mxu0 %vm1216_vm7, %v1146_v40 }
 0x178   :  { %1413 = vmatmul.mubr.f32.gmra.mrb[34].mxu1 %v1145_v59  ;;  %1659 = vmatmul.mubr.f32.gmra.mrb[58].mxu0 %v1145_v59  ;;  %v1147_v56 = vmax.f32 %v989_v44, 0.0 }
 0x179   :  { %v1148_v45 = vmax.f32 %v991_v54, 0.0  ;;  %v994_v0 = vpop.f32.mrb[18].mxu0 }
 0x17a   :  { %v995_v18 = vadd.f32 %v994_v0, %v6058_v63  ;;  %v996_v5 = vpop.f32.mrb[19].mxu0 }
 0x17b   :  { %v997_v27 = vadd.f32 %v996_v5, %v6062_v28  ;;  %3814 = vmatprep.mubr.msk.f32.mxu1 %vm1216_vm7, %v1148_v45  ;;  %3846 = vmatprep.mubr.msk.f32.mxu0 %vm1216_vm7, %v1148_v45 }
 0x17c   :  { %1418 = vmatmul.mubr.f32.gmra.mrb[36].mxu1 %v1147_v56  ;;  %1664 = vmatmul.mubr.f32.gmra.mrb[60].mxu0 %v1147_v56  ;;  %v1149_v20 = vmax.f32 %v995_v18, 0.0 }
 0x17d   :  { %v1150_v29 = vmax.f32 %v997_v27, 0.0  ;;  %v1000_v14 = vpop.f32.mrb[20].mxu0 }
 0x17e   :  { %v1001_v35 = vadd.f32 %v1000_v14, %v6058_v63  ;;  %v1002_v30 = vpop.f32.mrb[21].mxu0 }
 0x17f   :  { %v1003_v31 = vadd.f32 %v1002_v30, %v6062_v28  ;;  %3815 = vmatprep.mubr.msk.f32.mxu1 %vm1216_vm7, %v1150_v29  ;;  %3847 = vmatprep.mubr.msk.f32.mxu0 %vm1216_vm7, %v1150_v29 }
 0x180   :  { %1423 = vmatmul.mubr.f32.gmra.mrb[38].mxu1 %v1149_v20  ;;  %1669 = vmatmul.mubr.f32.gmra.mrb[62].mxu0 %v1149_v20  ;;  %v1151_v53 = vmax.f32 %v1001_v35, 0.0 }
 0x181   :  { %v1152_v38 = vmax.f32 %v1003_v31, 0.0  ;;  %v1006_v51 = vpop.f32.mrb[22].mxu0 }
 0x182   :  { %v1007_v26 = vadd.f32 %v1006_v51, %v6058_v63  ;;  %v1008_v36 = vpop.f32.mrb[23].mxu0 }
 0x183   :  { %v1009_v23 = vadd.f32 %v1008_v36, %v6062_v28  ;;  %3816 = vmatprep.mubr.msk.f32.mxu1 %vm1216_vm7, %v1152_v38  ;;  %3848 = vmatprep.mubr.msk.f32.mxu0 %vm1216_vm7, %v1152_v38 }
 0x184   :  { %1428 = vmatmul.mubr.f32.gmra.mrb[40].mxu1 %v1151_v53  ;;  %1674 = vmatmul.mubr.f32.gmra.mrb[64].mxu0 %v1151_v53  ;;  %v1153_v7 = vmax.f32 %v1007_v26, 0.0 }
 0x185   :  { %v1154_v8 = vmax.f32 %v1009_v23, 0.0  ;;  %v1012_v16 = vpop.f32.mrb[24].mxu0 }
 0x186   :  { %v1013_v52 = vadd.f32 %v1012_v16, %v6058_v63  ;;  %v1014_v37 = vpop.f32.mrb[25].mxu0 }
 0x187   :  { %v1015_v12 = vadd.f32 %v1014_v37, %v6062_v28  ;;  %3817 = vmatprep.mubr.msk.f32.mxu1 %vm1216_vm7, %v1154_v8  ;;  %3849 = vmatprep.mubr.msk.f32.mxu0 %vm1216_vm7, %v1154_v8 }
 0x188   :  { %1433 = vmatmul.mubr.f32.gmra.mrb[42].mxu1 %v1153_v7  ;;  %1679 = vmatmul.mubr.f32.gmra.mrb[66].mxu0 %v1153_v7  ;;  %v1155_v22 = vmax.f32 %v1013_v52, 0.0 }
 0x189   :  { %v1156_v9 = vmax.f32 %v1015_v12, 0.0  ;;  %v1018_v34 = vpop.f32.mrb[26].mxu0 }
 0x18a   :  { %v1019_v48 = vadd.f32 %v1018_v34, %v6058_v63  ;;  %v1020_v13 = vpop.f32.mrb[27].mxu0 }
 0x18b   :  { %v1021_v61 = vadd.f32 %v1020_v13, %v6062_v28  ;;  %3818 = vmatprep.mubr.msk.f32.mxu1 %vm1216_vm7, %v1156_v9  ;;  %3850 = vmatprep.mubr.msk.f32.mxu0 %vm1216_vm7, %v1156_v9 }
 0x18c   :  { %1438 = vmatmul.mubr.f32.gmra.mrb[44].mxu1 %v1155_v22  ;;  %1684 = vmatmul.mubr.f32.gmra.mrb[68].mxu0 %v1155_v22  ;;  %v1157_v58 = vmax.f32 %v1019_v48, 0.0 }
 0x18d   :  { %v1158_v62 = vmax.f32 %v1021_v61, 0.0  ;;  %v1024_v50 = vpop.f32.mrb[28].mxu0 }
 0x18e   :  { %v1025_v4 = vadd.f32 %v1024_v50, %v6058_v63  ;;  %v1026_v47 = vpop.f32.mrb[29].mxu0 }
 0x18f   :  { %v1027_v42 = vadd.f32 %v1026_v47, %v6062_v28  ;;  %3819 = vmatprep.mubr.msk.f32.mxu1 %vm1216_vm7, %v1158_v62  ;;  %3851 = vmatprep.mubr.msk.f32.mxu0 %vm1216_vm7, %v1158_v62 }
 0x190   :  { %1443 = vmatmul.mubr.f32.gmra.mrb[46].mxu1 %v1157_v58  ;;  %1689 = vmatmul.mubr.f32.gmra.mrb[70].mxu0 %v1157_v58  ;;  %v1159_v11 = vmax.f32 %v1025_v4, 0.0 }
 0x191   :  { %v1160_v2 = vmax.f32 %v1027_v42, 0.0  ;;  %v1030_v24 = vpop.f32.mrb[30].mxu0 }
 0x192   :  { %v1031_v1 = vadd.f32 %v1030_v24, %v6058_v63  ;;  %v1032_v55 = vpop.f32.mrb[31].mxu0 }
 0x193   :  { %v1033_v3 = vadd.f32 %v1032_v55, %v6062_v28  ;;  %3820 = vmatprep.mubr.msk.f32.mxu1 %vm1216_vm7, %v1160_v2  ;;  %3852 = vmatprep.mubr.msk.f32.mxu0 %vm1216_vm7, %v1160_v2 }
 0x194   :  { %1448 = vmatmul.mubr.f32.gmra.mrb[48].mxu1 %v1159_v11  ;;  %1694 = vmatmul.mubr.f32.gmra.mrb[72].mxu0 %v1159_v11  ;;  %v1161_v33 = vmax.f32 %v1031_v1, 0.0 }
 0x195   :  { %v1162_v60 = vmax.f32 %v1033_v3, 0.0  ;;  %v1036_v32 = vpop.f32.mrb[32].mxu0  ;;  %v6126_v15 = vpop.f32.mrb[0].mxu1 }
 0x196   :  { %v1037_v39 = vadd.f32 %v1036_v32, %v6058_v63  ;;  %v1038_v6 = vpop.f32.mrb[33].mxu0  ;;  %v1074_v17 = vpop.f32.mrb[1].mxu1  ;;  %v1073_v24 = vadd.f32 %v6126_v15, %v6058_v63 }
 0x197   :  { %v1039_v25 = vadd.f32 %v1038_v6, %v6062_v28  ;;  %3821 = vmatprep.mubr.msk.f32.mxu1 %vm1216_vm7, %v1162_v60  ;;  %3853 = vmatprep.mubr.msk.f32.mxu0 %vm1216_vm7, %v1162_v60  ;;  %v1075_v48 = vadd.f32 %v1074_v17, %v6062_v28 }
 0x198   :  { %1453 = vmatmul.mubr.f32.gmra.mrb[50].mxu1 %v1161_v33  ;;  %1699 = vmatmul.mubr.f32.gmra.mrb[74].mxu0 %v1161_v33  ;;  %v1163_v59 = vmax.f32 %v1037_v39, 0.0  ;;  %v1175_v32 = vmax.f32 %v1073_v24, 0.0  ;;  %v2353_v24 = vld [vmem:[%s7416_s5 + $0x58] sm:$0xff] }
 0x199   :  { %v1164_v41 = vmax.f32 %v1039_v25, 0.0  ;;  %v1042_v40 = vpop.f32.mrb[34].mxu0  ;;  %v6132_v10 = vpop.f32.mrb[2].mxu1  ;;  %v1176_v47 = vmax.f32 %v1075_v48, 0.0 }
 0x19a   :  { %v1043_v44 = vadd.f32 %v1042_v40, %v6058_v63  ;;  %v1044_v21 = vpop.f32.mrb[35].mxu0  ;;  %v1080_v54 = vpop.f32.mrb[3].mxu1  ;;  %v1079_v15 = vadd.f32 %v6132_v10, %v6058_v63 }
 0x19b   :  { %v1045_v45 = vadd.f32 %v1044_v21, %v6062_v28  ;;  %3822 = vmatprep.mubr.msk.f32.mxu1 %vm1216_vm7, %v1164_v41  ;;  %3854 = vmatprep.mubr.msk.f32.mxu0 %vm1216_vm7, %v1164_v41  ;;  %v1081_v55 = vadd.f32 %v1080_v54, %v6062_v28 }
 0x19c   :  { %1458 = vmatmul.mubr.f32.gmra.mrb[52].mxu1 %v1163_v59  ;;  %1704 = vmatmul.mubr.f32.gmra.mrb[76].mxu0 %v1163_v59  ;;  %v1165_v5 = vmax.f32 %v1043_v44, 0.0  ;;  %v1177_v25 = vmax.f32 %v1079_v15, 0.0 }
 0x19d   :  { %v1166_v0 = vmax.f32 %v1045_v45, 0.0  ;;  %v1048_v56 = vpop.f32.mrb[36].mxu0  ;;  %v6138_v18 = vpop.f32.mrb[4].mxu1  ;;  %v1178_v39 = vmax.f32 %v1081_v55, 0.0  ;;  %v2352_v55 = vld [vmem:[%s7416_s5 + $0x50] sm:$0xff] }
 0x19e   :  { %v1049_v27 = vadd.f32 %v1048_v56, %v6058_v63  ;;  %v1050_v29 = vpop.f32.mrb[37].mxu0  ;;  %v1086_v14 = vpop.f32.mrb[5].mxu1  ;;  %v1085_v41 = vadd.f32 %v6138_v18, %v6058_v63 }
 0x19f   :  { %v1051_v20 = vadd.f32 %v1050_v29, %v6062_v28  ;;  %3823 = vmatprep.mubr.msk.f32.mxu1 %vm1216_vm7, %v1166_v0  ;;  %3855 = vmatprep.mubr.msk.f32.mxu0 %vm1216_vm7, %v1166_v0  ;;  %v1087_v3 = vadd.f32 %v1086_v14, %v6062_v28 }
 0x1a0   :  { %1463 = vmatmul.mubr.f32.gmra.mrb[54].mxu1 %v1165_v5  ;;  %1709 = vmatmul.mubr.f32.gmra.mrb[78].mxu0 %v1165_v5  ;;  %v1167_v38 = vmax.f32 %v1049_v27, 0.0  ;;  %v1179_v21 = vmax.f32 %v1085_v41, 0.0 }
 0x1a1   :  { %v1168_v35 = vmax.f32 %v1051_v20, 0.0  ;;  %v1054_v30 = vpop.f32.mrb[38].mxu0  ;;  %v6144_v31 = vpop.f32.mrb[6].mxu1  ;;  %v1180_v6 = vmax.f32 %v1087_v3, 0.0 }
 0x1a2   :  { %v1055_v51 = vadd.f32 %v1054_v30, %v6058_v63  ;;  %v1056_v53 = vpop.f32.mrb[39].mxu0  ;;  %v1092_v26 = vpop.f32.mrb[7].mxu1  ;;  %v1091_v54 = vadd.f32 %v6144_v31, %v6058_v63 }
 0x1a3   :  { %v1057_v36 = vadd.f32 %v1056_v53, %v6062_v28  ;;  %3824 = vmatprep.mubr.msk.f32.mxu1 %vm1216_vm7, %v1168_v35  ;;  %3856 = vmatprep.mubr.msk.f32.mxu0 %vm1216_vm7, %v1168_v35  ;;  %v1093_v59 = vadd.f32 %v1092_v26, %v6062_v28 }
 0x1a4   :  { %1468 = vmatmul.mubr.f32.gmra.mrb[56].mxu1 %v1167_v38  ;;  %1714 = vmatmul.mubr.f32.gmra.mrb[80].mxu0 %v1167_v38  ;;  %v1169_v7 = vmax.f32 %v1055_v51, 0.0  ;;  %v1181_v18 = vmax.f32 %v1091_v54, 0.0 }
 0x1a5   :  { %v1170_v23 = vmax.f32 %v1057_v36, 0.0  ;;  %v1060_v8 = vpop.f32.mrb[40].mxu0  ;;  %v6150_v16 = vpop.f32.mrb[8].mxu1  ;;  %v1182_v0 = vmax.f32 %v1093_v59, 0.0  ;;  %v2360_v59 = vld [vmem:[%s7416_s5 + $0x90] sm:$0xff] }
 0x1a6   :  { %v1061_v52 = vadd.f32 %v1060_v8, %v6058_v63  ;;  %v1062_v37 = vpop.f32.mrb[41].mxu0  ;;  %v1098_v12 = vpop.f32.mrb[9].mxu1  ;;  %v1097_v5 = vadd.f32 %v6150_v16, %v6058_v63 }
 0x1a7   :  { %v1063_v9 = vadd.f32 %v1062_v37, %v6062_v28  ;;  %3825 = vmatprep.mubr.msk.f32.mxu1 %vm1216_vm7, %v1170_v23  ;;  %3857 = vmatprep.mubr.msk.f32.mxu0 %vm1216_vm7, %v1170_v23  ;;  %v1099_v10 = vadd.f32 %v1098_v12, %v6062_v28 }
 0x1a8   :  { %1473 = vmatmul.mubr.f32.gmra.mrb[58].mxu1 %v1169_v7  ;;  %1719 = vmatmul.mubr.f32.gmra.mrb[82].mxu0 %v1169_v7  ;;  %v1171_v61 = vmax.f32 %v1061_v52, 0.0  ;;  %v1183_v14 = vmax.f32 %v1097_v5, 0.0  ;;  %v2369_v5 = vld [vmem:[%s7416_s5 + $0xd8] sm:$0xff] }
 0x1a9   :  { %v1172_v34 = vmax.f32 %v1063_v9, 0.0  ;;  %v1066_v22 = vpop.f32.mrb[42].mxu0  ;;  %v6157_v13 = vpop.f32.mrb[10].mxu1  ;;  %v1184_v56 = vmax.f32 %v1099_v10, 0.0 }
 0x1aa   :  { %v1067_v62 = vadd.f32 %v1066_v22, %v6058_v63  ;;  %v1068_v50 = vpop.f32.mrb[43].mxu0  ;;  %v1104_v58 = vpop.f32.mrb[11].mxu1  ;;  %v1103_v20 = vadd.f32 %v6157_v13, %v6058_v63  ;;  %v2345_v22 = vld [vmem:[%s7416_s5 + $0x18] sm:$0xff]  ;;  %v2344_v13 = vld [vmem:[%s7416_s5 + $0x10] sm:$0xff] }
 0x1ab   :  { %v1069_v4 = vadd.f32 %v1068_v50, %v6062_v28  ;;  %3826 = vmatprep.mubr.msk.f32.mxu1 %vm1216_vm7, %v1172_v34  ;;  %3858 = vmatprep.mubr.msk.f32.mxu0 %vm1216_vm7, %v1172_v34  ;;  %v1105_v27 = vadd.f32 %v1104_v58, %v6062_v28  ;;  %v2343_v34 = vld [vmem:[%s7416_s5 + $0x8] sm:$0xff]  ;;  %v2349_v50 = vld [vmem:[%s7416_s5 + $0x38] sm:$0xff]  ;;  %v2346_v58 = vld [vmem:[%s7416_s5 + $0x20] sm:$0xff] }
 0x1ac   :  { %1478 = vmatmul.mubr.f32.gmra.mrb[60].mxu1 %v1171_v61  ;;  %1724 = vmatmul.mubr.f32.gmra.mrb[84].mxu0 %v1171_v61  ;;  %v1173_v11 = vmax.f32 %v1067_v62, 0.0  ;;  %v1185_v31 = vmax.f32 %v1103_v20, 0.0  ;;  %v4235_v48 = vpack.c.bf16 %v2345_v22, %v2343_v34  ;;  %v2347_v62 = vld [vmem:[%s7416_s5 + $0x28] sm:$0xff]  ;;  %v2380_v34 = vld [vmem:[%s7416_s5 + $0x130] sm:$0xff] }
 0x1ad   :  { %v1174_v42 = vmax.f32 %v1069_v4, 0.0  ;;  %v1108_v2 = vpop.f32.mrb[12].mxu1  ;;  %v1186_v35 = vmax.f32 %v1105_v27, 0.0  ;;  %v4239_v4 = vpack.c.bf16 %v2349_v50, %v2347_v62 }
 0x1ae   :  { %v1110_v1 = vpop.f32.mrb[13].mxu1  ;;  %v1109_v38 = vadd.f32 %v1108_v2, %v6058_v63  ;;  %4236 = vmatprep.subr.bf16.mxu1 %v4235_v48  ;;  %v2351_v2 = vld [vmem:[%s7416_s5 + $0x48] sm:$0xff] }
 0x1af   :  { %3827 = vmatprep.mubr.msk.f32.mxu1 %vm1216_vm7, %v1174_v42  ;;  %3859 = vmatprep.mubr.msk.f32.mxu0 %vm1216_vm7, %v1174_v42  ;;  %v1111_v29 = vadd.f32 %v1110_v1, %v6062_v28  ;;  %v4243_v1 = vpack.c.bf16 %v2353_v24, %v2351_v2  ;;  %v2385_v2 = vld [vmem:[%s7416_s5 + $0x158] sm:$0xff]  ;;  %v2382_v24 = vld [vmem:[%s7416_s5 + $0x140] sm:$0xff] }
 0x1b0   :  { %1483 = vmatmul.mubr.f32.gmra.mrb[62].mxu1 %v1173_v11  ;;  %1729 = vmatmul.mubr.f32.gmra.mrb[86].mxu0 %v1173_v11  ;;  %v1187_v26 = vmax.f32 %v1109_v38, 0.0  ;;  %v2350_v11 = vld [vmem:[%s7416_s5 + $0x40] sm:$0xff] }
 0x1b1   :  { %3828 = vmatprep.mubr.msk.f32.mxu1 %vm1216_vm7, %v1176_v47  ;;  %3860 = vmatprep.mubr.msk.f32.mxu0 %vm1216_vm7, %v1176_v47  ;;  %v1114_v60 = vpop.f32.mrb[14].mxu1  ;;  %v1188_v30 = vmax.f32 %v1111_v29, 0.0  ;;  %v2348_v47 = vld [vmem:[%s7416_s5 + $0x30] sm:$0xff]  ;;  %v4245_v3 = vpack.c.bf16 %v2352_v55, %v2350_v11  ;;  %v2366_v29 = vld [vmem:[%s7416_s5 + $0xc0] sm:$0xff] }
 0x1b2   :  { %v1116_v33 = vpop.f32.mrb[15].mxu1  ;;  %v1115_v36 = vadd.f32 %v1114_v60, %v6058_v63  ;;  %v4241_v42 = vpack.c.bf16 %v2348_v47, %v2346_v58  ;;  %v2355_v60 = vld [vmem:[%s7416_s5 + $0x68] sm:$0xff]  ;;  %v2370_v38 = vld [vmem:[%s7416_s5 + $0xe0] sm:$0xff] }
 0x1b3   :  { %v1117_v51 = vadd.f32 %v1116_v33, %v6062_v28  ;;  %v2354_v33 = vld [vmem:[%s7416_s5 + $0x60] sm:$0xff] }
 0x1b4   :  { %1488 = vmatmul.mubr.f32.gmra.mrb[64].mxu1 %v1175_v32  ;;  %1734 = vmatmul.mubr.f32.gmra.mrb[88].mxu0 %v1175_v32  ;;  %v1189_v7 = vmax.f32 %v1115_v36, 0.0  ;;  %v2357_v32 = vld [vmem:[%s7416_s5 + $0x78] sm:$0xff] }
 0x1b5   :  { %3829 = vmatprep.mubr.msk.f32.mxu1 %vm1216_vm7, %v1178_v39  ;;  %3861 = vmatprep.mubr.msk.f32.mxu0 %vm1216_vm7, %v1178_v39  ;;  %v1120_v17 = vpop.f32.mrb[16].mxu1  ;;  %v1190_v23 = vmax.f32 %v1117_v51, 0.0  ;;  %v4247_v15 = vpack.c.bf16 %v2357_v32, %v2355_v60  ;;  %v2356_v39 = vld [vmem:[%s7416_s5 + $0x70] sm:$0xff]  ;;  %v2377_v36 = vld [vmem:[%s7416_s5 + $0x118] sm:$0xff] }
 0x1b6   :  { %v1122_v40 = vpop.f32.mrb[17].mxu1  ;;  %v1121_v52 = vadd.f32 %v1120_v17, %v6058_v63  ;;  %v2359_v17 = vld [vmem:[%s7416_s5 + $0x88] sm:$0xff]  ;;  %v2372_v51 = vld [vmem:[%s7416_s5 + $0xf0] sm:$0xff] }
 0x1b7   :  { %v1123_v53 = vadd.f32 %v1122_v40, %v6062_v28  ;;  %v2358_v40 = vld [vmem:[%s7416_s5 + $0x80] sm:$0xff] }
 0x1b8   :  { %1493 = vmatmul.mubr.f32.gmra.mrb[66].mxu1 %v1177_v25  ;;  %1739 = vmatmul.mubr.f32.gmra.mrb[90].mxu0 %v1177_v25  ;;  %v1191_v12 = vmax.f32 %v1121_v52, 0.0  ;;  %v2361_v25 = vld [vmem:[%s7416_s5 + $0x98] sm:$0xff]  ;;  %v4253_v10 = vpack.c.bf16 %v2360_v59, %v2358_v40 }
 0x1b9   :  { %3830 = vmatprep.mubr.msk.f32.mxu1 %vm1216_vm7, %v1180_v6  ;;  %3862 = vmatprep.mubr.msk.f32.mxu0 %vm1216_vm7, %v1180_v6  ;;  %v1126_v44 = vpop.f32.mrb[18].mxu1  ;;  %v1192_v8 = vmax.f32 %v1123_v53, 0.0  ;;  %v4249_v6 = vpack.c.bf16 %v2356_v39, %v2354_v33  ;;  %v4251_v41 = vpack.c.bf16 %v2361_v25, %v2359_v17  ;;  %v4265_v53 = vpack.c.bf16 %v2372_v51, %v2370_v38  ;;  %v2387_v39 = vld [vmem:[%s7416_s5 + $0x168] sm:$0xff]  ;;  %v2386_v17 = vld [vmem:[%s7416_s5 + $0x160] sm:$0xff]  ;;  %v2397_v38 = vld [vmem:[%s7416_s5 + $0x1b8] sm:$0xff] }
 0x1ba   :  { %v1128_v45 = vpop.f32.mrb[19].mxu1  ;;  %v1127_v9 = vadd.f32 %v1126_v44, %v6058_v63  ;;  %v2342_v63 = vld [vmem:[%s7416_s5] sm:$0xff]  ;;  %v2363_v44 = vld [vmem:[%s7416_s5 + $0xa8] sm:$0xff] }
 0x1bb   :  { %v1129_v16 = vadd.f32 %v1128_v45, %v6062_v28  ;;  %v4237_v61 = vpack.c.bf16 %v2344_v13, %v2342_v63  ;;  %v2362_v45 = vld [vmem:[%s7416_s5 + $0xa0] sm:$0xff] }
 0x1bc   :  { %1498 = vmatmul.mubr.f32.gmra.mrb[68].mxu1 %v1179_v21  ;;  %1744 = vmatmul.mubr.f32.gmra.mrb[92].mxu0 %v1179_v21  ;;  %v1193_v28 = vmax.f32 %v1127_v9, 0.0  ;;  %v2365_v21 = vld [vmem:[%s7416_s5 + $0xb8] sm:$0xff]  ;;  %v2394_v51 = vld [vmem:[%s7416_s5 + $0x1a0] sm:$0xff] }
 0x1bd   :  { %3831 = vmatprep.mubr.msk.f32.mxu1 %vm1216_vm7, %v1182_v0  ;;  %3863 = vmatprep.mubr.msk.f32.mxu0 %vm1216_vm7, %v1182_v0  ;;  %v1194_v37 = vmax.f32 %v1129_v16, 0.0  ;;  %v4255_v54 = vpack.c.bf16 %v2365_v21, %v2363_v44  ;;  %v2364_v0 = vld [vmem:[%s7416_s5 + $0xb0] sm:$0xff]  ;;  %v2381_v9 = vld [vmem:[%s7416_s5 + $0x138] sm:$0xff] }
 0x1be   :  { %4238 = vmatpush1.bf16.msra.mxu1 %v4237_v61  ;;  %v2376_v16 = vld [vmem:[%s7416_s5 + $0x110] sm:$0xff] }
 0x1bf   :  { %4240 = vmatprep.subr.bf16.mxu1 %v4239_v4 }
 0x1c0   :  { %1503 = vmatmul.mubr.f32.gmra.mrb[70].mxu1 %v1181_v18  ;;  %1749 = vmatmul.mubr.f32.gmra.mrb[94].mxu0 %v1181_v18  ;;  %v2367_v18 = vld [vmem:[%s7416_s5 + $0xc8] sm:$0xff] }
 0x1c1   :  { %3832 = vmatprep.mubr.msk.f32.mxu1 %vm1216_vm7, %v1184_v56  ;;  %3864 = vmatprep.mubr.msk.f32.mxu0 %vm1216_vm7, %v1184_v56  ;;  %v4257_v56 = vpack.c.bf16 %v2364_v0, %v2362_v45  ;;  %v4259_v27 = vpack.c.bf16 %v2369_v5, %v2367_v18  ;;  %v2391_v45 = vld [vmem:[%s7416_s5 + $0x188] sm:$0xff]  ;;  %v2393_v0 = vld [vmem:[%s7416_s5 + $0x198] sm:$0xff]  ;;  %v2392_v18 = vld [vmem:[%s7416_s5 + $0x190] sm:$0xff] }
 0x1c2   :  { %4242 = vmatpush1.bf16.msra.mxu1 %v4241_v42  ;;  %v2383_v42 = vld [vmem:[%s7416_s5 + $0x148] sm:$0xff] }
 0x1c3   :  { %4244 = vmatprep.subr.bf16.mxu1 %v4243_v1  ;;  %v4275_v11 = vpack.c.bf16 %v2385_v2, %v2383_v42  ;;  %v2384_v1 = vld [vmem:[%s7416_s5 + $0x150] sm:$0xff]  ;;  %v2403_v2 = vld [vmem:[%s7416_s5 + $0x1e8] sm:$0xff] }
 0x1c4   :  { %1508 = vmatmul.mubr.f32.gmra.mrb[72].mxu1 %v1183_v14  ;;  %1754 = vmatmul.mubr.f32.gmra.mrb[96].mxu0 %v1183_v14  ;;  %v2368_v14 = vld [vmem:[%s7416_s5 + $0xd0] sm:$0xff]  ;;  %v4277_v60 = vpack.c.bf16 %v2384_v1, %v2382_v24  ;;  %v2405_v24 = vld [vmem:[%s7416_s5 + $0x1f8] sm:$0xff] }
 0x1c5   :  { %3833 = vmatprep.mubr.msk.f32.mxu1 %vm1216_vm7, %v1186_v35  ;;  %3865 = vmatprep.mubr.msk.f32.mxu0 %vm1216_vm7, %v1186_v35  ;;  %v4261_v20 = vpack.c.bf16 %v2368_v14, %v2366_v29  ;;  %v2371_v35 = vld [vmem:[%s7416_s5 + $0xe8] sm:$0xff]  ;;  %v4283_v29 = vpack.c.bf16 %v2393_v0, %v2391_v45 }
 0x1c6   :  { %4246 = vmatpush1.bf16.msra.mxu1 %v4245_v3 }
 0x1c7   :  { %4248 = vmatprep.subr.bf16.mxu1 %v4247_v15 }
 0x1c8   :  { %1513 = vmatmul.mubr.f32.gmra.mrb[74].mxu1 %v1185_v31  ;;  %1759 = vmatmul.mubr.f32.gmra.mrb[98].mxu0 %v1185_v31 }
 0x1c9   :  { %3834 = vmatprep.mubr.msk.f32.mxu1 %vm1216_vm7, %v1188_v30  ;;  %3866 = vmatprep.mubr.msk.f32.mxu0 %vm1216_vm7, %v1188_v30  ;;  %v2373_v30 = vld [vmem:[%s7416_s5 + $0xf8] sm:$0xff] }
 0x1ca   :  { %4250 = vmatpush1.bf16.msra.mxu1 %v4249_v6  ;;  %v4263_v31 = vpack.c.bf16 %v2373_v30, %v2371_v35  ;;  %v2389_v6 = vld [vmem:[%s7416_s5 + $0x178] sm:$0xff] }
 0x1cb   :  { %4252 = vmatprep.subr.bf16.mxu1 %v4251_v41  ;;  %v4279_v25 = vpack.c.bf16 %v2389_v6, %v2387_v39  ;;  %v2388_v41 = vld [vmem:[%s7416_s5 + $0x170] sm:$0xff] }
 0x1cc   :  { %1518 = vmatmul.mubr.f32.gmra.mrb[76].mxu1 %v1187_v26  ;;  %1764 = vmatmul.mubr.f32.gmra.mrb[100].mxu0 %v1187_v26  ;;  %v2375_v26 = vld [vmem:[%s7416_s5 + $0x108] sm:$0xff] }
 0x1cd   :  { %3835 = vmatprep.mubr.msk.f32.mxu1 %vm1216_vm7, %v1190_v23  ;;  %3867 = vmatprep.mubr.msk.f32.mxu0 %vm1216_vm7, %v1190_v23  ;;  %v4267_v23 = vpack.c.bf16 %v2377_v36, %v2375_v26  ;;  %v2396_v26 = vld [vmem:[%s7416_s5 + $0x1b0] sm:$0xff] }
 0x1ce   :  { %4254 = vmatpush1.bf16.msra.mxu1 %v4253_v10  ;;  %v4281_v10 = vpack.c.bf16 %v2388_v41, %v2386_v17 }
 0x1cf   :  { %4256 = vmatprep.subr.bf16.mxu1 %v4255_v54 }
 0x1d0   :  { %1523 = vmatmul.mubr.f32.gmra.mrb[78].mxu1 %v1189_v7  ;;  %1769 = vmatmul.mubr.f32.gmra.mrb[102].mxu0 %v1189_v7  ;;  %v2379_v7 = vld [vmem:[%s7416_s5 + $0x128] sm:$0xff] }
 0x1d1   :  { %3836 = vmatprep.mubr.msk.f32.mxu1 %vm1216_vm7, %v1192_v8  ;;  %3868 = vmatprep.mubr.msk.f32.mxu0 %vm1216_vm7, %v1192_v8  ;;  %v2374_v8 = vld [vmem:[%s7416_s5 + $0x100] sm:$0xff]  ;;  %v4271_v13 = vpack.c.bf16 %v2381_v9, %v2379_v7  ;;  %v2401_v9 = vld [vmem:[%s7416_s5 + $0x1d8] sm:$0xff] }
 0x1d2   :  { %4258 = vmatpush1.bf16.msra.mxu1 %v4257_v56  ;;  %v2390_v56 = vld [vmem:[%s7416_s5 + $0x180] sm:$0xff] }
 0x1d3   :  { %4260 = vmatprep.subr.bf16.mxu1 %v4259_v27  ;;  %v4285_v14 = vpack.c.bf16 %v2392_v18, %v2390_v56 }
 0x1d4   :  { %1528 = vmatmul.mubr.f32.gmra.mrb[80].mxu1 %v1191_v12  ;;  %1774 = vmatmul.mubr.f32.gmra.mrb[104].mxu0 %v1191_v12  ;;  %v4269_v12 = vpack.c.bf16 %v2376_v16, %v2374_v8  ;;  %v4289_v8 = vpack.c.bf16 %v2396_v26, %v2394_v51 }
 0x1d5   :  { %3837 = vmatprep.mubr.msk.f32.mxu1 %vm1216_vm7, %v1194_v37  ;;  %3869 = vmatprep.mubr.msk.f32.mxu0 %vm1216_vm7, %v1194_v37 }
 0x1d6   :  { %4262 = vmatpush1.bf16.msra.mxu1 %v4261_v20 }
 0x1d7   :  { %4264 = vmatprep.subr.bf16.mxu1 %v4263_v31  ;;  %v2395_v31 = vld [vmem:[%s7416_s5 + $0x1a8] sm:$0xff] }
 0x1d8   :  { %1533 = vmatmul.mubr.f32.gmra.mrb[82].mxu1 %v1193_v28  ;;  %1779 = vmatmul.mubr.f32.gmra.mrb[106].mxu0 %v1193_v28  ;;  %v2378_v28 = vld [vmem:[%s7416_s5 + $0x120] sm:$0xff] }
 0x1d9   :  { %v4273_v61 = vpack.c.bf16 %v2380_v34, %v2378_v28 }
 0x1da   :  { %4266 = vmatpush1.bf16.msra.mxu1 %v4265_v53  ;;  %v4287_v53 = vpack.c.bf16 %v2397_v38, %v2395_v31 }
 0x1db   :  { %4268 = vmatprep.subr.bf16.mxu1 %v4267_v23 }
 0x1de   :  { %4270 = vmatpush1.bf16.msra.mxu1 %v4269_v12  ;;  %v2399_v12 = vld [vmem:[%s7416_s5 + $0x1c8] sm:$0xff] }
 0x1df   :  { %4272 = vmatprep.subr.bf16.mxu1 %v4271_v13  ;;  %v2400_v13 = vld [vmem:[%s7416_s5 + $0x1d0] sm:$0xff] }
 0x1e2   :  { %4274 = vmatpush1.bf16.msra.mxu1 %v4273_v61 }
 0x1e3   :  { %4276 = vmatprep.subr.bf16.mxu1 %v4275_v11 }
 0x1e6   :  { %4278 = vmatpush1.bf16.msra.mxu1 %v4277_v60  ;;  %v2402_v60 = vld [vmem:[%s7416_s5 + $0x1e0] sm:$0xff] }
 0x1e7   :  { %4280 = vmatprep.subr.bf16.mxu1 %v4279_v25 }
 0x1ea   :  { %4282 = vmatpush1.bf16.msra.mxu1 %v4281_v10 }
 0x1eb   :  { %4284 = vmatprep.subr.bf16.mxu1 %v4283_v29 }
 0x1ee   :  { %4286 = vmatpush1.bf16.msra.mxu1 %v4285_v14 }
 0x1ef   :  { %4288 = vmatprep.subr.bf16.mxu1 %v4287_v53 }
 0x1f2   :  { %4290 = vmatpush1.bf16.msra.mxu1 %v4289_v8 }
 0x22f   :  { %v1379_v52 = vpop.f32.mrb[20].mxu1  ;;  %v1625_v37 = vpop.f32.mrb[44].mxu0 }
 0x230   :  { %v1784_v22 = vmax.f32 %v1379_v52, %v1625_v37  ;;  %v1381_v63 = vpop.f32.mrb[21].mxu1  ;;  %v1627_v48 = vpop.f32.mrb[45].mxu0 }
 0x231   :  { %v4291_v63 = vpack.c.bf16 %v2401_v9, %v2399_v12  ;;  %v2398_v48 = vld [vmem:[%s7416_s5 + $0x1c0] sm:$0xff] }
 0x232   :  { %1817 = vst.msk [vmem:[#allocation2] sm:$0xff] %vm1816_vm8, %v1784_v22 }
 0x233   :  { %v1384_v62 = vpop.f32.mrb[22].mxu1  ;;  %v1630_v50 = vpop.f32.mrb[46].mxu0  ;;  %4292 = vmatprep.subr.bf16.mxu1 %v4291_v63 }
 0x234   :  { %v1785_v58 = vmax.f32 %v1384_v62, %v1630_v50  ;;  %v1386_v4 = vpop.f32.mrb[23].mxu1  ;;  %v1632_v47 = vpop.f32.mrb[47].mxu0 }
 0x235   :  { %v4293_v47 = vpack.c.bf16 %v2400_v13, %v2398_v48 }
 0x236   :  { %1818 = vst.msk [vmem:[#allocation2 + $0x8] sm:$0xff] %vm1816_vm8, %v1785_v58 }
 0x237   :  { %v1389_v55 = vpop.f32.mrb[24].mxu1  ;;  %v1635_v3 = vpop.f32.mrb[48].mxu0  ;;  %4294 = vmatpush1.bf16.msra.mxu1 %v4293_v47 }
 0x238   :  { %v1786_v32 = vmax.f32 %v1389_v55, %v1635_v3  ;;  %v1391_v15 = vpop.f32.mrb[25].mxu1  ;;  %v1637_v33 = vpop.f32.mrb[49].mxu0  ;;  %v4295_v3 = vpack.c.bf16 %v2405_v24, %v2403_v2 }
 0x23a   :  { %1819 = vst.msk [vmem:[#allocation2 + $0x10] sm:$0xff] %vm1816_vm8, %v1786_v32  ;;  %v2404_v32 = vld [vmem:[%s7416_s5 + $0x1f0] sm:$0xff]  ;;  %4296 = vmatprep.subr.bf16.mxu1 %v4295_v3 }
 0x23b   :  { %v1394_v40 = vpop.f32.mrb[26].mxu1  ;;  %v1640_v59 = vpop.f32.mrb[50].mxu0  ;;  %v4297_v6 = vpack.c.bf16 %v2404_v32, %v2402_v60 }
 0x23c   :  { %v1787_v44 = vmax.f32 %v1394_v40, %v1640_v59  ;;  %v1396_v21 = vpop.f32.mrb[27].mxu1  ;;  %v1642_v54 = vpop.f32.mrb[51].mxu0 }
 0x23d   :  { %v1849_v58 = vld [vmem:[#allocation2] ss:$2 sm:$0xff]  ;;  %v1881_v4 = vld [vmem:[#allocation2 + $0x1] ss:$2 sm:$0xff]  ;;  %4298 = vmatpush1.bf16.msra.mxu1 %v4297_v6 }
 0x23e   :  { %1820 = vst.msk [vmem:[#allocation2 + $0x18] sm:$0xff] %vm1816_vm8, %v1787_v44  ;;  %v6405_v55 = vmax.f32 %v1849_v58, %v1881_v4 }
 0x23f   :  { %v1399_v5 = vpop.f32.mrb[28].mxu1  ;;  %v1645_v27 = vpop.f32.mrb[52].mxu0 }
 0x240   :  { %v1788_v20 = vmax.f32 %v1399_v5, %v1645_v27  ;;  %v1401_v35 = vpop.f32.mrb[29].mxu1  ;;  %v1647_v30 = vpop.f32.mrb[53].mxu0  ;;  %v1978_v21 = vrot.slane %v6405_v55, 2  ;;  %v1944_v54 = vrot.slane %v6405_v55, 1  ;;  %v2012_v8 = vrot.slane %v6405_v55, 3 }
 0x242   :  { %1821 = vst.msk [vmem:[#allocation2 + $0x20] sm:$0xff] %vm1816_vm8, %v1788_v20 }
 0x243   :  { %v1404_v36 = vpop.f32.mrb[30].mxu1  ;;  %v1650_v23 = vpop.f32.mrb[54].mxu0 }
 0x244   :  { %v1789_v16 = vmax.f32 %v1404_v36, %v1650_v23  ;;  %v1406_v7 = vpop.f32.mrb[31].mxu1  ;;  %v1652_v52 = vpop.f32.mrb[55].mxu0 }
 0x245   :  { %v1851_v37 = vld [vmem:[#allocation2 + $0x10] ss:$2 sm:$0xff]  ;;  %v1883_v22 = vld [vmem:[#allocation2 + $0x11] ss:$2 sm:$0xff] }
 0x246   :  { %1822 = vst.msk [vmem:[#allocation2 + $0x28] sm:$0xff] %vm1816_vm8, %v1789_v16  ;;  %v6397_v42 = vmax.f32 %v1851_v37, %v1883_v22 }
 0x247   :  { %v1409_v28 = vpop.f32.mrb[32].mxu1  ;;  %v1655_v34 = vpop.f32.mrb[56].mxu0 }
 0x248   :  { %v1790_v61 = vmax.f32 %v1409_v28, %v1655_v34  ;;  %v1411_v62 = vpop.f32.mrb[33].mxu1  ;;  %v1657_v50 = vpop.f32.mrb[57].mxu0  ;;  %v1979_v40 = vrot.slane %v6397_v42, 2  ;;  %v1945_v59 = vrot.slane %v6397_v42, 1  ;;  %v2013_v29 = vrot.slane %v6397_v42, 3 }
 0x24a   :  { %1823 = vst.msk [vmem:[#allocation2 + $0x30] sm:$0xff] %vm1816_vm8, %v1790_v61  ;;  %v1980_v14 = vsel %vm166_vm2, %v1978_v21, %v1979_v40  ;;  %v1946_v35 = vsel %vm99_vm0, %v1944_v54, %v1945_v59  ;;  %v2014_v7 = vsel %vm233_vm1, %v2012_v8, %v2013_v29 }
 0x24b   :  { %v1414_v11 = vpop.f32.mrb[34].mxu1  ;;  %v1660_v1 = vpop.f32.mrb[58].mxu0 }
 0x24c   :  { %v1791_v15 = vmax.f32 %v1414_v11, %v1660_v1  ;;  %v1416_v33 = vpop.f32.mrb[35].mxu1  ;;  %v1662_v39 = vpop.f32.mrb[59].mxu0 }
 0x24d   :  { %v1853_v17 = vld [vmem:[#allocation2 + $0x20] ss:$2 sm:$0xff]  ;;  %v1885_v25 = vld [vmem:[#allocation2 + $0x21] ss:$2 sm:$0xff] }
 0x24e   :  { %1824 = vst.msk [vmem:[#allocation2 + $0x38] sm:$0xff] %vm1816_vm8, %v1791_v15  ;;  %v6414_v41 = vmax.f32 %v1853_v17, %v1885_v25 }
 0x24f   :  { %v1419_v10 = vpop.f32.mrb[36].mxu1  ;;  %v1665_v44 = vpop.f32.mrb[60].mxu0 }
 0x250   :  { %v1792_v45 = vmax.f32 %v1419_v10, %v1665_v44  ;;  %v1421_v0 = vpop.f32.mrb[37].mxu1  ;;  %v1667_v56 = vpop.f32.mrb[61].mxu0  ;;  %v1981_v18 = vrot.slane %v6414_v41, 2  ;;  %v1947_v5 = vrot.slane %v6414_v41, 1  ;;  %v2015_v27 = vrot.slane %v6414_v41, 3 }
 0x252   :  { %1825 = vst.msk [vmem:[#allocation2 + $0x40] sm:$0xff] %vm1816_vm8, %v1792_v45  ;;  %v1982_v20 = vsel %vm166_vm2, %v1979_v40, %v1981_v18  ;;  %v1948_v30 = vsel %vm99_vm0, %v1945_v59, %v1947_v5  ;;  %v2016_v16 = vsel %vm233_vm1, %v2013_v29, %v2015_v27 }
 0x253   :  { %v1424_v31 = vpop.f32.mrb[38].mxu1  ;;  %v1670_v38 = vpop.f32.mrb[62].mxu0  ;;  %v4806_v51 = vpack.i.bf16 %v1982_v20, %v1980_v14  ;;  %v4801_v53 = vpack.i.bf16 %v1948_v30, %v1946_v35  ;;  %v4811_v12 = vpack.i.bf16 %v2016_v16, %v2014_v7 }
 0x254   :  { %v1793_v26 = vmax.f32 %v1424_v31, %v1670_v38  ;;  %v1426_v36 = vpop.f32.mrb[39].mxu1  ;;  %v1672_v23 = vpop.f32.mrb[63].mxu0 }
 0x255   :  { %4807 = vrot.lane.b32.xlu0 %v4806_v51, %s4931_s24  ;;  %4802 = vrot.lane.b32.xlu1 %v4801_v53, %s4932_s25  ;;  %v1855_v9 = vld [vmem:[#allocation2 + $0x30] ss:$2 sm:$0xff]  ;;  %v1887_v28 = vld [vmem:[#allocation2 + $0x31] ss:$2 sm:$0xff] }
 0x256   :  { %1826 = vst.msk [vmem:[#allocation2 + $0x48] sm:$0xff] %vm1816_vm8, %v1793_v26  ;;  %v6445_v48 = vmax.f32 %v1855_v9, %v1887_v28 }
 0x257   :  { %v1429_v52 = vpop.f32.mrb[40].mxu1  ;;  %v1675_v37 = vpop.f32.mrb[64].mxu0 }
 0x258   :  { %v1794_v34 = vmax.f32 %v1429_v52, %v1675_v37  ;;  %v1431_v22 = vpop.f32.mrb[41].mxu1  ;;  %v1677_v63 = vpop.f32.mrb[65].mxu0  ;;  %v1983_v24 = vrot.slane %v6445_v48, 2  ;;  %v1949_v11 = vrot.slane %v6445_v48, 1  ;;  %v2017_v17 = vrot.slane %v6445_v48, 3 }
 0x259   :  { %4812 = vrot.lane.b32.xlu1 %v4811_v12, %s4933_s26 }
 0x25a   :  { %1827 = vst.msk [vmem:[#allocation2 + $0x50] sm:$0xff] %vm1816_vm8, %v1794_v34  ;;  %v1984_v25 = vsel %vm166_vm2, %v1981_v18, %v1983_v24  ;;  %v1950_v59 = vsel %vm99_vm0, %v1947_v5, %v1949_v11  ;;  %v2018_v18 = vsel %vm233_vm1, %v2015_v27, %v2017_v17 }
 0x25b   :  { %v1434_v13 = vpop.f32.mrb[42].mxu1  ;;  %v1680_v61 = vpop.f32.mrb[66].mxu0 }
 0x25c   :  { %v1795_v62 = vmax.f32 %v1434_v13, %v1680_v61  ;;  %v1436_v50 = vpop.f32.mrb[43].mxu1  ;;  %v1682_v58 = vpop.f32.mrb[67].mxu0 }
 0x25d   :  { %v1857_v4 = vld [vmem:[#allocation2 + $0x40] ss:$2 sm:$0xff]  ;;  %v1889_v47 = vld [vmem:[#allocation2 + $0x41] ss:$2 sm:$0xff] }
 0x25e   :  { %1828 = vst.msk [vmem:[#allocation2 + $0x58] sm:$0xff] %vm1816_vm8, %v1795_v62  ;;  %v6448_v2 = vmax.f32 %v1857_v4, %v1889_v47 }
 0x25f   :  { %v1439_v1 = vpop.f32.mrb[44].mxu1  ;;  %v1685_v3 = vpop.f32.mrb[68].mxu0 }
 0x260   :  { %v1796_v60 = vmax.f32 %v1439_v1, %v1685_v3  ;;  %v1441_v32 = vpop.f32.mrb[45].mxu1  ;;  %v1687_v15 = vpop.f32.mrb[69].mxu0  ;;  %v1985_v33 = vrot.slane %v6448_v2, 2  ;;  %v1951_v39 = vrot.slane %v6448_v2, 1  ;;  %v2019_v6 = vrot.slane %v6448_v2, 3 }
 0x262   :  { %1829 = vst.msk [vmem:[#allocation2 + $0x60] sm:$0xff] %vm1816_vm8, %v1796_v60  ;;  %v1986_v40 = vsel %vm166_vm2, %v1983_v24, %v1985_v33  ;;  %v1952_v10 = vsel %vm99_vm0, %v1949_v11, %v1951_v39  ;;  %v2020_v35 = vsel %vm233_vm1, %v2017_v17, %v2019_v6 }
 0x263   :  { %v1444_v44 = vpop.f32.mrb[46].mxu1  ;;  %v1690_v45 = vpop.f32.mrb[70].mxu0  ;;  %v4821_v0 = vpack.i.bf16 %v1986_v40, %v1984_v25  ;;  %v4816_v56 = vpack.i.bf16 %v1952_v10, %v1950_v59  ;;  %v4826_v31 = vpack.i.bf16 %v2020_v35, %v2018_v18 }
 0x264   :  { %v1797_v29 = vmax.f32 %v1444_v44, %v1690_v45  ;;  %v1446_v14 = vpop.f32.mrb[47].mxu1  ;;  %v1692_v20 = vpop.f32.mrb[71].mxu0 }
 0x265   :  { %4822 = vrot.lane.b32.xlu1 %v4821_v0, %s4931_s24  ;;  %4817 = vrot.lane.b32.xlu0 %v4816_v56, %s4932_s25  ;;  %v1859_v38 = vld [vmem:[#allocation2 + $0x50] ss:$2 sm:$0xff]  ;;  %v1891_v51 = vld [vmem:[#allocation2 + $0x51] ss:$2 sm:$0xff] }
 0x266   :  { %1830 = vst.msk [vmem:[#allocation2 + $0x68] sm:$0xff] %vm1816_vm8, %v1797_v29  ;;  %v6472_v23 = vmax.f32 %v1859_v38, %v1891_v51 }
 0x267   :  { %v1449_v5 = vpop.f32.mrb[48].mxu1  ;;  %v1695_v30 = vpop.f32.mrb[72].mxu0 }
 0x268   :  { %v1798_v53 = vmax.f32 %v1449_v5, %v1695_v30  ;;  %v1451_v26 = vpop.f32.mrb[49].mxu1  ;;  %v1697_v36 = vpop.f32.mrb[73].mxu0  ;;  %v1987_v34 = vrot.slane %v6472_v23, 2  ;;  %v1953_v22 = vrot.slane %v6472_v23, 1  ;;  %v2021_v24 = vrot.slane %v6472_v23, 3 }
 0x269   :  { %4827 = vrot.lane.b32.xlu0 %v4826_v31, %s4933_s26 }
 0x26a   :  { %1831 = vst.msk [vmem:[#allocation2 + $0x70] sm:$0xff] %vm1816_vm8, %v1798_v53  ;;  %v1988_v11 = vsel %vm166_vm2, %v1985_v33, %v1987_v34  ;;  %v1954_v3 = vsel %vm99_vm0, %v1951_v39, %v1953_v22  ;;  %v2022_v33 = vsel %vm233_vm1, %v2019_v6, %v2021_v24 }
 0x26b   :  { %v1454_v16 = vpop.f32.mrb[50].mxu1  ;;  %v1700_v7 = vpop.f32.mrb[74].mxu0 }
 0x26c   :  { %v1799_v52 = vmax.f32 %v1454_v16, %v1700_v7  ;;  %v1456_v37 = vpop.f32.mrb[51].mxu1  ;;  %v1702_v12 = vpop.f32.mrb[75].mxu0 }
 0x26d   :  { %v1861_v27 = vld [vmem:[#allocation2 + $0x60] ss:$2 sm:$0xff]  ;;  %v1893_v9 = vld [vmem:[#allocation2 + $0x61] ss:$2 sm:$0xff]  ;;  %v2409_v12 = vld [vmem:[%s7416_s5 + $0x218] sm:$0xff] }
 0x26e   :  { %1832 = vst.msk [vmem:[#allocation2 + $0x78] sm:$0xff] %vm1816_vm8, %v1799_v52  ;;  %v6475_v28 = vmax.f32 %v1861_v27, %v1893_v9  ;;  %v2407_v37 = vld [vmem:[%s7416_s5 + $0x208] sm:$0xff] }
 0x26f   :  { %v1459_v63 = vpop.f32.mrb[52].mxu1  ;;  %v1705_v13 = vpop.f32.mrb[76].mxu0 }
 0x270   :  { %v1800_v61 = vmax.f32 %v1459_v63, %v1705_v13  ;;  %v1461_v62 = vpop.f32.mrb[53].mxu1  ;;  %v1707_v50 = vpop.f32.mrb[77].mxu0  ;;  %v1989_v58 = vrot.slane %v6475_v28, 2  ;;  %v1955_v4 = vrot.slane %v6475_v28, 1  ;;  %v2023_v47 = vrot.slane %v6475_v28, 3 }
 0x271   :  { %v4299_v62 = vpack.c.bf16 %v2409_v12, %v2407_v37 }
 0x272   :  { %1833 = vst.msk [vmem:[#allocation2 + $0x80] sm:$0xff] %vm1816_vm8, %v1800_v61  ;;  %v1990_v1 = vsel %vm166_vm2, %v1987_v34, %v1989_v58  ;;  %v1956_v60 = vsel %vm99_vm0, %v1953_v22, %v1955_v4  ;;  %v2024_v44 = vsel %vm233_vm1, %v2021_v24, %v2023_v47 }
 0x273   :  { %v1464_v32 = vpop.f32.mrb[54].mxu1  ;;  %v1710_v15 = vpop.f32.mrb[78].mxu0  ;;  %v4836_v17 = vpack.i.bf16 %v1990_v1, %v1988_v11  ;;  %v4831_v25 = vpack.i.bf16 %v1956_v60, %v1954_v3  ;;  %v4841_v0 = vpack.i.bf16 %v2024_v44, %v2022_v33  ;;  %4300 = vmatprep.subr.bf16.mxu1 %v4299_v62 }
 0x274   :  { %v1801_v40 = vmax.f32 %v1464_v32, %v1710_v15  ;;  %v1466_v59 = vpop.f32.mrb[55].mxu1  ;;  %v1712_v10 = vpop.f32.mrb[79].mxu0 }
 0x275   :  { %4837 = vrot.lane.b32.xlu0 %v4836_v17, %s4931_s24  ;;  %4832 = vrot.lane.b32.xlu1 %v4831_v25, %s4932_s25  ;;  %v1863_v56 = vld [vmem:[#allocation2 + $0x70] ss:$2 sm:$0xff]  ;;  %v1895_v29 = vld [vmem:[#allocation2 + $0x71] ss:$2 sm:$0xff] }
 0x276   :  { %1834 = vst.msk [vmem:[#allocation2 + $0x88] sm:$0xff] %vm1816_vm8, %v1801_v40  ;;  %v6499_v18 = vmax.f32 %v1863_v56, %v1895_v29 }
 0x277   :  { %v1469_v39 = vpop.f32.mrb[56].mxu1  ;;  %v1715_v45 = vpop.f32.mrb[80].mxu0 }
 0x278   :  { %v1802_v14 = vmax.f32 %v1469_v39, %v1715_v45  ;;  %v1471_v20 = vpop.f32.mrb[57].mxu1  ;;  %v1717_v35 = vpop.f32.mrb[81].mxu0  ;;  %v1991_v36 = vrot.slane %v6499_v18, 2  ;;  %v1957_v16 = vrot.slane %v6499_v18, 1  ;;  %v2025_v61 = vrot.slane %v6499_v18, 3 }
 0x279   :  { %4842 = vrot.lane.b32.xlu1 %v4841_v0, %s4933_s26 }
 0x27a   :  { %1835 = vst.msk [vmem:[#allocation2 + $0x90] sm:$0xff] %vm1816_vm8, %v1802_v14  ;;  %v1992_v50 = vsel %vm166_vm2, %v1989_v58, %v1991_v36  ;;  %v1958_v11 = vsel %vm99_vm0, %v1955_v4, %v1957_v16  ;;  %v2026_v58 = vsel %vm233_vm1, %v2023_v47, %v2025_v61 }
 0x27b   :  { %v1474_v5 = vpop.f32.mrb[58].mxu1  ;;  %v1720_v30 = vpop.f32.mrb[82].mxu0 }
 0x27c   :  { %v1803_v31 = vmax.f32 %v1474_v5, %v1720_v30  ;;  %v1476_v38 = vpop.f32.mrb[59].mxu1  ;;  %v1722_v51 = vpop.f32.mrb[83].mxu0 }
 0x27d   :  { %v1865_v6 = vld [vmem:[#allocation2 + $0x80] ss:$2 sm:$0xff]  ;;  %v1897_v53 = vld [vmem:[#allocation2 + $0x81] ss:$2 sm:$0xff] }
 0x27e   :  { %1836 = vst.msk [vmem:[#allocation2 + $0x98] sm:$0xff] %vm1816_vm8, %v1803_v31  ;;  %v6502_v26 = vmax.f32 %v1865_v6, %v1897_v53 }
 0x27f   :  { %v1479_v7 = vpop.f32.mrb[60].mxu1  ;;  %v1725_v52 = vpop.f32.mrb[84].mxu0 }
 0x280   :  { %v1804_v27 = vmax.f32 %v1479_v7, %v1725_v52  ;;  %v1481_v9 = vpop.f32.mrb[61].mxu1  ;;  %v1727_v34 = vpop.f32.mrb[85].mxu0  ;;  %v1993_v22 = vrot.slane %v6502_v26, 2  ;;  %v1959_v63 = vrot.slane %v6502_v26, 1  ;;  %v2027_v13 = vrot.slane %v6502_v26, 3 }
 0x282   :  { %1837 = vst.msk [vmem:[#allocation2 + $0xa0] sm:$0xff] %vm1816_vm8, %v1804_v27  ;;  %v1994_v24 = vsel %vm166_vm2, %v1991_v36, %v1993_v22  ;;  %v1960_v1 = vsel %vm99_vm0, %v1957_v16, %v1959_v63  ;;  %v2028_v59 = vsel %vm233_vm1, %v2025_v61, %v2027_v13 }
 0x283   :  { %v1484_v3 = vpop.f32.mrb[62].mxu1  ;;  %v1730_v60 = vpop.f32.mrb[86].mxu0  ;;  %v4851_v32 = vpack.i.bf16 %v1994_v24, %v1992_v50  ;;  %v4846_v15 = vpack.i.bf16 %v1960_v1, %v1958_v11  ;;  %v4856_v44 = vpack.i.bf16 %v2028_v59, %v2026_v58 }
 0x284   :  { %v1805_v17 = vmax.f32 %v1484_v3, %v1730_v60  ;;  %v1486_v25 = vpop.f32.mrb[63].mxu1  ;;  %v1732_v40 = vpop.f32.mrb[87].mxu0 }
 0x285   :  { %4852 = vrot.lane.b32.xlu1 %v4851_v32, %s4931_s24  ;;  %4847 = vrot.lane.b32.xlu0 %v4846_v15, %s4932_s25  ;;  %v1867_v33 = vld [vmem:[#allocation2 + $0x90] ss:$2 sm:$0xff]  ;;  %v1899_v39 = vld [vmem:[#allocation2 + $0x91] ss:$2 sm:$0xff] }
 0x286   :  { %1838 = vst.msk [vmem:[#allocation2 + $0xa8] sm:$0xff] %vm1816_vm8, %v1805_v17  ;;  %v6532_v29 = vmax.f32 %v1867_v33, %v1899_v39 }
 0x287   :  { %v1489_v4 = vpop.f32.mrb[64].mxu1  ;;  %v1735_v10 = vpop.f32.mrb[88].mxu0 }
 0x288   :  { %v1806_v45 = vmax.f32 %v1489_v4, %v1735_v10  ;;  %v1491_v0 = vpop.f32.mrb[65].mxu1  ;;  %v1737_v56 = vpop.f32.mrb[89].mxu0  ;;  %v1995_v51 = vrot.slane %v6532_v29, 2  ;;  %v1961_v6 = vrot.slane %v6532_v29, 1  ;;  %v2029_v9 = vrot.slane %v6532_v29, 3 }
 0x289   :  { %4857 = vrot.lane.b32.xlu0 %v4856_v44, %s4933_s26 }
 0x28a   :  { %1839 = vst.msk [vmem:[#allocation2 + $0xb0] sm:$0xff] %vm1816_vm8, %v1806_v45  ;;  %v1996_v34 = vsel %vm166_vm2, %v1993_v22, %v1995_v51  ;;  %v1962_v62 = vsel %vm99_vm0, %v1959_v63, %v1961_v6  ;;  %v2030_v22 = vsel %vm233_vm1, %v2027_v13, %v2029_v9 }
 0x28b   :  { %v1494_v14 = vpop.f32.mrb[66].mxu1  ;;  %v1740_v20 = vpop.f32.mrb[90].mxu0 }
 0x28c   :  { %v1807_v35 = vmax.f32 %v1494_v14, %v1740_v20  ;;  %v1496_v5 = vpop.f32.mrb[67].mxu1  ;;  %v1742_v30 = vpop.f32.mrb[91].mxu0 }
 0x28d   :  { %v1869_v47 = vld [vmem:[#allocation2 + $0xa0] ss:$2 sm:$0xff]  ;;  %v1901_v31 = vld [vmem:[#allocation2 + $0xa1] ss:$2 sm:$0xff] }
 0x28e   :  { %1840 = vst.msk [vmem:[#allocation2 + $0xb8] sm:$0xff] %vm1816_vm8, %v1807_v35  ;;  %v6535_v38 = vmax.f32 %v1869_v47, %v1901_v31 }
 0x28f   :  { %v1499_v53 = vpop.f32.mrb[68].mxu1  ;;  %v1745_v36 = vpop.f32.mrb[92].mxu0 }
 0x290   :  { %v1808_v16 = vmax.f32 %v1499_v53, %v1745_v36  ;;  %v1501_v7 = vpop.f32.mrb[69].mxu1  ;;  %v1747_v52 = vpop.f32.mrb[93].mxu0  ;;  %v1997_v37 = vrot.slane %v6535_v38, 2  ;;  %v1963_v12 = vrot.slane %v6535_v38, 1  ;;  %v2031_v27 = vrot.slane %v6535_v38, 3 }
 0x292   :  { %1841 = vst.msk [vmem:[#allocation2 + $0xc0] sm:$0xff] %vm1816_vm8, %v1808_v16  ;;  %v1998_v61 = vsel %vm166_vm2, %v1995_v51, %v1997_v37  ;;  %v1964_v50 = vsel %vm99_vm0, %v1961_v6, %v1963_v12  ;;  %v2032_v17 = vsel %vm233_vm1, %v2029_v9, %v2031_v27 }
 0x293   :  { %v1504_v24 = vpop.f32.mrb[70].mxu1  ;;  %v1750_v11 = vpop.f32.mrb[94].mxu0  ;;  %v4866_v1 = vpack.i.bf16 %v1998_v61, %v1996_v34  ;;  %v4861_v3 = vpack.i.bf16 %v1964_v50, %v1962_v62  ;;  %v4871_v40 = vpack.i.bf16 %v2032_v17, %v2030_v22 }
 0x294   :  { %v1809_v60 = vmax.f32 %v1504_v24, %v1750_v11  ;;  %v1506_v32 = vpop.f32.mrb[71].mxu1  ;;  %v1752_v15 = vpop.f32.mrb[95].mxu0 }
 0x295   :  { %4867 = vrot.lane.b32.xlu0 %v4866_v1, %s4931_s24  ;;  %4862 = vrot.lane.b32.xlu1 %v4861_v3, %s4932_s25  ;;  %v1871_v59 = vld [vmem:[#allocation2 + $0xb0] ss:$2 sm:$0xff]  ;;  %v1903_v58 = vld [vmem:[#allocation2 + $0xb1] ss:$2 sm:$0xff] }
 0x296   :  { %1842 = vst.msk [vmem:[#allocation2 + $0xc8] sm:$0xff] %vm1816_vm8, %v1809_v60  ;;  %v6559_v33 = vmax.f32 %v1871_v59, %v1903_v58 }
 0x297   :  { %v1509_v63 = vpop.f32.mrb[72].mxu1  ;;  %v1755_v25 = vpop.f32.mrb[96].mxu0 }
 0x298   :  { %v1810_v4 = vmax.f32 %v1509_v63, %v1755_v25  ;;  %v1511_v10 = vpop.f32.mrb[73].mxu1  ;;  %v1757_v44 = vpop.f32.mrb[97].mxu0  ;;  %v1999_v5 = vrot.slane %v6559_v33, 2  ;;  %v1965_v30 = vrot.slane %v6559_v33, 1  ;;  %v2033_v52 = vrot.slane %v6559_v33, 3 }
 0x299   :  { %4872 = vrot.lane.b32.xlu1 %v4871_v40, %s4933_s26 }
 0x29a   :  { %1843 = vst.msk [vmem:[#allocation2 + $0xd0] sm:$0xff] %vm1816_vm8, %v1810_v4  ;;  %v2000_v9 = vsel %vm166_vm2, %v1997_v37, %v1999_v5  ;;  %v1966_v61 = vsel %vm99_vm0, %v1963_v12, %v1965_v30  ;;  %v2034_v37 = vsel %vm233_vm1, %v2031_v27, %v2033_v52 }
 0x29b   :  { %v1514_v39 = vpop.f32.mrb[74].mxu1  ;;  %v1760_v45 = vpop.f32.mrb[98].mxu0 }
 0x29c   :  { %v1811_v0 = vmax.f32 %v1514_v39, %v1760_v45  ;;  %v1516_v56 = vpop.f32.mrb[75].mxu1  ;;  %v1762_v14 = vpop.f32.mrb[99].mxu0 }
 0x29d   :  { %v1873_v13 = vld [vmem:[#allocation2 + $0xc0] ss:$2 sm:$0xff]  ;;  %v1905_v20 = vld [vmem:[#allocation2 + $0xc1] ss:$2 sm:$0xff] }
 0x29e   :  { %1844 = vst.msk [vmem:[#allocation2 + $0xd8] sm:$0xff] %vm1816_vm8, %v1811_v0  ;;  %v6562_v35 = vmax.f32 %v1873_v13, %v1905_v20 }
 0x29f   :  { %v1519_v47 = vpop.f32.mrb[76].mxu1  ;;  %v1765_v31 = vpop.f32.mrb[100].mxu0 }
 0x2a0   :  { %v1812_v51 = vmax.f32 %v1519_v47, %v1765_v31  ;;  %v1521_v6 = vpop.f32.mrb[77].mxu1  ;;  %v1767_v53 = vpop.f32.mrb[101].mxu0  ;;  %v2001_v36 = vrot.slane %v6562_v35, 2  ;;  %v1967_v16 = vrot.slane %v6562_v35, 1  ;;  %v2035_v7 = vrot.slane %v6562_v35, 3 }
 0x2a2   :  { %1845 = vst.msk [vmem:[#allocation2 + $0xe0] sm:$0xff] %vm1816_vm8, %v1812_v51  ;;  %v2002_v34 = vsel %vm166_vm2, %v1999_v5, %v2001_v36  ;;  %v1968_v62 = vsel %vm99_vm0, %v1965_v30, %v1967_v16  ;;  %v2036_v15 = vsel %vm233_vm1, %v2033_v52, %v2035_v7 }
 0x2a3   :  { %v1524_v50 = vpop.f32.mrb[78].mxu1  ;;  %v1770_v24 = vpop.f32.mrb[102].mxu0  ;;  %v4881_v11 = vpack.i.bf16 %v2002_v34, %v2000_v9  ;;  %v4876_v1 = vpack.i.bf16 %v1968_v62, %v1966_v61  ;;  %v4886_v22 = vpack.i.bf16 %v2036_v15, %v2034_v37 }
 0x2a4   :  { %v1813_v3 = vmax.f32 %v1524_v50, %v1770_v24  ;;  %v1526_v60 = vpop.f32.mrb[79].mxu1  ;;  %v1772_v32 = vpop.f32.mrb[103].mxu0 }
 0x2a5   :  { %4882 = vrot.lane.b32.xlu1 %v4881_v11, %s4931_s24  ;;  %4877 = vrot.lane.b32.xlu0 %v4876_v1, %s4932_s25  ;;  %v1875_v63 = vld [vmem:[#allocation2 + $0xd0] ss:$2 sm:$0xff]  ;;  %v1907_v25 = vld [vmem:[#allocation2 + $0xd1] ss:$2 sm:$0xff] }
 0x2a6   :  { %1846 = vst.msk [vmem:[#allocation2 + $0xe8] sm:$0xff] %vm1816_vm8, %v1813_v3  ;;  %v6584_v4 = vmax.f32 %v1875_v63, %v1907_v25  ;;  %v2051_v25 = vrot.slane %v6445_v48, 4 }
 0x2a7   :  { %v1529_v12 = vpop.f32.mrb[80].mxu1  ;;  %v1775_v17 = vpop.f32.mrb[104].mxu0 }
 0x2a8   :  { %v1814_v40 = vmax.f32 %v1529_v12, %v1775_v17  ;;  %v1531_v59 = vpop.f32.mrb[81].mxu1  ;;  %v1777_v58 = vpop.f32.mrb[105].mxu0  ;;  %v2003_v13 = vrot.slane %v6584_v4, 2  ;;  %v1969_v20 = vrot.slane %v6584_v4, 1  ;;  %v2037_v31 = vrot.slane %v6584_v4, 3 }
 0x2a9   :  { %4887 = vrot.lane.b32.xlu0 %v4886_v22, %s4933_s26  ;;  %v2047_v17 = vrot.slane %v6397_v42, 4  ;;  %v2053_v58 = vrot.slane %v6448_v2, 4 }
 0x2aa   :  { %1847 = vst.msk [vmem:[#allocation2 + $0xf0] sm:$0xff] %vm1816_vm8, %v1814_v40  ;;  %v2004_v51 = vsel %vm166_vm2, %v2001_v36, %v2003_v13  ;;  %v1970_v53 = vsel %vm99_vm0, %v1967_v16, %v1969_v20  ;;  %v2038_v24 = vsel %vm233_vm1, %v2035_v7, %v2037_v31 }
 0x2ab   :  { %v1534_v10 = vpop.f32.mrb[82].mxu1  ;;  %v1780_v44 = vpop.f32.mrb[106].mxu0 }
 0x2ac   :  { %v1815_v39 = vmax.f32 %v1534_v10, %v1780_v44  ;;  %v1536_v45 = vpop.f32.mrb[83].mxu1  ;;  %v1782_v0 = vpop.f32.mrb[107].mxu0 }
 0x2ad   :  { %v1877_v27 = vld [vmem:[#allocation2 + $0xe0] ss:$2 sm:$0xff]  ;;  %v1909_v56 = vld [vmem:[#allocation2 + $0xe1] ss:$2 sm:$0xff] }
 0x2ae   :  { %1848 = vst.msk [vmem:[#allocation2 + $0xf8] sm:$0xff] %vm1816_vm8, %v1815_v39  ;;  %v6587_v14 = vmax.f32 %v1877_v27, %v1909_v56  ;;  %v2055_v39 = vrot.slane %v6472_v23, 4 }
 0x2b0   :  { %v2005_v5 = vrot.slane %v6587_v14, 2  ;;  %v1971_v30 = vrot.slane %v6587_v14, 1  ;;  %v2039_v47 = vrot.slane %v6587_v14, 3 }
 0x2b2   :  { %v2006_v6 = vsel %vm166_vm2, %v2003_v13, %v2005_v5  ;;  %v1972_v52 = vsel %vm99_vm0, %v1969_v20, %v1971_v30  ;;  %v2040_v61 = vsel %vm233_vm1, %v2037_v31, %v2039_v47  ;;  %v2054_v13 = vsel %vm300_vm3, %v2051_v25, %v2053_v58  ;;  %v2406_v20 = vld [vmem:[%s7416_s5 + $0x200] sm:$0xff] }
 0x2b3   :  { %v4896_v9 = vpack.i.bf16 %v2006_v6, %v2004_v51  ;;  %v4891_v34 = vpack.i.bf16 %v1972_v52, %v1970_v53  ;;  %v4901_v36 = vpack.i.bf16 %v2040_v61, %v2038_v24  ;;  %v2056_v31 = vsel %vm300_vm3, %v2053_v58, %v2055_v39  ;;  %v2411_v6 = vld [vmem:[%s7416_s5 + $0x228] sm:$0xff]  ;;  %v2413_v53 = vld [vmem:[%s7416_s5 + $0x238] sm:$0xff] }
 0x2b4   :  { %v2059_v51 = vrot.slane %v6499_v18, 4  ;;  %v4303_v24 = vpack.c.bf16 %v2413_v53, %v2411_v6  ;;  %v2419_v58 = vld [vmem:[%s7416_s5 + $0x268] sm:$0xff] }
 0x2b5   :  { %4897 = vrot.lane.b32.xlu0 %v4896_v9, %s4931_s24  ;;  %4892 = vrot.lane.b32.xlu1 %v4891_v34, %s4932_s25  ;;  %v1879_v62 = vld [vmem:[#allocation2 + $0xf0] ss:$2 sm:$0xff]  ;;  %v1911_v50 = vld [vmem:[#allocation2 + $0xf1] ss:$2 sm:$0xff]  ;;  %v2057_v9 = vrot.slane %v6475_v28, 4 }
 0x2b6   :  { %v6603_v11 = vmax.f32 %v1879_v62, %v1911_v50 }
 0x2b8   :  { %v2007_v1 = vrot.slane %v6603_v11, 2  ;;  %v1973_v16 = vrot.slane %v6603_v11, 1  ;;  %v2041_v7 = vrot.slane %v6603_v11, 3 }
 0x2b9   :  { %4902 = vrot.lane.b32.xlu1 %v4901_v36, %s4933_s26  ;;  %v2410_v36 = vld [vmem:[%s7416_s5 + $0x220] sm:$0xff] }
 0x2ba   :  { %v1974_v3 = vsel %vm99_vm0, %v1971_v30, %v1973_v16  ;;  %v1977_v60 = vsel %vm99_vm0, %v1973_v16, %v1944_v54  ;;  %v2008_v15 = vsel %vm166_vm2, %v2005_v5, %v2007_v1  ;;  %v2011_v37 = vsel %vm166_vm2, %v2007_v1, %v1978_v21  ;;  %v2408_v5 = vld [vmem:[%s7416_s5 + $0x210] sm:$0xff] }
 0x2bb   :  { %v4906_v32 = vpack.i.bf16 %v1977_v60, %v1974_v3  ;;  %v2042_v12 = vsel %vm233_vm1, %v2039_v47, %v2041_v7  ;;  %v2046_v54 = vrot.slane %v6405_v55, 4  ;;  %v2045_v63 = vsel %vm233_vm1, %v2041_v7, %v2012_v8  ;;  %v2412_v1 = vld [vmem:[%s7416_s5 + $0x230] sm:$0xff] }
 0x2bc   :  { %v2049_v21 = vrot.slane %v6414_v41, 4  ;;  %v4301_v61 = vpack.c.bf16 %v2408_v5, %v2406_v20  ;;  %v2060_v3 = vsel %vm300_vm3, %v2057_v9, %v2059_v51  ;;  %v2063_v60 = vrot.slane %v6532_v29, 4  ;;  %v2420_v20 = vld [vmem:[%s7416_s5 + $0x270] sm:$0xff]  ;;  %v2423_v5 = vld [vmem:[%s7416_s5 + $0x288] sm:$0xff] }
 0x2bd   :  { %2158 = vrot.lane.b32.xlu1 %v2008_v15, %s4931_s24  ;;  %4907 = vrot.lane.b32.xlu0 %v4906_v32, %s4932_s25  ;;  %v2048_v22 = vsel %vm300_vm3, %v2046_v54, %v2047_v17  ;;  %v2415_v32 = vld [vmem:[%s7416_s5 + $0x248] sm:$0xff]  ;;  %v2417_v15 = vld [vmem:[%s7416_s5 + $0x258] sm:$0xff]  ;;  %v2058_v7 = vsel %vm300_vm3, %v2055_v39, %v2057_v9 }
 0x2be   :  { %v2052_v10 = vsel %vm300_vm3, %v2049_v21, %v2051_v25  ;;  %v2050_v44 = vsel %vm300_vm3, %v2047_v17, %v2049_v21  ;;  %v2067_v21 = vrot.slane %v6559_v33, 4  ;;  %v2414_v25 = vld [vmem:[%s7416_s5 + $0x240] sm:$0xff] }
 0x2c1   :  { %2160 = vrot.lane.b32.xlu1 %v2011_v37, %s4931_s24  ;;  %2207 = vrot.lane.b32.xlu0 %v2042_v12, %s4933_s26  ;;  %v2061_v37 = vrot.slane %v6502_v26, 4  ;;  %v4305_v12 = vpack.c.bf16 %v2412_v1, %v2410_v36 }
 0x2c5   :  { %2228 = vrot.lane.b32.xlu1 %v2048_v22, %s4934_s4  ;;  %2209 = vrot.lane.b32.xlu0 %v2045_v63, %s4933_s26  ;;  %v4307_v22 = vpack.c.bf16 %v2417_v15, %v2415_v32  ;;  %v2064_v63 = vsel %vm300_vm3, %v2061_v37, %v2063_v60 }
 0x2c7   :  { %v4808_v40 = vpop.permute.xlu0 %4807  ;;  %v4803_v59 = vpop.permute.xlu1 %4802 }
 0x2c8   :  { %v4809_v8 = vunpack.i.l.bf16 %v4808_v40  ;;  %v4804_v45 = vunpack.i.l.bf16 %v4803_v59  ;;  %v4810_v0 = vunpack.i.h.bf16 %v4808_v40  ;;  %v4805_v27 = vunpack.i.h.bf16 %v4803_v59  ;;  %v2416_v40 = vld [vmem:[%s7416_s5 + $0x250] sm:$0xff] }
 0x2c9   :  { %2232 = vrot.lane.b32.xlu1 %v2052_v10, %s4934_s4  ;;  %2230 = vrot.lane.b32.xlu0 %v2050_v44, %s4934_s4  ;;  %v2062_v59 = vsel %vm300_vm3, %v2059_v51, %v2061_v37  ;;  %v2421_v10 = vld [vmem:[%s7416_s5 + $0x278] sm:$0xff]  ;;  %v2427_v37 = vld [vmem:[%s7416_s5 + $0x2a8] sm:$0xff] }
 0x2ca   :  { %v2292_v52 = vsel %vm1216_vm7, %v4804_v45, %v4809_v8  ;;  %v2276_v62 = vsel %vm1816_vm8, %v6405_v55, %v4804_v45  ;;  %v2293_v50 = vsel %vm1216_vm7, %v4805_v27, %v4810_v0  ;;  %v2277_v17 = vsel %vm1816_vm8, %v6397_v42, %v4805_v27  ;;  %v2418_v45 = vld [vmem:[%s7416_s5 + $0x260] sm:$0xff] }
 0x2cb   :  { %v6640_v56 = vpop.permute.xlu1 %4812  ;;  %v2065_v42 = vrot.slane %v6535_v38, 4  ;;  %v4309_v8 = vpack.c.bf16 %v2416_v40, %v2414_v25  ;;  %v2071_v27 = vrot.slane %v6584_v4, 4  ;;  %v2434_v55 = vld [vmem:[%s7416_s5 + $0x2e0] sm:$0xff] }
 0x2cc   :  { %v4815_v30 = vunpack.i.h.bf16 %v6640_v56  ;;  %v4814_v47 = vunpack.i.l.bf16 %v6640_v56 }
 0x2cd   :  { %2236 = vrot.lane.b32.xlu1 %v2056_v31, %s4934_s4  ;;  %2234 = vrot.lane.b32.xlu0 %v2054_v13, %s4934_s4  ;;  %v2068_v0 = vsel %vm300_vm3, %v2065_v42, %v2067_v21  ;;  %v4311_v13 = vpack.c.bf16 %v2421_v10, %v2419_v58  ;;  %v2425_v31 = vld [vmem:[%s7416_s5 + $0x298] sm:$0xff]  ;;  %v2066_v53 = vsel %vm300_vm3, %v2063_v60, %v2065_v42  ;;  %v2424_v60 = vld [vmem:[%s7416_s5 + $0x290] sm:$0xff] }
 0x2ce   :  { %v2309_v34 = vsel %vm2308_vm9, %v2292_v52, %v4814_v47  ;;  %v2310_v16 = vsel %vm2308_vm9, %v2293_v50, %v4815_v30  ;;  %v2069_v52 = vrot.slane %v6562_v35, 4  ;;  %v4315_v50 = vpack.c.bf16 %v2425_v31, %v2423_v5  ;;  %v2426_v42 = vld [vmem:[%s7416_s5 + $0x2a0] sm:$0xff]  ;;  %v2431_v10 = vld [vmem:[%s7416_s5 + $0x2c8] sm:$0xff] }
 0x2cf   :  { %2563 = vmatprep.mubr.f32.mxu1 %v2309_v34 }
 0x2d0   :  { %2564 = vmatmul.mubr.f32.vlgmr.msra.gmra.mrb[84].mxu1 %v2276_v62  ;;  %v4313_v62 = vpack.c.bf16 %v2420_v20, %v2418_v45  ;;  %v2072_v1 = vsel %vm300_vm3, %v2069_v52, %v2071_v27  ;;  %v2070_v32 = vsel %vm300_vm3, %v2067_v21, %v2069_v52  ;;  %v2437_v20 = vld [vmem:[%s7416_s5 + $0x2f8] sm:$0xff] }
 0x2d1   :  { %2569 = vmatprep.mubr.f32.mxu1 %v2310_v16  ;;  %2240 = vrot.lane.b32.xlu1 %v2060_v3, %s4934_s4  ;;  %v2075_v16 = vrot.slane %v6603_v11, 4  ;;  %v2422_v3 = vld [vmem:[%s7416_s5 + $0x280] sm:$0xff] }
 0x2d2   :  { %2238 = vrot.lane.b32.xlu0 %v2058_v7, %s4934_s4  ;;  %4302 = vmatpush1.bf16.msra.mxu1 %v4301_v61  ;;  %v2073_v7 = vrot.slane %v6587_v14, 4  ;;  %v4317_v21 = vpack.c.bf16 %v2424_v60, %v2422_v3 }
 0x2d3   :  { %4304 = vmatprep.subr.bf16.mxu1 %v4303_v24 }
 0x2d4   :  { %2570 = vmatmul.mubr.f32.gmra.mrb[86].mxu1 %v2277_v17  ;;  %v2076_v40 = vsel %vm300_vm3, %v2073_v7, %v2075_v16  ;;  %v2074_v58 = vsel %vm300_vm3, %v2071_v27, %v2073_v7  ;;  %v2432_v27 = vld [vmem:[%s7416_s5 + $0x2d0] sm:$0xff] }
 0x2d5   :  { %2244 = vrot.lane.b32.xlu1 %v2064_v63, %s4934_s4  ;;  %v2440_v7 = vld [vmem:[%s7416_s5 + $0x310] sm:$0xff] }
 0x2d6   :  { %2242 = vrot.lane.b32.xlu0 %v2062_v59, %s4934_s4  ;;  %4306 = vmatpush1.bf16.msra.mxu1 %v4305_v12  ;;  %v2429_v12 = vld [vmem:[%s7416_s5 + $0x2b8] sm:$0xff] }
 0x2d7   :  { %v4823_v44 = vpop.permute.xlu1 %4822  ;;  %v4818_v39 = vpop.permute.xlu0 %4817  ;;  %4308 = vmatprep.subr.bf16.mxu1 %v4307_v22  ;;  %v4319_v59 = vpack.c.bf16 %v2429_v12, %v2427_v37  ;;  %v2443_v12 = vld [vmem:[%s7416_s5 + $0x328] sm:$0xff] }
 0x2d8   :  { %v4824_v51 = vunpack.i.l.bf16 %v4823_v44  ;;  %v4819_v6 = vunpack.i.l.bf16 %v4818_v39  ;;  %v4825_v9 = vunpack.i.h.bf16 %v4823_v44  ;;  %v4820_v34 = vunpack.i.h.bf16 %v4818_v39  ;;  %v2433_v44 = vld [vmem:[%s7416_s5 + $0x2d8] sm:$0xff] }
 0x2d9   :  { %2248 = vrot.lane.b32.xlu1 %v2068_v0, %s4934_s4  ;;  %v4323_v45 = vpack.c.bf16 %v2433_v44, %v2431_v10  ;;  %v2430_v0 = vld [vmem:[%s7416_s5 + $0x2c0] sm:$0xff]  ;;  %v2447_v10 = vld [vmem:[%s7416_s5 + $0x348] sm:$0xf] }
 0x2da   :  { %2246 = vrot.lane.b32.xlu0 %v2066_v53, %s4934_s4  ;;  %4310 = vmatpush1.bf16.msra.mxu1 %v4309_v8  ;;  %v2294_v15 = vsel %vm1216_vm7, %v4819_v6, %v4824_v51  ;;  %v2278_v22 = vsel %vm1816_vm8, %v6414_v41, %v4819_v6  ;;  %v2295_v63 = vsel %vm1216_vm7, %v4820_v34, %v4825_v9  ;;  %v2428_v41 = vld [vmem:[%s7416_s5 + $0x2b0] sm:$0xff]  ;;  %v2439_v9 = vld [vmem:[%s7416_s5 + $0x308] sm:$0xff] }
 0x2db   :  { %v6728_v61 = vpop.permute.xlu0 %4827  ;;  %4312 = vmatprep.subr.bf16.mxu1 %v4311_v13  ;;  %v2279_v39 = vsel %vm1816_vm8, %v6445_v48, %v4820_v34  ;;  %v4321_v8 = vpack.c.bf16 %v2428_v41, %v2426_v42  ;;  %v2079_v13 = vsel %vm300_vm3, %v2075_v16, %v2046_v54  ;;  %v2435_v48 = vld [vmem:[%s7416_s5 + $0x2e8] sm:$0xff]  ;;  %v4325_v51 = vpack.c.bf16 %v2432_v27, %v2430_v0  ;;  %v2436_v54 = vld [vmem:[%s7416_s5 + $0x2f0] sm:$0xff]  ;;  %v2441_v34 = vld [vmem:[%s7416_s5 + $0x318] sm:$0xff] }
 0x2dc   :  { %v4830_v24 = vunpack.i.h.bf16 %v6728_v61  ;;  %v4829_v36 = vunpack.i.l.bf16 %v6728_v61  ;;  %v4327_v6 = vpack.c.bf16 %v2437_v20, %v2435_v48  ;;  %v4329_v16 = vpack.c.bf16 %v2436_v54, %v2434_v55  ;;  %v2442_v42 = vld [vmem:[%s7416_s5 + $0x320] sm:$0xff]  ;;  %v2444_v41 = vld [vmem:[%s7416_s5 + $0x330] sm:$0xff] }
 0x2dd   :  { %2252 = vrot.lane.b32.xlu1 %v2072_v1, %s4934_s4 }
 0x2de   :  { %2250 = vrot.lane.b32.xlu0 %v2070_v32, %s4934_s4  ;;  %v2311_v17 = vsel %vm2308_vm9, %v2294_v15, %v4829_v36  ;;  %4314 = vmatpush1.bf16.msra.mxu1 %v4313_v62  ;;  %v2312_v25 = vsel %vm2308_vm9, %v2295_v63, %v4830_v24  ;;  %v4331_v32 = vpack.c.bf16 %v2441_v34, %v2439_v9  ;;  %v2438_v15 = vld [vmem:[%s7416_s5 + $0x300] sm:$0xff] }
 0x2df   :  { %2575 = vmatprep.mubr.f32.mxu1 %v2311_v17  ;;  %4316 = vmatprep.subr.bf16.mxu1 %v4315_v50  ;;  %v2445_v17 = vld [vmem:[%s7416_s5 + $0x338] sm:$0xff] }
 0x2e0   :  { %2576 = vmatmul.mubr.f32.gmra.mrb[88].mxu1 %v2278_v22 }
 0x2e1   :  { %2581 = vmatprep.mubr.f32.mxu1 %v2312_v25  ;;  %2256 = vrot.lane.b32.xlu1 %v2076_v40, %s4934_s4  ;;  %v4333_v25 = vpack.c.bf16 %v2440_v7, %v2438_v15  ;;  %v2859_v15 = vld [vmem:[%s7417_s7 + $0x30] sm:$0xff]  ;;  %v2860_v7 = vld [vmem:[%s7417_s7 + $0x38] sm:$0xff] }
 0x2e2   :  { %2254 = vrot.lane.b32.xlu0 %v2074_v58, %s4934_s4  ;;  %4318 = vmatpush1.bf16.msra.mxu1 %v4317_v21  ;;  %v4337_v58 = vpack.c.bf16 %v2444_v41, %v2442_v42 }
 0x2e3   :  { %4320 = vmatprep.subr.bf16.mxu1 %v4319_v59  ;;  %v4335_v59 = vpack.c.bf16 %v2445_v17, %v2443_v12  ;;  %v4349_v17 = vpack.c.bf16 %v2860_v7, %v2859_v15 }
 0x2e4   :  { %2582 = vmatmul.mubr.f32.gmra.mrb[90].mxu1 %v2279_v39 }
 0x2e6   :  { %2258 = vrot.lane.b32.xlu0 %v2079_v13, %s4934_s4  ;;  %4322 = vmatpush1.bf16.msra.mxu1 %v4321_v8  ;;  %v2446_v8 = vld [vmem:[%s7416_s5 + $0x340] sm:$0xf] }
 0x2e7   :  { %v4838_v5 = vpop.permute.xlu0 %4837  ;;  %v4833_v31 = vpop.permute.xlu1 %4832  ;;  %4324 = vmatprep.subr.bf16.mxu1 %v4323_v45 }
 0x2e8   :  { %v4839_v53 = vunpack.i.l.bf16 %v4838_v5  ;;  %v4834_v52 = vunpack.i.l.bf16 %v4833_v31  ;;  %v4840_v62 = vunpack.i.h.bf16 %v4838_v5  ;;  %v4835_v50 = vunpack.i.h.bf16 %v4833_v31  ;;  %v2853_v31 = vld [vmem:[%s7417_s7] sm:$0xff] }
 0x2ea   :  { %4326 = vmatpush1.bf16.msra.mxu1 %v4325_v51  ;;  %v2296_v37 = vsel %vm1216_vm7, %v4834_v52, %v4839_v53  ;;  %v2280_v63 = vsel %vm1816_vm8, %v6448_v2, %v4834_v52  ;;  %v2297_v21 = vsel %vm1216_vm7, %v4835_v50, %v4840_v62  ;;  %v2281_v2 = vsel %vm1816_vm8, %v6472_v23, %v4835_v50  ;;  %v2854_v51 = vld [vmem:[%s7417_s7 + $0x8] sm:$0xff]  ;;  %v2856_v53 = vld [vmem:[%s7417_s7 + $0x18] sm:$0xff]  ;;  %v2857_v50 = vld [vmem:[%s7417_s7 + $0x20] sm:$0xff] }
 0x2eb   :  { %v6806_v1 = vpop.permute.xlu1 %4842  ;;  %4328 = vmatprep.subr.bf16.mxu1 %v4327_v6  ;;  %v2855_v6 = vld [vmem:[%s7417_s7 + $0x10] sm:$0xff]  ;;  %v4340_v54 = vpack.c.bf16 %v2854_v51, %v2853_v31 }
 0x2ec   :  { %v4845_v3 = vunpack.i.h.bf16 %v6806_v1  ;;  %v4844_v60 = vunpack.i.l.bf16 %v6806_v1  ;;  %v4343_v62 = vpack.c.bf16 %v2856_v53, %v2855_v6  ;;  %v2867_v51 = vld [vmem:[%s7417_s7 + $0x70] sm:$0xff]  ;;  %v2868_v6 = vld [vmem:[%s7417_s7 + $0x78] sm:$0xff] }
 0x2ed   :  { %4341 = vmatpush1.bf16.msra.mxu0 %v4340_v54  ;;  %v4361_v53 = vpack.c.bf16 %v2868_v6, %v2867_v51 }
 0x2ee   :  { %v2313_v22 = vsel %vm2308_vm9, %v2296_v37, %v4844_v60  ;;  %4330 = vmatpush1.bf16.msra.mxu1 %v4329_v16  ;;  %v2314_v40 = vsel %vm2308_vm9, %v2297_v21, %v4845_v3  ;;  %4342 = vmatprep.subr.bf16.mxu0 %v4929_v19  ;;  %v2862_v21 = vld [vmem:[%s7417_s7 + $0x48] sm:$0xff] }
 0x2ef   :  { %2587 = vmatprep.mubr.f32.mxu1 %v2313_v22  ;;  %4332 = vmatprep.subr.bf16.mxu1 %v4331_v32 }
 0x2f0   :  { %2588 = vmatmul.mubr.f32.gmra.mrb[92].mxu1 %v2280_v63 }
 0x2f1   :  { %2593 = vmatprep.mubr.f32.mxu1 %v2314_v40  ;;  %4344 = vmatpush1.bf16.msra.mxu0 %v4343_v62 }
 0x2f2   :  { %4334 = vmatpush1.bf16.msra.mxu1 %v4333_v25  ;;  %4345 = vmatprep.subr.bf16.mxu0 %v4929_v19 }
 0x2f3   :  { %4336 = vmatprep.subr.bf16.mxu1 %v4335_v59 }
 0x2f4   :  { %2594 = vmatmul.mubr.f32.gmra.mrb[94].mxu1 %v2281_v2 }
 0x2f6   :  { %4338 = vmatpush1.bf16.msra.mxu1 %v4337_v58 }
 0x2f7   :  { %v4853_v44 = vpop.permute.xlu1 %4852  ;;  %v4848_v39 = vpop.permute.xlu0 %4847  ;;  %3870 = vmatprep.subr.msk.mxu1 %vm300_vm3, %v2447_v10  ;;  %v2863_v10 = vld [vmem:[%s7417_s7 + $0x50] sm:$0xff] }
 0x2f8   :  { %v4854_v45 = vunpack.i.l.bf16 %v4853_v44  ;;  %v4849_v0 = vunpack.i.l.bf16 %v4848_v39  ;;  %v4855_v23 = vunpack.i.h.bf16 %v4853_v44  ;;  %v4850_v27 = vunpack.i.h.bf16 %v4848_v39  ;;  %v2864_v44 = vld [vmem:[%s7417_s7 + $0x58] sm:$0xff] }
 0x2fa   :  { %3871 = vmatpush1.msk.msra.mxu1 %vm300_vm3, %v2446_v8  ;;  %v2298_v5 = vsel %vm1216_vm7, %v4849_v0, %v4854_v45  ;;  %v2282_v52 = vsel %vm1816_vm8, %v6475_v28, %v4849_v0  ;;  %v2299_v9 = vsel %vm1216_vm7, %v4850_v27, %v4855_v23  ;;  %v2858_v28 = vld [vmem:[%s7417_s7 + $0x28] sm:$0xff]  ;;  %v2283_v16 = vsel %vm1816_vm8, %v6499_v18, %v4850_v27  ;;  %v2861_v18 = vld [vmem:[%s7417_s7 + $0x40] sm:$0xff] }
 0x2fb   :  { %v6847_v13 = vpop.permute.xlu0 %4857  ;;  %4369 = vmatprep.subr.bf16.mxu1 %v4929_v19  ;;  %v4346_v32 = vpack.c.bf16 %v2858_v28, %v2857_v50  ;;  %v4352_v2 = vpack.c.bf16 %v2862_v21, %v2861_v18  ;;  %v4355_v23 = vpack.c.bf16 %v2864_v44, %v2863_v10  ;;  %v2865_v27 = vld [vmem:[%s7417_s7 + $0x60] sm:$0xff] }
 0x2fc   :  { %v4860_v48 = vunpack.i.h.bf16 %v6847_v13  ;;  %v4859_v20 = vunpack.i.l.bf16 %v6847_v13 }
 0x2fd   :  { %4347 = vmatpush1.bf16.msra.mxu0 %v4346_v32 }
 0x2fe   :  { %v2315_v55 = vsel %vm2308_vm9, %v2298_v5, %v4859_v20  ;;  %v2316_v34 = vsel %vm2308_vm9, %v2299_v9, %v4860_v48  ;;  %4348 = vmatprep.subr.bf16.mxu0 %v4929_v19 }
 0x2ff   :  { %2599 = vmatprep.mubr.f32.mxu1 %v2315_v55 }
 0x300   :  { %2600 = vmatmul.mubr.f32.gmra.mrb[96].mxu1 %v2282_v52 }
 0x301   :  { %2605 = vmatprep.mubr.f32.mxu1 %v2316_v34  ;;  %4350 = vmatpush1.bf16.msra.mxu0 %v4349_v17  ;;  %v2870_v34 = vld [vmem:[%s7417_s7 + $0x88] sm:$0xff] }
 0x302   :  { %4351 = vmatprep.subr.bf16.mxu0 %v4929_v19 }
 0x304   :  { %2606 = vmatmul.mubr.f32.gmra.mrb[98].mxu1 %v2283_v16 }
 0x305   :  { %4353 = vmatpush1.bf16.msra.mxu0 %v4352_v2 }
 0x306   :  { %4354 = vmatprep.subr.bf16.mxu0 %v4929_v19 }
 0x307   :  { %v4868_v37 = vpop.permute.xlu0 %4867  ;;  %v4863_v12 = vpop.permute.xlu1 %4862 }
 0x308   :  { %v4869_v22 = vunpack.i.l.bf16 %v4868_v37  ;;  %v4864_v63 = vunpack.i.l.bf16 %v4863_v12  ;;  %v4870_v25 = vunpack.i.h.bf16 %v4868_v37  ;;  %v4865_v40 = vunpack.i.h.bf16 %v4863_v12  ;;  %v2871_v37 = vld [vmem:[%s7417_s7 + $0x90] sm:$0xff]  ;;  %v2872_v12 = vld [vmem:[%s7417_s7 + $0x98] sm:$0xff] }
 0x309   :  { %4356 = vmatpush1.bf16.msra.mxu0 %v4355_v23  ;;  %v4367_v21 = vpack.c.bf16 %v2872_v12, %v2871_v37  ;;  %v3068_v37 = vld [vmem:[%s7418_s8 + $0x10] sm:$0xff]  ;;  %v3069_v12 = vld [vmem:[%s7418_s8 + $0x18] sm:$0xff] }
 0x30a   :  { %v2300_v58 = vsel %vm1216_vm7, %v4864_v63, %v4869_v22  ;;  %v2284_v8 = vsel %vm1816_vm8, %v6502_v26, %v4864_v63  ;;  %v2301_v45 = vsel %vm1216_vm7, %v4865_v40, %v4870_v25  ;;  %v2866_v26 = vld [vmem:[%s7417_s7 + $0x68] sm:$0xff]  ;;  %v2285_v5 = vsel %vm1816_vm8, %v6532_v29, %v4865_v40  ;;  %4357 = vmatprep.subr.bf16.mxu0 %v4929_v19  ;;  %v2869_v29 = vld [vmem:[%s7417_s7 + $0x80] sm:$0xff] }
 0x30b   :  { %v6898_v59 = vpop.permute.xlu1 %4872  ;;  %v4358_v31 = vpack.c.bf16 %v2866_v26, %v2865_v27  ;;  %v4364_v15 = vpack.c.bf16 %v2870_v34, %v2869_v29 }
 0x30c   :  { %v4875_v42 = vunpack.i.h.bf16 %v6898_v59  ;;  %v4874_v41 = vunpack.i.l.bf16 %v6898_v59 }
 0x30d   :  { %4359 = vmatpush1.bf16.msra.mxu0 %v4358_v31 }
 0x30e   :  { %v2317_v39 = vsel %vm2308_vm9, %v2300_v58, %v4874_v41  ;;  %v2318_v0 = vsel %vm2308_vm9, %v2301_v45, %v4875_v42  ;;  %4360 = vmatprep.subr.bf16.mxu0 %v4929_v19 }
 0x30f   :  { %2611 = vmatprep.mubr.f32.mxu1 %v2317_v39 }
 0x310   :  { %2612 = vmatmul.mubr.f32.gmra.mrb[100].mxu1 %v2284_v8 }
 0x311   :  { %2617 = vmatprep.mubr.f32.mxu1 %v2318_v0  ;;  %4362 = vmatpush1.bf16.msra.mxu0 %v4361_v53 }
 0x312   :  { %4363 = vmatprep.subr.bf16.mxu0 %v4929_v19 }
 0x314   :  { %2618 = vmatmul.mubr.f32.gmra.mrb[102].mxu1 %v2285_v5 }
 0x315   :  { %4365 = vmatpush1.bf16.msra.mxu0 %v4364_v15 }
 0x316   :  { %4366 = vmatprep.subr.bf16.mxu0 %v4929_v19 }
 0x317   :  { %v4883_v55 = vpop.permute.xlu1 %4882  ;;  %v4878_v54 = vpop.permute.xlu0 %4877 }
 0x318   :  { %v4884_v52 = vunpack.i.l.bf16 %v4883_v55  ;;  %v4879_v9 = vunpack.i.l.bf16 %v4878_v54  ;;  %v4885_v62 = vunpack.i.h.bf16 %v4883_v55  ;;  %v4880_v50 = vunpack.i.h.bf16 %v4878_v54 }
 0x319   :  { %4368 = vmatpush1.bf16.msra.mxu0 %v4367_v21 }
 0x31a   :  { %v2302_v7 = vsel %vm1216_vm7, %v4879_v9, %v4884_v52  ;;  %v2286_v22 = vsel %vm1816_vm8, %v6535_v38, %v4879_v9  ;;  %v2303_v63 = vsel %vm1216_vm7, %v4880_v50, %v4885_v62  ;;  %v2287_v25 = vsel %vm1816_vm8, %v6559_v33, %v4880_v50  ;;  %4399 = vmatprep.subr.bf16.mxu0 %v4929_v19  ;;  %v3067_v50 = vld [vmem:[%s7418_s8 + $0x8] sm:$0xff] }
 0x31b   :  { %v6942_v28 = vpop.permute.xlu0 %4887 }
 0x31c   :  { %v4890_v16 = vunpack.i.h.bf16 %v6942_v28  ;;  %v4889_v32 = vunpack.i.l.bf16 %v6942_v28 }
 0x31e   :  { %v2319_v17 = vsel %vm2308_vm9, %v2302_v7, %v4889_v32  ;;  %v2320_v18 = vsel %vm2308_vm9, %v2303_v63, %v4890_v16  ;;  %v3070_v63 = vld [vmem:[%s7418_s8 + $0x20] sm:$0xff] }
 0x31f   :  { %2623 = vmatprep.mubr.f32.mxu1 %v2319_v17 }
 0x320   :  { %2624 = vmatmul.mubr.f32.gmra.mrb[104].mxu1 %v2286_v22 }
 0x321   :  { %2629 = vmatprep.mubr.f32.mxu1 %v2320_v18  ;;  %v3071_v18 = vld [vmem:[%s7418_s8 + $0x28] sm:$0xff] }
 0x324   :  { %2630 = vmatmul.mubr.f32.gmra.mrb[106].mxu1 %v2287_v25  ;;  %v4376_v25 = vpack.c.bf16 %v3071_v18, %v3070_v63 }
 0x327   :  { %v4898_v38 = vpop.permute.xlu0 %4897  ;;  %v4893_v40 = vpop.permute.xlu1 %4892 }
 0x328   :  { %v4899_v2 = vunpack.i.l.bf16 %v4898_v38  ;;  %v4894_v58 = vunpack.i.l.bf16 %v4893_v40  ;;  %v4900_v10 = vunpack.i.h.bf16 %v4898_v38  ;;  %v4895_v44 = vunpack.i.h.bf16 %v4893_v40  ;;  %v3072_v38 = vld [vmem:[%s7418_s8 + $0x30] sm:$0xff]  ;;  %v3073_v40 = vld [vmem:[%s7418_s8 + $0x38] sm:$0xff] }
 0x32a   :  { %v2304_v0 = vsel %vm1216_vm7, %v4894_v58, %v4899_v2  ;;  %v2288_v26 = vsel %vm1816_vm8, %v6562_v35, %v4894_v58  ;;  %v2305_v5 = vsel %vm1216_vm7, %v4895_v44, %v4900_v10  ;;  %v2289_v54 = vsel %vm1816_vm8, %v6584_v4, %v4895_v44  ;;  %v3066_v4 = vld [vmem:[%s7418_s8] sm:$0xff]  ;;  %v3075_v10 = vld [vmem:[%s7418_s8 + $0x48] sm:$0xff] }
 0x32b   :  { %v6967_v39 = vpop.permute.xlu1 %4902  ;;  %v4379_v2 = vpack.c.bf16 %v3073_v40, %v3072_v38  ;;  %v3074_v58 = vld [vmem:[%s7418_s8 + $0x40] sm:$0xff] }
 0x32c   :  { %v4905_v8 = vunpack.i.h.bf16 %v6967_v39  ;;  %v4904_v45 = vunpack.i.l.bf16 %v6967_v39  ;;  %v3084_v39 = vld [vmem:[%s7418_s8 + $0x90] sm:$0xff] }
 0x32e   :  { %v2321_v33 = vsel %vm2308_vm9, %v2304_v0, %v4904_v45  ;;  %v2322_v51 = vsel %vm2308_vm9, %v2305_v5, %v4905_v8  ;;  %v4382_v0 = vpack.c.bf16 %v3075_v10, %v3074_v58  ;;  %v3079_v5 = vld [vmem:[%s7418_s8 + $0x68] sm:$0xff] }
 0x32f   :  { %2635 = vmatprep.mubr.f32.mxu1 %v2321_v33  ;;  %v2159_v23 = vpop.permute.xlu1 %2158  ;;  %v4908_v27 = vpop.permute.xlu0 %4907  ;;  %v3076_v33 = vld [vmem:[%s7418_s8 + $0x50] sm:$0xff] }
 0x330   :  { %v4909_v31 = vunpack.i.l.bf16 %v4908_v27  ;;  %2636 = vmatmul.mubr.f32.gmra.mrb[108].mxu1 %v2288_v26  ;;  %v4910_v52 = vunpack.i.h.bf16 %v4908_v27  ;;  %v3078_v26 = vld [vmem:[%s7418_s8 + $0x60] sm:$0xff] }
 0x331   :  { %2641 = vmatprep.mubr.f32.mxu1 %v2322_v51  ;;  %v4388_v51 = vpack.c.bf16 %v3079_v5, %v3078_v26 }
 0x332   :  { %v2306_v6 = vsel %vm1216_vm7, %v4909_v31, %v2159_v23  ;;  %v2290_v34 = vsel %vm1816_vm8, %v6587_v14, %v4909_v31  ;;  %v2291_v15 = vsel %vm1816_vm8, %v6603_v11, %v4910_v52  ;;  %v4370_v14 = vpack.c.bf16 %v3067_v50, %v3066_v4  ;;  %v3077_v23 = vld [vmem:[%s7418_s8 + $0x58] sm:$0xff] }
 0x333   :  { %v6982_v55 = vpop.permute.xlu0 %2207  ;;  %v2161_v53 = vpop.permute.xlu1 %2160  ;;  %v4373_v11 = vpack.c.bf16 %v3069_v12, %v3068_v37  ;;  %v4385_v27 = vpack.c.bf16 %v3077_v23, %v3076_v33 }
 0x334   :  { %2642 = vmatmul.mubr.f32.gmra.mrb[110].mxu1 %v2289_v54  ;;  %v2323_v35 = vsel %vm2308_vm9, %v2306_v6, %v6982_v55  ;;  %v2307_v9 = vsel %vm1216_vm7, %v4910_v52, %v2161_v53  ;;  %v3080_v6 = vld [vmem:[%s7418_s8 + $0x70] sm:$0xff]  ;;  %v3081_v54 = vld [vmem:[%s7418_s8 + $0x78] sm:$0xff]  ;;  %v3083_v52 = vld [vmem:[%s7418_s8 + $0x88] sm:$0xff] }
 0x335   :  { %2647 = vmatprep.mubr.f32.mxu1 %v2323_v35  ;;  %v4391_v53 = vpack.c.bf16 %v3081_v54, %v3080_v6  ;;  %v3082_v35 = vld [vmem:[%s7418_s8 + $0x80] sm:$0xff] }
 0x337   :  { %v6989_v29 = vpop.permute.xlu0 %2209  ;;  %v2229_v7 = vpop.permute.xlu1 %2228 }
 0x338   :  { %2648 = vmatmul.mubr.f32.gmra.mrb[112].mxu1 %v2290_v34  ;;  %v2324_v62 = vsel %vm2308_vm9, %v2307_v9, %v6989_v29  ;;  %v2326_v17 = vsel %vm2325_vm11, %v4814_v47, %v2229_v7  ;;  %v4394_v34 = vpack.c.bf16 %v3083_v52, %v3082_v35 }
 0x339   :  { %2653 = vmatprep.mubr.f32.mxu1 %v2324_v62 }
 0x33b   :  { %v2231_v22 = vpop.permute.xlu0 %2230  ;;  %v2233_v21 = vpop.permute.xlu1 %2232 }
 0x33c   :  { %2654 = vmatmul.mubr.f32.gmra.mrb[114].mxu1 %v2291_v15  ;;  %v2327_v47 = vsel %vm2325_vm11, %v4815_v30, %v2231_v22  ;;  %v2328_v56 = vsel %vm2325_vm11, %v4829_v36, %v2233_v21 }
 0x33d   :  { %3872 = vmatprep.mubr.msk.f32.mxu1 %vm2460_vm10, %v2229_v7 }
 0x33f   :  { %v2235_v30 = vpop.permute.xlu0 %2234  ;;  %v2237_v44 = vpop.permute.xlu1 %2236 }
 0x340   :  { %2725 = vmatmul.mubr.f32.vlgmr.msra.gmra.mrb[84].mxu1 %v2326_v17  ;;  %v2329_v36 = vsel %vm2325_vm11, %v4830_v24, %v2235_v30  ;;  %v2330_v61 = vsel %vm2325_vm11, %v4844_v60, %v2237_v44 }
 0x341   :  { %3873 = vmatprep.mubr.msk.f32.mxu1 %vm2460_vm10, %v2231_v22  ;;  %4371 = vmatpush1.bf16.msra.mxu1 %v4370_v14 }
 0x342   :  { %4372 = vmatprep.subr.bf16.mxu1 %v4929_v19 }
 0x343   :  { %v2241_v31 = vpop.permute.xlu1 %2240 }
 0x344   :  { %2731 = vmatmul.mubr.f32.gmra.mrb[86].mxu1 %v2327_v47  ;;  %v2239_v24 = vpop.permute.xlu0 %2238  ;;  %v2332_v1 = vsel %vm2325_vm11, %v4859_v20, %v2241_v31 }
 0x345   :  { %3874 = vmatprep.mubr.msk.f32.mxu1 %vm2460_vm10, %v2233_v21  ;;  %4374 = vmatpush1.bf16.msra.mxu1 %v4373_v11  ;;  %v2331_v60 = vsel %vm2325_vm11, %v4845_v3, %v2239_v24 }
 0x346   :  { %4375 = vmatprep.subr.bf16.mxu1 %v4929_v19 }
 0x347   :  { %v2245_v9 = vpop.permute.xlu1 %2244 }
 0x348   :  { %2737 = vmatmul.mubr.f32.gmra.mrb[88].mxu1 %v2328_v56  ;;  %v2243_v3 = vpop.permute.xlu0 %2242  ;;  %v2334_v62 = vsel %vm2325_vm11, %v4874_v41, %v2245_v9 }
 0x349   :  { %3875 = vmatprep.mubr.msk.f32.mxu1 %vm2460_vm10, %v2235_v30  ;;  %4377 = vmatpush1.bf16.msra.mxu1 %v4376_v25  ;;  %v2333_v20 = vsel %vm2325_vm11, %v4860_v48, %v2243_v3 }
 0x34a   :  { %4378 = vmatprep.subr.bf16.mxu1 %v4929_v19 }
 0x34b   :  { %v2249_v48 = vpop.permute.xlu1 %2248 }
 0x34c   :  { %2743 = vmatmul.mubr.f32.gmra.mrb[90].mxu1 %v2329_v36  ;;  %v2247_v4 = vpop.permute.xlu0 %2246  ;;  %v2336_v50 = vsel %vm2325_vm11, %v4889_v32, %v2249_v48 }
 0x34d   :  { %3876 = vmatprep.mubr.msk.f32.mxu1 %vm2460_vm10, %v2237_v44  ;;  %4380 = vmatpush1.bf16.msra.mxu1 %v4379_v2  ;;  %v2335_v13 = vsel %vm2325_vm11, %v4875_v42, %v2247_v4 }
 0x34e   :  { %4381 = vmatprep.subr.bf16.mxu1 %v4929_v19 }
 0x34f   :  { %v2253_v7 = vpop.permute.xlu1 %2252 }
 0x350   :  { %2749 = vmatmul.mubr.f32.gmra.mrb[92].mxu1 %v2330_v61  ;;  %v2251_v41 = vpop.permute.xlu0 %2250  ;;  %v2338_v59 = vsel %vm2325_vm11, %v4904_v45, %v2253_v7 }
 0x351   :  { %3877 = vmatprep.mubr.msk.f32.mxu1 %vm2460_vm10, %v2239_v24  ;;  %4383 = vmatpush1.bf16.msra.mxu1 %v4382_v0  ;;  %v2337_v15 = vsel %vm2325_vm11, %v4890_v16, %v2251_v41 }
 0x352   :  { %4384 = vmatprep.subr.bf16.mxu1 %v4929_v19 }
 0x353   :  { %v2257_v14 = vpop.permute.xlu1 %2256 }
 0x354   :  { %2755 = vmatmul.mubr.f32.gmra.mrb[94].mxu1 %v2331_v60  ;;  %v2255_v42 = vpop.permute.xlu0 %2254  ;;  %v2340_v28 = vsel %vm2325_vm11, %v6982_v55, %v2257_v14  ;;  %v2448_v55 = vld [vmem:[%s7419_s6] sm:$0x3] }
 0x355   :  { %3878 = vmatprep.mubr.msk.f32.mxu1 %vm2460_vm10, %v2241_v31  ;;  %4386 = vmatpush1.bf16.msra.mxu1 %v4385_v27  ;;  %v2339_v32 = vsel %vm2325_vm11, %v4905_v8, %v2255_v42  ;;  %v3085_v8 = vld [vmem:[%s7418_s8 + $0x98] sm:$0xff]  ;;  %v7133_v12 = vrot.slane %v2448_v55, %v801_v49 }
 0x356   :  { %4387 = vmatprep.subr.bf16.mxu1 %v4929_v19  ;;  %v4397_v37 = vpack.c.bf16 %v3085_v8, %v3084_v39 }
 0x358   :  { %2761 = vmatmul.mubr.f32.gmra.mrb[96].mxu1 %v2332_v1  ;;  %v2259_v16 = vpop.permute.xlu0 %2258 }
 0x359   :  { %3879 = vmatprep.mubr.msk.f32.mxu1 %vm2460_vm10, %v2243_v3  ;;  %4389 = vmatpush1.bf16.msra.mxu1 %v4388_v51  ;;  %v2341_v45 = vsel %vm2325_vm11, %v6989_v29, %v2259_v16  ;;  %v7137_v29 = vrot.slane %v2448_v55, %v805_v43 }
 0x35a   :  { %4390 = vmatprep.subr.bf16.mxu1 %v4929_v19 }
 0x35c   :  { %2767 = vmatmul.mubr.f32.gmra.mrb[98].mxu1 %v2333_v20 }
 0x35d   :  { %3880 = vmatprep.mubr.msk.f32.mxu1 %vm2460_vm10, %v2245_v9  ;;  %4392 = vmatpush1.bf16.msra.mxu1 %v4391_v53 }
 0x35e   :  { %4393 = vmatprep.subr.bf16.mxu1 %v4929_v19 }
 0x360   :  { %2773 = vmatmul.mubr.f32.gmra.mrb[100].mxu1 %v2334_v62 }
 0x361   :  { %3881 = vmatprep.mubr.msk.f32.mxu1 %vm2460_vm10, %v2247_v4  ;;  %4395 = vmatpush1.bf16.msra.mxu1 %v4394_v34 }
 0x362   :  { %4396 = vmatprep.subr.bf16.mxu1 %v4929_v19 }
 0x364   :  { %2779 = vmatmul.mubr.f32.gmra.mrb[102].mxu1 %v2335_v13 }
 0x365   :  { %3882 = vmatprep.mubr.msk.f32.mxu1 %vm2460_vm10, %v2249_v48  ;;  %4398 = vmatpush1.bf16.msra.mxu1 %v4397_v37 }
 0x368   :  { %2785 = vmatmul.mubr.f32.gmra.mrb[104].mxu1 %v2336_v50 }
 0x369   :  { %3883 = vmatprep.mubr.msk.f32.mxu1 %vm2460_vm10, %v2251_v41 }
 0x36c   :  { %2791 = vmatmul.mubr.f32.gmra.mrb[106].mxu1 %v2337_v15 }
 0x36d   :  { %3884 = vmatprep.mubr.msk.f32.mxu1 %vm2460_vm10, %v2253_v7 }
 0x370   :  { %2797 = vmatmul.mubr.f32.gmra.mrb[108].mxu1 %v2338_v59 }
 0x371   :  { %3885 = vmatprep.mubr.msk.f32.mxu1 %vm2460_vm10, %v2255_v42 }
 0x374   :  { %2803 = vmatmul.mubr.f32.gmra.mrb[110].mxu1 %v2339_v32 }
 0x375   :  { %3886 = vmatprep.mubr.msk.f32.mxu1 %vm2460_vm10, %v2257_v14 }
 0x378   :  { %2809 = vmatmul.mubr.f32.gmra.mrb[112].mxu1 %v2340_v28 }
 0x379   :  { %3887 = vmatprep.mubr.msk.f32.mxu1 %vm2460_vm10, %v2259_v16 }
 0x37c   :  { %2815 = vmatmul.mubr.f32.gmra.mrb[114].mxu1 %v2341_v45 }
 0x413   :  { %v2726_v17 = vpop.f32.mrb[84].mxu1 }
 0x414   :  { %v4494_v22 = vadd.f32 %v2726_v17, %v7133_v12  ;;  %v2728_v11 = vpop.f32.mrb[85].mxu1 }
 0x415   :  { %v4495_v63 = vadd.f32 %v2728_v11, %v7137_v29 }
 0x416   :  { %v2821_v21 = vmax.f32 %v4494_v22, 0.0 }
 0x417   :  { %v2822_v18 = vmax.f32 %v4495_v63, 0.0  ;;  %v2732_v47 = vpop.f32.mrb[86].mxu1 }
 0x418   :  { %v4496_v25 = vadd.f32 %v2732_v47, %v7133_v12  ;;  %v2734_v38 = vpop.f32.mrb[87].mxu1 }
 0x419   :  { %v4497_v40 = vadd.f32 %v2734_v38, %v7137_v29  ;;  %3888 = vmatprep.mubr.msk.f32.mxu0 %vm658_vm4, %v2822_v18  ;;  %3904 = vmatprep.mubr.msk.f32.mxu1 %vm658_vm4, %v2822_v18 }
 0x41a   :  { %2986 = vmatmul.mubr.f32.vlgmr.msra.gmra.mrb[108].mxu0 %v2821_v21  ;;  %3151 = vmatmul.mubr.f32.vlgmr.msra.gmra.mrb[116].mxu1 %v2821_v21  ;;  %v2823_v43 = vmax.f32 %v4496_v25, 0.0 }
 0x41b   :  { %v2824_v46 = vmax.f32 %v4497_v40, 0.0  ;;  %v2738_v49 = vpop.f32.mrb[88].mxu1 }
 0x41c   :  { %v4498_v56 = vadd.f32 %v2738_v49, %v7133_v12  ;;  %v2740_v30 = vpop.f32.mrb[89].mxu1 }
 0x41d   :  { %v4499_v2 = vadd.f32 %v2740_v30, %v7137_v29  ;;  %3889 = vmatprep.mubr.msk.f32.mxu0 %vm658_vm4, %v2824_v46  ;;  %3905 = vmatprep.mubr.msk.f32.mxu1 %vm658_vm4, %v2824_v46 }
 0x41e   :  { %2991 = vmatmul.mubr.f32.gmra.mrb[110].mxu0 %v2823_v43  ;;  %3156 = vmatmul.mubr.f32.gmra.mrb[118].mxu1 %v2823_v43  ;;  %v2825_v36 = vmax.f32 %v4498_v56, 0.0 }
 0x41f   :  { %v2826_v58 = vmax.f32 %v4499_v2, 0.0  ;;  %v2744_v10 = vpop.f32.mrb[90].mxu1 }
 0x420   :  { %v4500_v44 = vadd.f32 %v2744_v10, %v7133_v12  ;;  %v2746_v0 = vpop.f32.mrb[91].mxu1 }
 0x421   :  { %v4501_v33 = vadd.f32 %v2746_v0, %v7137_v29  ;;  %3890 = vmatprep.mubr.msk.f32.mxu0 %vm658_vm4, %v2826_v58  ;;  %3906 = vmatprep.mubr.msk.f32.mxu1 %vm658_vm4, %v2826_v58 }
 0x422   :  { %2996 = vmatmul.mubr.f32.gmra.mrb[112].mxu0 %v2825_v36  ;;  %3161 = vmatmul.mubr.f32.gmra.mrb[120].mxu1 %v2825_v36  ;;  %v2827_v24 = vmax.f32 %v4500_v44, 0.0 }
 0x423   :  { %v2828_v23 = vmax.f32 %v4501_v33, 0.0  ;;  %v2750_v61 = vpop.f32.mrb[92].mxu1 }
 0x424   :  { %v4502_v27 = vadd.f32 %v2750_v61, %v7133_v12  ;;  %v2752_v26 = vpop.f32.mrb[93].mxu1 }
 0x425   :  { %v4503_v5 = vadd.f32 %v2752_v26, %v7137_v29  ;;  %3891 = vmatprep.mubr.msk.f32.mxu0 %vm658_vm4, %v2828_v23  ;;  %3907 = vmatprep.mubr.msk.f32.mxu1 %vm658_vm4, %v2828_v23 }
 0x426   :  { %3001 = vmatmul.mubr.f32.gmra.mrb[114].mxu0 %v2827_v24  ;;  %3166 = vmatmul.mubr.f32.gmra.mrb[122].mxu1 %v2827_v24  ;;  %v2829_v51 = vmax.f32 %v4502_v27, 0.0 }
 0x427   :  { %v2830_v60 = vmax.f32 %v4503_v5, 0.0  ;;  %v2756_v31 = vpop.f32.mrb[94].mxu1 }
 0x428   :  { %v4504_v6 = vadd.f32 %v2756_v31, %v7133_v12  ;;  %v2758_v54 = vpop.f32.mrb[95].mxu1 }
 0x429   :  { %v4505_v1 = vadd.f32 %v2758_v54, %v7137_v29  ;;  %3892 = vmatprep.mubr.msk.f32.mxu0 %vm658_vm4, %v2830_v60  ;;  %3908 = vmatprep.mubr.msk.f32.mxu1 %vm658_vm4, %v2830_v60 }
 0x42a   :  { %3006 = vmatmul.mubr.f32.gmra.mrb[116].mxu0 %v2829_v51  ;;  %3171 = vmatmul.mubr.f32.gmra.mrb[124].mxu1 %v2829_v51  ;;  %v2831_v35 = vmax.f32 %v4504_v6, 0.0 }
 0x42b   :  { %v2832_v3 = vmax.f32 %v4505_v1, 0.0  ;;  %v2762_v53 = vpop.f32.mrb[96].mxu1 }
 0x42c   :  { %v4506_v52 = vadd.f32 %v2762_v53, %v7133_v12  ;;  %v2764_v20 = vpop.f32.mrb[97].mxu1 }
 0x42d   :  { %v4507_v9 = vadd.f32 %v2764_v20, %v7137_v29  ;;  %3893 = vmatprep.mubr.msk.f32.mxu0 %vm658_vm4, %v2832_v3  ;;  %3909 = vmatprep.mubr.msk.f32.mxu1 %vm658_vm4, %v2832_v3  ;;  %v3923_v20 = vld [vmem:[%s7420_s9 + $0x68] sm:$0xff] }
 0x42e   :  { %3011 = vmatmul.mubr.f32.gmra.mrb[118].mxu0 %v2831_v35  ;;  %3176 = vmatmul.mubr.f32.gmra.mrb[126].mxu1 %v2831_v35  ;;  %v2833_v4 = vmax.f32 %v4506_v52, 0.0  ;;  %v3922_v52 = vld [vmem:[%s7420_s9 + $0x60] sm:$0xff] }
 0x42f   :  { %v2834_v34 = vmax.f32 %v4507_v9, 0.0  ;;  %v2768_v62 = vpop.f32.mrb[98].mxu1  ;;  %v4403_v9 = vpack.c.bf16 %v3923_v20, %v3922_v52 }
 0x430   :  { %v4508_v13 = vadd.f32 %v2768_v62, %v7133_v12  ;;  %v2770_v48 = vpop.f32.mrb[99].mxu1  ;;  %v3925_v62 = vld [vmem:[%s7420_s9 + $0x78] sm:$0xff] }
 0x431   :  { %v4509_v50 = vadd.f32 %v2770_v48, %v7137_v29  ;;  %3894 = vmatprep.mubr.msk.f32.mxu0 %vm658_vm4, %v2834_v34  ;;  %3910 = vmatprep.mubr.msk.f32.mxu1 %vm658_vm4, %v2834_v34  ;;  %v3924_v34 = vld [vmem:[%s7420_s9 + $0x70] sm:$0xff]  ;;  %v3927_v48 = vld [vmem:[%s7420_s9 + $0x88] sm:$0xff] }
 0x432   :  { %3016 = vmatmul.mubr.f32.gmra.mrb[120].mxu0 %v2833_v4  ;;  %3181 = vmatmul.mubr.f32.gmra.mrb[128].mxu1 %v2833_v4  ;;  %v2835_v7 = vmax.f32 %v4508_v13, 0.0  ;;  %v4406_v4 = vpack.c.bf16 %v3925_v62, %v3924_v34  ;;  %v3926_v13 = vld [vmem:[%s7420_s9 + $0x80] sm:$0xff] }
 0x433   :  { %v2836_v41 = vmax.f32 %v4509_v50, 0.0  ;;  %v2774_v15 = vpop.f32.mrb[100].mxu1  ;;  %v4409_v50 = vpack.c.bf16 %v3927_v48, %v3926_v13 }
 0x434   :  { %v4510_v59 = vadd.f32 %v2774_v15, %v7133_v12  ;;  %v2776_v42 = vpop.f32.mrb[101].mxu1  ;;  %v3929_v15 = vld [vmem:[%s7420_s9 + $0x98] sm:$0xff] }
 0x435   :  { %v4511_v32 = vadd.f32 %v2776_v42, %v7137_v29  ;;  %3895 = vmatprep.mubr.msk.f32.mxu0 %vm658_vm4, %v2836_v41  ;;  %3911 = vmatprep.mubr.msk.f32.mxu1 %vm658_vm4, %v2836_v41  ;;  %v3928_v41 = vld [vmem:[%s7420_s9 + $0x90] sm:$0xff] }
 0x436   :  { %3021 = vmatmul.mubr.f32.gmra.mrb[122].mxu0 %v2835_v7  ;;  %3186 = vmatmul.mubr.f32.gmra.mrb[130].mxu1 %v2835_v7  ;;  %v2837_v16 = vmax.f32 %v4510_v59, 0.0  ;;  %v4412_v7 = vpack.c.bf16 %v3929_v15, %v3928_v41 }
 0x437   :  { %v2838_v14 = vmax.f32 %v4511_v32, 0.0  ;;  %v2780_v28 = vpop.f32.mrb[102].mxu1 }
 0x438   :  { %v4512_v45 = vadd.f32 %v2780_v28, %v7133_v12  ;;  %v2782_v39 = vpop.f32.mrb[103].mxu1 }
 0x439   :  { %v4513_v8 = vadd.f32 %v2782_v39, %v7137_v29  ;;  %3896 = vmatprep.mubr.msk.f32.mxu0 %vm658_vm4, %v2838_v14  ;;  %3912 = vmatprep.mubr.msk.f32.mxu1 %vm658_vm4, %v2838_v14 }
 0x43a   :  { %3026 = vmatmul.mubr.f32.gmra.mrb[124].mxu0 %v2837_v16  ;;  %3191 = vmatmul.mubr.f32.gmra.mrb[132].mxu1 %v2837_v16  ;;  %v2839_v17 = vmax.f32 %v4512_v45, 0.0 }
 0x43b   :  { %v2840_v37 = vmax.f32 %v4513_v8, 0.0  ;;  %v2786_v55 = vpop.f32.mrb[104].mxu1 }
 0x43c   :  { %v4514_v22 = vadd.f32 %v2786_v55, %v7133_v12  ;;  %v2788_v11 = vpop.f32.mrb[105].mxu1 }
 0x43d   :  { %v4515_v63 = vadd.f32 %v2788_v11, %v7137_v29  ;;  %3897 = vmatprep.mubr.msk.f32.mxu0 %vm658_vm4, %v2840_v37  ;;  %3913 = vmatprep.mubr.msk.f32.mxu1 %vm658_vm4, %v2840_v37 }
 0x43e   :  { %3031 = vmatmul.mubr.f32.gmra.mrb[126].mxu0 %v2839_v17  ;;  %3196 = vmatmul.mubr.f32.gmra.mrb[134].mxu1 %v2839_v17  ;;  %v2841_v21 = vmax.f32 %v4514_v22, 0.0 }
 0x43f   :  { %v2842_v18 = vmax.f32 %v4515_v63, 0.0  ;;  %v2792_v47 = vpop.f32.mrb[106].mxu1 }
 0x440   :  { %v4516_v25 = vadd.f32 %v2792_v47, %v7133_v12  ;;  %v2794_v38 = vpop.f32.mrb[107].mxu1 }
 0x441   :  { %v4517_v40 = vadd.f32 %v2794_v38, %v7137_v29  ;;  %3898 = vmatprep.mubr.msk.f32.mxu0 %vm658_vm4, %v2842_v18  ;;  %3914 = vmatprep.mubr.msk.f32.mxu1 %vm658_vm4, %v2842_v18 }
 0x442   :  { %3036 = vmatmul.mubr.f32.gmra.mrb[128].mxu0 %v2841_v21  ;;  %3201 = vmatmul.mubr.f32.gmra.mrb[136].mxu1 %v2841_v21  ;;  %v2843_v43 = vmax.f32 %v4516_v25, 0.0 }
 0x443   :  { %v2844_v46 = vmax.f32 %v4517_v40, 0.0  ;;  %v2798_v49 = vpop.f32.mrb[108].mxu1 }
 0x444   :  { %v4518_v56 = vadd.f32 %v2798_v49, %v7133_v12  ;;  %v2800_v30 = vpop.f32.mrb[109].mxu1 }
 0x445   :  { %v4519_v2 = vadd.f32 %v2800_v30, %v7137_v29  ;;  %3899 = vmatprep.mubr.msk.f32.mxu0 %vm658_vm4, %v2844_v46  ;;  %3915 = vmatprep.mubr.msk.f32.mxu1 %vm658_vm4, %v2844_v46 }
 0x446   :  { %3041 = vmatmul.mubr.f32.gmra.mrb[130].mxu0 %v2843_v43  ;;  %3206 = vmatmul.mubr.f32.gmra.mrb[138].mxu1 %v2843_v43  ;;  %v2845_v36 = vmax.f32 %v4518_v56, 0.0 }
 0x447   :  { %v2846_v58 = vmax.f32 %v4519_v2, 0.0  ;;  %v2804_v10 = vpop.f32.mrb[110].mxu1 }
 0x448   :  { %v4520_v44 = vadd.f32 %v2804_v10, %v7133_v12  ;;  %v2806_v0 = vpop.f32.mrb[111].mxu1 }
 0x449   :  { %v4521_v33 = vadd.f32 %v2806_v0, %v7137_v29  ;;  %3900 = vmatprep.mubr.msk.f32.mxu0 %vm658_vm4, %v2846_v58  ;;  %3916 = vmatprep.mubr.msk.f32.mxu1 %vm658_vm4, %v2846_v58 }
 0x44a   :  { %3046 = vmatmul.mubr.f32.gmra.mrb[132].mxu0 %v2845_v36  ;;  %3211 = vmatmul.mubr.f32.gmra.mrb[140].mxu1 %v2845_v36  ;;  %v2847_v24 = vmax.f32 %v4520_v44, 0.0 }
 0x44b   :  { %v2848_v23 = vmax.f32 %v4521_v33, 0.0  ;;  %v2810_v61 = vpop.f32.mrb[112].mxu1 }
 0x44c   :  { %v4522_v27 = vadd.f32 %v2810_v61, %v7133_v12  ;;  %v2812_v26 = vpop.f32.mrb[113].mxu1 }
 0x44d   :  { %v4523_v5 = vadd.f32 %v2812_v26, %v7137_v29  ;;  %3901 = vmatprep.mubr.msk.f32.mxu0 %vm658_vm4, %v2848_v23  ;;  %3917 = vmatprep.mubr.msk.f32.mxu1 %vm658_vm4, %v2848_v23 }
 0x44e   :  { %3051 = vmatmul.mubr.f32.gmra.mrb[134].mxu0 %v2847_v24  ;;  %3216 = vmatmul.mubr.f32.gmra.mrb[142].mxu1 %v2847_v24  ;;  %v2849_v51 = vmax.f32 %v4522_v27, 0.0 }
 0x44f   :  { %v2850_v60 = vmax.f32 %v4523_v5, 0.0  ;;  %v2816_v31 = vpop.f32.mrb[114].mxu1 }
 0x450   :  { %v4524_v6 = vadd.f32 %v2816_v31, %v7133_v12  ;;  %v2818_v54 = vpop.f32.mrb[115].mxu1  ;;  %v3920_v12 = vld [vmem:[%s7420_s9 + $0x50] sm:$0xff] }
 0x451   :  { %v4525_v1 = vadd.f32 %v2818_v54, %v7137_v29  ;;  %3902 = vmatprep.mubr.msk.f32.mxu0 %vm658_vm4, %v2850_v60  ;;  %3918 = vmatprep.mubr.msk.f32.mxu1 %vm658_vm4, %v2850_v60  ;;  %v3921_v29 = vld [vmem:[%s7420_s9 + $0x58] sm:$0xff] }
 0x452   :  { %3056 = vmatmul.mubr.f32.gmra.mrb[136].mxu0 %v2849_v51  ;;  %3221 = vmatmul.mubr.f32.gmra.mrb[144].mxu1 %v2849_v51  ;;  %v2851_v53 = vmax.f32 %v4524_v6, 0.0  ;;  %v4400_v35 = vpack.c.bf16 %v3921_v29, %v3920_v12 }
 0x453   :  { %v2852_v3 = vmax.f32 %v4525_v1, 0.0 }
 0x454   :  { %4401 = vmatpush3.bf16.msra.mxu0 %v4400_v35 }
 0x455   :  { %3903 = vmatprep.mubr.msk.f32.mxu0 %vm658_vm4, %v2852_v3  ;;  %3919 = vmatprep.mubr.msk.f32.mxu1 %vm658_vm4, %v2852_v3 }
 0x456   :  { %3061 = vmatmul.mubr.f32.gmra.mrb[138].mxu0 %v2851_v53  ;;  %3226 = vmatmul.mubr.f32.gmra.mrb[146].mxu1 %v2851_v53 }
 0x457   :  { %4402 = vmatprep.subr.bf16.mxu0 %v4929_v19  ;;  %4040 = vmatprep.mubr.msk.f32.mxu0 %vm4935_vm12, %v4930_v57 }
 0x458   :  { %4404 = vmatpush3.bf16.msra.mxu0 %v4403_v9 }
 0x459   :  { %4405 = vmatprep.subr.bf16.mxu0 %v4929_v19 }
 0x45c   :  { %4407 = vmatpush3.bf16.msra.mxu0 %v4406_v4 }
 0x45d   :  { %4408 = vmatprep.subr.bf16.mxu0 %v4929_v19 }
 0x460   :  { %4410 = vmatpush3.bf16.msra.mxu0 %v4409_v50 }
 0x461   :  { %4411 = vmatprep.subr.bf16.mxu0 %v4929_v19 }
 0x464   :  { %4413 = vmatpush3.bf16.msra.mxu0 %v4412_v7 }
 0x465   :  { %4414 = vmatprep.subr.bf16.mxu0 %v4929_v19 }
 0x4ed   :  { %v2987_v59 = vpop.f32.mrb[108].mxu0  ;;  %v3152_v42 = vpop.f32.mrb[116].mxu1 }
 0x4ee   :  { %v3231_v32 = vmax.f32 %v2987_v59, %v3152_v42  ;;  %v2989_v14 = vpop.f32.mrb[109].mxu0  ;;  %v3154_v28 = vpop.f32.mrb[117].mxu1 }
 0x4f0   :  { %3247 = vst.msk [vmem:[#allocation3] sm:$0xff] %vm2325_vm11, %v3231_v32 }
 0x4f1   :  { %v2992_v16 = vpop.f32.mrb[110].mxu0  ;;  %v3157_v45 = vpop.f32.mrb[118].mxu1 }
 0x4f2   :  { %v3232_v39 = vmax.f32 %v2992_v16, %v3157_v45  ;;  %v2994_v8 = vpop.f32.mrb[111].mxu0  ;;  %v3159_v37 = vpop.f32.mrb[119].mxu1 }
 0x4f4   :  { %3248 = vst.msk [vmem:[#allocation3 + $0x8] sm:$0xff] %vm2325_vm11, %v3232_v39 }
 0x4f5   :  { %v2997_v55 = vpop.f32.mrb[112].mxu0  ;;  %v3162_v17 = vpop.f32.mrb[120].mxu1 }
 0x4f6   :  { %v3233_v22 = vmax.f32 %v2997_v55, %v3162_v17  ;;  %v2999_v11 = vpop.f32.mrb[113].mxu0  ;;  %v3164_v63 = vpop.f32.mrb[121].mxu1 }
 0x4f8   :  { %3249 = vst.msk [vmem:[#allocation3 + $0x10] sm:$0xff] %vm2325_vm11, %v3233_v22 }
 0x4f9   :  { %v3002_v18 = vpop.f32.mrb[114].mxu0  ;;  %v3167_v47 = vpop.f32.mrb[122].mxu1 }
 0x4fa   :  { %v3234_v21 = vmax.f32 %v3002_v18, %v3167_v47  ;;  %v3004_v25 = vpop.f32.mrb[115].mxu0  ;;  %v3169_v38 = vpop.f32.mrb[123].mxu1 }
 0x4fc   :  { %3250 = vst.msk [vmem:[#allocation3 + $0x18] sm:$0xff] %vm2325_vm11, %v3234_v21 }
 0x4fd   :  { %v3007_v40 = vpop.f32.mrb[116].mxu0  ;;  %v3172_v46 = vpop.f32.mrb[124].mxu1 }
 0x4fe   :  { %v3235_v49 = vmax.f32 %v3007_v40, %v3172_v46  ;;  %v3009_v43 = vpop.f32.mrb[117].mxu0  ;;  %v3174_v56 = vpop.f32.mrb[125].mxu1 }
 0x4ff   :  { %v3290_v47 = vld [vmem:[#allocation3 + $0x2] ss:$16 sm:$0x3]  ;;  %v3298_v46 = vld [vmem:[#allocation3 + $0x3] ss:$16 sm:$0x3] }
 0x500   :  { %3251 = vst.msk [vmem:[#allocation3 + $0x20] sm:$0xff] %vm2325_vm11, %v3235_v49 }
 0x501   :  { %v3012_v30 = vpop.f32.mrb[118].mxu0  ;;  %v3177_v2 = vpop.f32.mrb[126].mxu1 }
 0x502   :  { %v3236_v58 = vmax.f32 %v3012_v30, %v3177_v2  ;;  %v3014_v10 = vpop.f32.mrb[119].mxu0  ;;  %v3179_v36 = vpop.f32.mrb[127].mxu1 }
 0x503   :  { %v3279_v10 = vld [vmem:[%s7420_s9] sm:$0xff]  ;;  %v3280_v36 = vld [vmem:[%s7420_s9 + $0x8] sm:$0xff] }
 0x504   :  { %3252 = vst.msk [vmem:[#allocation3 + $0x28] sm:$0xff] %vm2325_vm11, %v3236_v58 }
 0x505   :  { %v3017_v44 = vpop.f32.mrb[120].mxu0  ;;  %v3182_v0 = vpop.f32.mrb[128].mxu1 }
 0x506   :  { %v3237_v33 = vmax.f32 %v3017_v44, %v3182_v0  ;;  %v3019_v23 = vpop.f32.mrb[121].mxu0  ;;  %v3184_v61 = vpop.f32.mrb[129].mxu1 }
 0x507   :  { %v4415_v61 = vpack.c.bf16 %v3280_v36, %v3279_v10 }
 0x508   :  { %3253 = vst.msk [vmem:[#allocation3 + $0x30] sm:$0xff] %vm2325_vm11, %v3237_v33 }
 0x509   :  { %v3022_v24 = vpop.f32.mrb[122].mxu0  ;;  %v3187_v27 = vpop.f32.mrb[130].mxu1 }
 0x50a   :  { %v3238_v26 = vmax.f32 %v3022_v24, %v3187_v27  ;;  %v3024_v5 = vpop.f32.mrb[123].mxu0  ;;  %v3189_v60 = vpop.f32.mrb[131].mxu1  ;;  %v3281_v27 = vld [vmem:[%s7420_s9 + $0x10] sm:$0xff] }
 0x50b   :  { %v3283_v60 = vld [vmem:[%s7420_s9 + $0x20] sm:$0xff] }
 0x50c   :  { %3254 = vst.msk [vmem:[#allocation3 + $0x38] sm:$0xff] %vm2325_vm11, %v3238_v26  ;;  %v3282_v26 = vld [vmem:[%s7420_s9 + $0x18] sm:$0xff] }
 0x50d   :  { %v3027_v31 = vpop.f32.mrb[124].mxu0  ;;  %v3192_v51 = vpop.f32.mrb[132].mxu1  ;;  %v4418_v5 = vpack.c.bf16 %v3282_v26, %v3281_v27  ;;  %v3947_v26 = vld [vmem:[%s7420_s9 + $0x110] sm:$0xff] }
 0x50e   :  { %v3239_v6 = vmax.f32 %v3027_v31, %v3192_v51  ;;  %v3029_v54 = vpop.f32.mrb[125].mxu0  ;;  %v3194_v1 = vpop.f32.mrb[133].mxu1  ;;  %v3284_v31 = vld [vmem:[%s7420_s9 + $0x28] sm:$0xff] }
 0x50f   :  { %v3291_v11 = vld [vmem:[#allocation3 + $0x2] ss:$16 sm:$0xc]  ;;  %v3299_v21 = vld [vmem:[#allocation3 + $0x3] ss:$16 sm:$0xc]  ;;  %v4421_v51 = vpack.c.bf16 %v3284_v31, %v3283_v60 }
 0x510   :  { %3255 = vst.msk [vmem:[#allocation3 + $0x40] sm:$0xff] %vm2325_vm11, %v3239_v6  ;;  %v3292_v56 = vor.u32 %v3291_v11, %v3290_v47  ;;  %v3300_v30 = vor.u32 %v3299_v21, %v3298_v46  ;;  %v3285_v6 = vld [vmem:[%s7420_s9 + $0x30] sm:$0xff]  ;;  %v3286_v54 = vld [vmem:[%s7420_s9 + $0x38] sm:$0xff]  ;;  %v3949_v31 = vld [vmem:[%s7420_s9 + $0x120] sm:$0xff] }
 0x511   :  { %v3032_v3 = vpop.f32.mrb[126].mxu0  ;;  %v3197_v53 = vpop.f32.mrb[134].mxu1  ;;  %v3264_v1 = vld [vmem:[#allocation3] ss:$16 sm:$0xc] }
 0x512   :  { %v3240_v12 = vmax.f32 %v3032_v3, %v3197_v53  ;;  %v3034_v29 = vpop.f32.mrb[127].mxu0  ;;  %v3199_v35 = vpop.f32.mrb[135].mxu1  ;;  %v3272_v3 = vld [vmem:[#allocation3 + $0x1] ss:$16 sm:$0xc] }
 0x513   :  { %v3263_v53 = vld [vmem:[#allocation3] ss:$16 sm:$0x3]  ;;  %v4424_v29 = vpack.c.bf16 %v3286_v54, %v3285_v6  ;;  %v3473_v11 = vld [vmem:[#allocation3 + $0x5] ss:$16 sm:$0xc] }
 0x514   :  { %3256 = vst.msk [vmem:[#allocation3 + $0x48] sm:$0xff] %vm2325_vm11, %v3240_v12  ;;  %v3271_v12 = vld [vmem:[#allocation3 + $0x1] ss:$16 sm:$0x3] }
 0x515   :  { %v3037_v52 = vpop.f32.mrb[128].mxu0  ;;  %v3202_v20 = vpop.f32.mrb[136].mxu1  ;;  %v3567_v6 = vld [vmem:[#allocation3 + $0x6] ss:$16 sm:$0xc] }
 0x516   :  { %v3241_v9 = vmax.f32 %v3037_v52, %v3202_v20  ;;  %v3039_v34 = vpop.f32.mrb[129].mxu0  ;;  %v3204_v62 = vpop.f32.mrb[137].mxu1  ;;  %v3287_v20 = vld [vmem:[%s7420_s9 + $0x40] sm:$0xff] }
 0x517   :  { %v3265_v34 = vor.u32 %v3264_v1, %v3263_v53  ;;  %v3273_v62 = vor.u32 %v3272_v3, %v3271_v12  ;;  %v3575_v54 = vld [vmem:[#allocation3 + $0x7] ss:$16 sm:$0xc]  ;;  %v3566_v1 = vld [vmem:[#allocation3 + $0x6] ss:$16 sm:$0x3] }
 0x518   :  { %3257 = vst.msk [vmem:[#allocation3 + $0x50] sm:$0xff] %vm2325_vm11, %v3241_v9  ;;  %v3288_v9 = vld [vmem:[%s7420_s9 + $0x48] sm:$0xff]  ;;  %v3574_v3 = vld [vmem:[#allocation3 + $0x7] ss:$16 sm:$0x3] }
 0x519   :  { %v3042_v4 = vpop.f32.mrb[130].mxu0  ;;  %v3207_v13 = vpop.f32.mrb[138].mxu1 }
 0x51a   :  { %v3242_v48 = vmax.f32 %v3042_v4, %v3207_v13  ;;  %v3044_v50 = vpop.f32.mrb[131].mxu0  ;;  %v3209_v41 = vpop.f32.mrb[139].mxu1 }
 0x51b   :  { %v4427_v41 = vpack.c.bf16 %v3288_v9, %v3287_v20  ;;  %v3568_v20 = vor.u32 %v3567_v6, %v3566_v1  ;;  %v3576_v9 = vor.u32 %v3575_v54, %v3574_v3 }
 0x51c   :  { %3258 = vst.msk [vmem:[#allocation3 + $0x58] sm:$0xff] %vm2325_vm11, %v3242_v48 }
 0x51d   :  { %v3047_v15 = vpop.f32.mrb[132].mxu0  ;;  %v3212_v7 = vpop.f32.mrb[140].mxu1 }
 0x51e   :  { %v3243_v59 = vmax.f32 %v3047_v15, %v3212_v7  ;;  %v3049_v42 = vpop.f32.mrb[133].mxu0  ;;  %v3214_v32 = vpop.f32.mrb[141].mxu1 }
 0x51f   :  { %v3293_v49 = vld [vmem:[#allocation3 + $0x2] ss:$16 sm:$0x30]  ;;  %v3301_v43 = vld [vmem:[#allocation3 + $0x3] ss:$16 sm:$0x30] }
 0x520   :  { %3259 = vst.msk [vmem:[#allocation3 + $0x60] sm:$0xff] %vm2325_vm11, %v3243_v59  ;;  %v3294_v2 = vor.u32 %v3293_v49, %v3292_v56  ;;  %v3302_v58 = vor.u32 %v3301_v43, %v3300_v30  ;;  %v3266_v35 = vld [vmem:[#allocation3] ss:$16 sm:$0x30]  ;;  %v3933_v42 = vld [vmem:[%s7420_s9 + $0xa8] sm:$0xff] }
 0x521   :  { %v3052_v14 = vpop.f32.mrb[134].mxu0  ;;  %v3217_v28 = vpop.f32.mrb[142].mxu1  ;;  %v3274_v52 = vld [vmem:[#allocation3 + $0x1] ss:$16 sm:$0x30]  ;;  %v3267_v48 = vor.u32 %v3266_v35, %v3265_v34 }
 0x522   :  { %v3244_v16 = vmax.f32 %v3052_v14, %v3217_v28  ;;  %v3054_v45 = vpop.f32.mrb[135].mxu0  ;;  %v3219_v39 = vpop.f32.mrb[143].mxu1  ;;  %v3275_v50 = vor.u32 %v3274_v52, %v3273_v62  ;;  %v3932_v59 = vld [vmem:[%s7420_s9 + $0xa0] sm:$0xff]  ;;  %v3934_v28 = vld [vmem:[%s7420_s9 + $0xb0] sm:$0xff]  ;;  %v3952_v52 = vld [vmem:[%s7420_s9 + $0x138] sm:$0xff] }
 0x523   :  { %v4430_v32 = vpack.c.bf16 %v3933_v42, %v3932_v59  ;;  %v3936_v39 = vld [vmem:[%s7420_s9 + $0xc0] sm:$0xff]  ;;  %v3951_v35 = vld [vmem:[%s7420_s9 + $0x130] sm:$0xff] }
 0x524   :  { %3260 = vst.msk [vmem:[#allocation3 + $0x68] sm:$0xff] %vm2325_vm11, %v3244_v16  ;;  %v3935_v16 = vld [vmem:[%s7420_s9 + $0xb8] sm:$0xff]  ;;  %v3467_v21 = vld [vmem:[#allocation3 + $0x4] ss:$16 sm:$0x30] }
 0x525   :  { %v3057_v8 = vpop.f32.mrb[136].mxu0  ;;  %v3222_v37 = vpop.f32.mrb[144].mxu1  ;;  %v4433_v45 = vpack.c.bf16 %v3935_v16, %v3934_v28  ;;  %v3569_v12 = vld [vmem:[#allocation3 + $0x6] ss:$16 sm:$0x30] }
 0x526   :  { %v3245_v55 = vmax.f32 %v3057_v8, %v3222_v37  ;;  %v3059_v17 = vpop.f32.mrb[137].mxu0  ;;  %v3224_v22 = vpop.f32.mrb[145].mxu1  ;;  %v3937_v8 = vld [vmem:[%s7420_s9 + $0xc8] sm:$0xff]  ;;  %v3958_v16 = vld [vmem:[%s7420_s9 + $0x160] sm:$0xff] }
 0x527   :  { %v4436_v37 = vpack.c.bf16 %v3937_v8, %v3936_v39  ;;  %v3939_v17 = vld [vmem:[%s7420_s9 + $0xd8] sm:$0xff]  ;;  %v3465_v22 = vld [vmem:[#allocation3 + $0x4] ss:$16 sm:$0xc] }
 0x528   :  { %3261 = vst.msk [vmem:[#allocation3 + $0x70] sm:$0xff] %vm2325_vm11, %v3245_v55  ;;  %v3938_v55 = vld [vmem:[%s7420_s9 + $0xd0] sm:$0xff] }
 0x529   :  { %v3062_v63 = vpop.f32.mrb[138].mxu0  ;;  %v3227_v18 = vpop.f32.mrb[146].mxu1  ;;  %v4439_v47 = vpack.c.bf16 %v3939_v17, %v3938_v55  ;;  %v3960_v8 = vld [vmem:[%s7420_s9 + $0x170] sm:$0xff]  ;;  %v3677_v55 = vld [vmem:[#allocation3 + $0x9] ss:$16 sm:$0xc] }
 0x52a   :  { %v3246_v25 = vmax.f32 %v3062_v63, %v3227_v18  ;;  %v3064_v38 = vpop.f32.mrb[139].mxu0  ;;  %v3229_v40 = vpop.f32.mrb[147].mxu1  ;;  %v3464_v63 = vld [vmem:[#allocation3 + $0x4] ss:$16 sm:$0x3] }
 0x52b   :  { %v3472_v18 = vld [vmem:[#allocation3 + $0x5] ss:$16 sm:$0x3]  ;;  %v3941_v40 = vld [vmem:[%s7420_s9 + $0xe8] sm:$0xff]  ;;  %v3466_v46 = vor.u32 %v3465_v22, %v3464_v63 }
 0x52c   :  { %3262 = vst.msk [vmem:[#allocation3 + $0x78] sm:$0xff] %vm2325_vm11, %v3246_v25  ;;  %v3475_v25 = vld [vmem:[#allocation3 + $0x5] ss:$16 sm:$0x30]  ;;  %v3474_v49 = vor.u32 %v3473_v11, %v3472_v18 }
 0x52d   :  { %v3940_v38 = vld [vmem:[%s7420_s9 + $0xe0] sm:$0xff]  ;;  %v3468_v30 = vor.u32 %v3467_v21, %v3466_v46  ;;  %v3668_v17 = vld [vmem:[#allocation3 + $0x8] ss:$16 sm:$0x3] }
 0x52e   :  { %v3676_v22 = vld [vmem:[#allocation3 + $0x9] ss:$16 sm:$0x3]  ;;  %v3671_v63 = vld [vmem:[#allocation3 + $0x8] ss:$16 sm:$0x30] }
 0x52f   :  { %v3295_v44 = vld [vmem:[#allocation3 + $0x2] ss:$16 sm:$0xc0]  ;;  %v3303_v0 = vld [vmem:[#allocation3 + $0x3] ss:$16 sm:$0xc0] }
 0x530   :  { %v3296_v33 = vor.u32 %v3295_v44, %v3294_v2  ;;  %v3304_v23 = vor.u32 %v3303_v0, %v3302_v58  ;;  %v3268_v4 = vld [vmem:[#allocation3] ss:$16 sm:$0xc0]  ;;  %v3276_v13 = vld [vmem:[#allocation3 + $0x1] ss:$16 sm:$0xc0]  ;;  %v3476_v2 = vor.u32 %v3475_v25, %v3474_v49  ;;  %v4442_v58 = vpack.c.bf16 %v3941_v40, %v3940_v38 }
 0x531   :  { %v3269_v15 = vor.u32 %v3268_v4, %v3267_v48  ;;  %v3277_v7 = vor.u32 %v3276_v13, %v3275_v50  ;;  %v3469_v43 = vld [vmem:[#allocation3 + $0x4] ss:$16 sm:$0xc0]  ;;  %v3477_v56 = vld [vmem:[#allocation3 + $0x5] ss:$16 sm:$0xc0]  ;;  %v3570_v4 = vor.u32 %v3569_v12, %v3568_v20  ;;  %v4457_v48 = vpack.c.bf16 %v3952_v52, %v3951_v35 }
 0x532   :  { %v3305_v24 = vmax.f32 %v3296_v33, %v3304_v23  ;;  %v3470_v10 = vor.u32 %v3469_v43, %v3468_v30  ;;  %v3478_v36 = vor.u32 %v3477_v56, %v3476_v2  ;;  %v3943_v44 = vld [vmem:[%s7420_s9 + $0xf0] sm:$0xff]  ;;  %v3944_v0 = vld [vmem:[%s7420_s9 + $0xf8] sm:$0xff]  ;;  %v3963_v21 = vld [vmem:[%s7420_s9 + $0x188] sm:$0xff]  ;;  %v3678_v38 = vor.u32 %v3677_v55, %v3676_v22 }
 0x533   :  { %v3278_v14 = vmax.f32 %v3269_v15, %v3277_v7  ;;  %v4445_v33 = vpack.c.bf16 %v3944_v0, %v3943_v44  ;;  %v3571_v34 = vld [vmem:[#allocation3 + $0x6] ss:$16 sm:$0xc0]  ;;  %v3579_v62 = vld [vmem:[#allocation3 + $0x7] ss:$16 sm:$0xc0] }
 0x534   :  { %4041 = vmatmul.mubr.msk.f32.vlgmr.msra.gmra.mrb[140].mxu0 %vm2325_vm11, %v3305_v24  ;;  %v3479_v23 = vmax.f32 %v3470_v10, %v3478_v36  ;;  %v3946_v24 = vld [vmem:[%s7420_s9 + $0x108] sm:$0xff]  ;;  %v3572_v50 = vor.u32 %v3571_v34, %v3570_v4  ;;  %v3954_v15 = vld [vmem:[%s7420_s9 + $0x140] sm:$0xff] }
 0x535   :  { %4416 = vmatpush3.bf16.msra.mxu0 %v4415_v61  ;;  %4063 = vmatprep.mubr.msk.f32.mxu0 %vm4935_vm12, %v4930_v57  ;;  %v3945_v61 = vld [vmem:[%s7420_s9 + $0x100] sm:$0xff]  ;;  %v3955_v7 = vld [vmem:[%s7420_s9 + $0x148] sm:$0xff] }
 0x536   :  { %4417 = vmatprep.subr.bf16.mxu0 %v4929_v19  ;;  %v4448_v27 = vpack.c.bf16 %v3946_v24, %v3945_v61  ;;  %v4460_v59 = vpack.c.bf16 %v3955_v7, %v3954_v15  ;;  %v3679_v18 = vld [vmem:[#allocation3 + $0x9] ss:$16 sm:$0x30]  ;;  %v3673_v40 = vld [vmem:[#allocation3 + $0x8] ss:$16 sm:$0xc0] }
 0x537   :  { %v3681_v46 = vld [vmem:[#allocation3 + $0x9] ss:$16 sm:$0xc0]  ;;  %v3680_v43 = vor.u32 %v3679_v18, %v3678_v38 }
 0x539   :  { %4419 = vmatpush3.bf16.msra.mxu0 %v4418_v5  ;;  %v3948_v5 = vld [vmem:[%s7420_s9 + $0x118] sm:$0xff]  ;;  %v3682_v2 = vor.u32 %v3681_v46, %v3680_v43 }
 0x53a   :  { %4420 = vmatprep.subr.bf16.mxu0 %v4929_v19  ;;  %v4451_v60 = vpack.c.bf16 %v3948_v5, %v3947_v26 }
 0x53d   :  { %4422 = vmatpush3.bf16.msra.mxu0 %v4421_v51  ;;  %v3950_v51 = vld [vmem:[%s7420_s9 + $0x128] sm:$0xff] }
 0x53e   :  { %4423 = vmatprep.subr.bf16.mxu0 %v4929_v19  ;;  %v4454_v53 = vpack.c.bf16 %v3950_v51, %v3949_v31 }
 0x541   :  { %4425 = vmatpush3.bf16.msra.mxu0 %v4424_v29  ;;  %v3577_v29 = vld [vmem:[#allocation3 + $0x7] ss:$16 sm:$0x30] }
 0x542   :  { %4426 = vmatprep.subr.bf16.mxu0 %v4929_v19  ;;  %v3578_v13 = vor.u32 %v3577_v29, %v3576_v9 }
 0x545   :  { %4428 = vmatpush3.bf16.msra.mxu0 %v4427_v41  ;;  %v3580_v41 = vor.u32 %v3579_v62, %v3578_v13 }
 0x546   :  { %4429 = vmatprep.subr.bf16.mxu0 %v4929_v19 }
 0x547   :  { %v3581_v42 = vmax.f32 %v3572_v50, %v3580_v41 }
 0x548   :  { %4064 = vmatmul.mubr.msk.f32.vlgmr.msra.gmra.mrb[140].mxu0 %vm2325_vm11, %v3278_v14  ;;  %v3957_v14 = vld [vmem:[%s7420_s9 + $0x158] sm:$0xff] }
 0x549   :  { %4431 = vmatpush3.bf16.msra.mxu0 %v4430_v32  ;;  %4086 = vmatprep.mubr.msk.f32.mxu0 %vm4935_vm12, %v4930_v57  ;;  %v3956_v32 = vld [vmem:[%s7420_s9 + $0x150] sm:$0xff] }
 0x54a   :  { %4432 = vmatprep.subr.bf16.mxu0 %v4929_v19  ;;  %v4463_v28 = vpack.c.bf16 %v3957_v14, %v3956_v32 }
 0x54d   :  { %4434 = vmatpush3.bf16.msra.mxu0 %v4433_v45  ;;  %v3959_v45 = vld [vmem:[%s7420_s9 + $0x168] sm:$0xff] }
 0x54e   :  { %4435 = vmatprep.subr.bf16.mxu0 %v4929_v19  ;;  %v4466_v39 = vpack.c.bf16 %v3959_v45, %v3958_v16 }
 0x551   :  { %4437 = vmatpush3.bf16.msra.mxu0 %v4436_v37  ;;  %v3669_v37 = vld [vmem:[#allocation3 + $0x8] ss:$16 sm:$0xc] }
 0x552   :  { %4438 = vmatprep.subr.bf16.mxu0 %v4929_v19  ;;  %v3670_v25 = vor.u32 %v3669_v37, %v3668_v17 }
 0x554   :  { %v3672_v49 = vor.u32 %v3671_v63, %v3670_v25 }
 0x555   :  { %4440 = vmatpush3.bf16.msra.mxu0 %v4439_v47  ;;  %v3962_v47 = vld [vmem:[%s7420_s9 + $0x180] sm:$0xff] }
 0x556   :  { %4441 = vmatprep.subr.bf16.mxu0 %v4929_v19  ;;  %v4472_v56 = vpack.c.bf16 %v3963_v21, %v3962_v47  ;;  %v3674_v30 = vor.u32 %v3673_v40, %v3672_v49 }
 0x559   :  { %4443 = vmatpush3.bf16.msra.mxu0 %v4442_v58  ;;  %v3683_v58 = vmax.f32 %v3674_v30, %v3682_v2 }
 0x55a   :  { %4444 = vmatprep.subr.bf16.mxu0 %v4929_v19 }
 0x55c   :  { %4087 = vmatmul.mubr.msk.f32.vlgmr.msra.gmra.mrb[140].mxu0 %vm2325_vm11, %v3479_v23 }
 0x55d   :  { %4446 = vmatpush3.bf16.msra.mxu0 %v4445_v33  ;;  %4109 = vmatprep.mubr.msk.f32.mxu0 %vm4935_vm12, %v4930_v57 }
 0x55e   :  { %4447 = vmatprep.subr.bf16.mxu0 %v4929_v19 }
 0x561   :  { %4449 = vmatpush3.bf16.msra.mxu0 %v4448_v27 }
 0x562   :  { %4450 = vmatprep.subr.bf16.mxu0 %v4929_v19 }
 0x565   :  { %4452 = vmatpush3.bf16.msra.mxu0 %v4451_v60 }
 0x566   :  { %4453 = vmatprep.subr.bf16.mxu0 %v4929_v19 }
 0x569   :  { %4455 = vmatpush3.bf16.msra.mxu0 %v4454_v53 }
 0x56a   :  { %4456 = vmatprep.subr.bf16.mxu0 %v4929_v19 }
 0x56d   :  { %4458 = vmatpush3.bf16.msra.mxu0 %v4457_v48 }
 0x56e   :  { %4459 = vmatprep.subr.bf16.mxu0 %v4929_v19 }
 0x570   :  { %4110 = vmatmul.mubr.msk.f32.vlgmr.msra.gmra.mrb[140].mxu0 %vm2325_vm11, %v3581_v42 }
 0x571   :  { %4461 = vmatpush3.bf16.msra.mxu0 %v4460_v59  ;;  %4132 = vmatprep.mubr.msk.f32.mxu0 %vm4935_vm12, %v4930_v57  ;;  %v3961_v57 = vld [vmem:[%s7420_s9 + $0x178] sm:$0xff] }
 0x572   :  { %4462 = vmatprep.subr.bf16.mxu0 %v4929_v19  ;;  %v4469_v11 = vpack.c.bf16 %v3961_v57, %v3960_v8 }
 0x575   :  { %4464 = vmatpush3.bf16.msra.mxu0 %v4463_v28 }
 0x576   :  { %4465 = vmatprep.subr.bf16.mxu0 %v4929_v19 }
 0x579   :  { %4467 = vmatpush3.bf16.msra.mxu0 %v4466_v39 }
 0x57a   :  { %4468 = vmatprep.subr.bf16.mxu0 %v4929_v19 }
 0x57d   :  { %4470 = vmatpush3.bf16.msra.mxu0 %v4469_v11 }
 0x57e   :  { %4471 = vmatprep.subr.bf16.mxu0 %v4929_v19 }
 0x581   :  { %4473 = vmatpush3.bf16.msra.mxu0 %v4472_v56 }
 0x584   :  { %4133 = vmatmul.mubr.msk.f32.vlgmr.msra.gmra.mrb[140].mxu0 %vm2325_vm11, %v3683_v58 }
 0x657   :  { %v3764_v10 = vpop.f32.mrb[140].mxu0 }
 0x658   :  { %3769 = vst [vmem:[%s7421_s10] sm:$0xff] %v3764_v10  ;;  %v4134_v36 = vpop.f32.mrb[141].mxu0 }

</bundles_post_ra>
